<compile_context>
chip_gen: v7x
topology: tpu7x:2x2x1
jax: 0.10.0
libtpu: 0.0.40
codegen_flags: <defaults>
</compile_context>

<pallas_src>
import functools

import jax
import jax.numpy as jnp
from jax.experimental import pallas as pl
from jax.experimental.pallas import tpu as pltpu

_EPS = 1e-8


def _round_up(x, m):
    return ((x + m - 1) // m) * m


# --------------------------------------------------------------------------
# LSTM kernels
#   - gate pre-activations xg = x @ W_ih + b are precomputed in XLA
#   - W_hh is fused & lane-padded to (Gp, 4*Gp); gate k lives in lane block
#     [k*Gp, k*Gp + H), the rest is zero -> padded hidden channels stay 0.
# --------------------------------------------------------------------------
def _lstm_cell(xg, h, c, whh, gp):
    gates = xg + jnp.dot(h, whh, preferred_element_type=jnp.float32)
    i = jax.nn.sigmoid(gates[:, 0 * gp:1 * gp])
    f = jax.nn.sigmoid(gates[:, 1 * gp:2 * gp])
    g = jnp.tanh(gates[:, 2 * gp:3 * gp])
    o = jax.nn.sigmoid(gates[:, 3 * gp:4 * gp])
    c_new = f * c + i * g
    h_new = o * jnp.tanh(c_new)
    return h_new, c_new


def _uni_lstm_last_kernel(xg_ref, whh_ref, last_ref, *, gp, unroll):
    T, Bn = xg_ref.shape[0], xg_ref.shape[1]
    whh = whh_ref[...]

    def body(s, carry):
        h, c = carry
        return _lstm_cell(xg_ref[s], h, c, whh, gp)

    z = jnp.zeros((Bn, gp), jnp.float32)
    h, _ = jax.lax.fori_loop(0, T, body, (z, z), unroll=unroll)
    last_ref[...] = h


def _bi_lstm_ctx_kernel(xgf_ref, xgb_ref, whhf_ref, whhb_ref, ctx_ref,
                        outf_sc, outb_sc, *, gp, unroll):
    T, Bn = xgf_ref.shape[0], xgf_ref.shape[1]
    whhf = whhf_ref[...]
    whhb = whhb_ref[...]

    def body(s, carry):
        hf, cf, hb, cb = carry
        hf, cf = _lstm_cell(xgf_ref[s], hf, cf, whhf, gp)
        outf_sc[s] = hf
        tb = T - 1 - s
        hb, cb = _lstm_cell(xgb_ref[tb], hb, cb, whhb, gp)
        outb_sc[tb] = hb
        return (hf, cf, hb, cb)

    z = jnp.zeros((Bn, gp), jnp.float32)
    jax.lax.fori_loop(0, T, body, (z, z, z, z), unroll=unroll)

    # Epilogue: emit batch-major (B, T, 2*Gp) directly (static per-batch loop,
    # avoids any JAX-level transpose of the output).
    for b in range(Bn):
        ctx_ref[b] = jnp.concatenate(
            [outf_sc[:, b, :], outb_sc[:, b, :]], axis=-1)


def _bi_lstm_last_kernel(xgf_ref, xgb_ref, whhf_ref, whhb_ref, last_ref,
                         *, gp, unroll):
    T, Bn = xgf_ref.shape[0], xgf_ref.shape[1]
    whhf = whhf_ref[...]
    whhb = whhb_ref[...]

    def body(s, carry):
        hf, cf, hb, cb = carry
        hf, cf = _lstm_cell(xgf_ref[s], hf, cf, whhf, gp)
        hb, cb = _lstm_cell(xgb_ref[T - 1 - s], hb, cb, whhb, gp)
        return (hf, cf, hb, cb)

    z = jnp.zeros((Bn, gp), jnp.float32)
    hf, _, hb, _ = jax.lax.fori_loop(0, T, body, (z, z, z, z), unroll=unroll)
    last_ref[...] = jnp.concatenate([hf, hb], axis=-1)


def _gate_preact(x_btd, wih_p, b_p):
    """XLA-side hoisted input projection: (B,T,D) -> time-major (T,B,4*Gp)."""
    return jnp.einsum('btd,dg->tbg', x_btd.astype(jnp.float32), wih_p) + b_p


def lstm_last(xg_tbg, whh_p, gp):
    """Unidirectional LSTM, returns only the final hidden state (B, Gp)."""
    T, Bn, G4 = xg_tbg.shape
    unroll = T <= 32
    kernel = functools.partial(_uni_lstm_last_kernel, gp=gp, unroll=unroll)
    return pl.pallas_call(
        kernel,
        out_shape=jax.ShapeDtypeStruct((Bn, gp), jnp.float32),
        grid_spec=pltpu.PrefetchScalarGridSpec(
            num_scalar_prefetch=0,
            grid=(1,),
            in_specs=[pl.BlockSpec((T, Bn, G4), lambda i: (0, 0, 0)),
                      pl.BlockSpec((gp, G4), lambda i: (0, 0))],
            out_specs=pl.BlockSpec((Bn, gp), lambda i: (0, 0)),
        ),
        compiler_params=pltpu.CompilerParams(
            dimension_semantics=("arbitrary",)),
    )(xg_tbg, whh_p)


def bilstm_ctx(x_btd, fw, bw, gp):
    """Bidirectional LSTM returning the full context (B, T, 2*Gp)."""
    B, T, _ = x_btd.shape
    xgf = _gate_preact(x_btd, fw[0], fw[2])
    xgb = _gate_preact(x_btd, bw[0], bw[2])
    G4 = 4 * gp
    unroll = T <= 32
    kernel = functools.partial(_bi_lstm_ctx_kernel, gp=gp, unroll=unroll)
    return pl.pallas_call(
        kernel,
        out_shape=jax.ShapeDtypeStruct((B, T, 2 * gp), jnp.float32),
        grid_spec=pltpu.PrefetchScalarGridSpec(
            num_scalar_prefetch=0,
            grid=(1,),
            in_specs=[pl.BlockSpec((T, B, G4), lambda i: (0, 0, 0)),
                      pl.BlockSpec((T, B, G4), lambda i: (0, 0, 0)),
                      pl.BlockSpec((gp, G4), lambda i: (0, 0)),
                      pl.BlockSpec((gp, G4), lambda i: (0, 0))],
            out_specs=pl.BlockSpec((B, T, 2 * gp), lambda i: (0, 0, 0)),
            scratch_shapes=[pltpu.VMEM((T, B, gp), jnp.float32),
                            pltpu.VMEM((T, B, gp), jnp.float32)],
        ),
        compiler_params=pltpu.CompilerParams(
            dimension_semantics=("arbitrary",)),
    )(xgf, xgb, fw[1], bw[1])


def bilstm_last(x_btd, fw, bw, gp):
    """Bidirectional LSTM returning only [h_n_fw | h_n_bw]  (B, 2*Gp)."""
    B, T, _ = x_btd.shape
    xgf = _gate_preact(x_btd, fw[0], fw[2])
    xgb = _gate_preact(x_btd, bw[0], bw[2])
    G4 = 4 * gp
    unroll = T <= 32
    kernel = functools.partial(_bi_lstm_last_kernel, gp=gp, unroll=unroll)
    return pl.pallas_call(
        kernel,
        out_shape=jax.ShapeDtypeStruct((B, 2 * gp), jnp.float32),
        grid_spec=pltpu.PrefetchScalarGridSpec(
            num_scalar_prefetch=0,
            grid=(1,),
            in_specs=[pl.BlockSpec((T, B, G4), lambda i: (0, 0, 0)),
                      pl.BlockSpec((T, B, G4), lambda i: (0, 0, 0)),
                      pl.BlockSpec((gp, G4), lambda i: (0, 0)),
                      pl.BlockSpec((gp, G4), lambda i: (0, 0))],
            out_specs=pl.BlockSpec((B, 2 * gp), lambda i: (0, 0)),
        ),
        compiler_params=pltpu.CompilerParams(
            dimension_semantics=("arbitrary",)),
    )(xgf, xgb, fw[1], bw[1])


# --------------------------------------------------------------------------
# Multi-perspective matching kernel (matmul form, per-batch parallel grid)
# --------------------------------------------------------------------------
def _dot_t(x, y):
    """x: (m, K), y: (n, K) -> (m, n), contracting the last dims on the MXU."""
    return jax.lax.dot_general(x, y, (((1,), (1,)), ((), ())),
                               preferred_element_type=jnp.float32)


def _matching_kernel(ctx_a_ref, ctx_b_ref, w_ref, mva_ref, mvb_ref,
                     *, gp, l, out_w):
    A = ctx_a_ref[0]                     # (Ta, 2*gp)
    Bc = ctx_b_ref[0]                    # (Tb, 2*gp)
    Ta, Tb = A.shape[0], Bc.shape[0]
    A_fw, A_bw = A[:, :gp], A[:, gp:]
    B_fw, B_bw = Bc[:, :gp], Bc[:, gp:]
    w = [w_ref[k] for k in range(8)]     # mp_w1 .. mp_w8, each (l, gp)

    def full_match(v1, v2, wk):
        # v1: (T, gp); v2: (1, gp) or (T, gp); wk: (l, gp) -> (T, l) cosines.
        w2 = wk * wk
        num = _dot_t(v1 * v2, w2)
        n1 = jnp.maximum(jnp.sqrt(_dot_t(v1 * v1, w2)), _EPS)
        n2 = jnp.maximum(jnp.sqrt(_dot_t(v2 * v2, w2)), _EPS)
        return num / (n1 * n2)

    def maxpool_match(v1, v2, wk):
        # -> (max over T2 -> (T1, l), max over T1 -> (T2, l))
        w2 = wk * wk
        n1 = jnp.sqrt(_dot_t(v1 * v1, w2))      # (T1, l)
        n2t = jnp.sqrt(_dot_t(w2, v2 * v2))     # (l, T2)
        cols1, cols2 = [], []
        for p in range(l):
            wp = wk[p:p + 1, :]                 # (1, gp)
            num = _dot_t(v1 * wp, v2 * wp)      # (T1, T2)
            d = n1[:, p:p + 1] * n2t[p:p + 1, :]
            m = num / jnp.where(d > _EPS, d, _EPS)
            cols1.append(jnp.max(m, axis=1, keepdims=True))   # (T1, 1)
            cols2.append(jnp.max(m, axis=0, keepdims=True))   # (1, T2)
        m1 = jnp.concatenate(cols1, axis=1)                   # (T1, l)
        m2 = jnp.transpose(jnp.concatenate(cols2, axis=0))    # (T2, l)
        return m1, m2

    def cos_att(v1, v2):
        num = _dot_t(v1, v2)                                        # (T1, T2)
        n1 = jnp.sqrt(jnp.sum(v1 * v1, axis=-1, keepdims=True))     # (T1, 1)
        n2 = jnp.sqrt(jnp.sum(v2 * v2, axis=-1, keepdims=True))     # (T2, 1)
        d = n1 * jnp.transpose(n2)
        return num / jnp.where(d > _EPS, d, _EPS)

    last_B_fw = B_fw[Tb - 1:Tb, :]
    first_B_bw = B_bw[0:1, :]
    last_A_fw = A_fw[Ta - 1:Ta, :]
    first_A_bw = A_bw[0:1, :]

    # full matching
    mv_A_full_fw = full_match(A_fw, last_B_fw, w[0])
    mv_A_full_bw = full_match(A_bw, first_B_bw, w[1])
    mv_B_full_fw = full_match(B_fw, last_A_fw, w[0])
    mv_B_full_bw = full_match(B_bw, first_A_bw, w[1])

    # max-pooling matching
    mv_A_max_fw, mv_B_max_fw = maxpool_match(A_fw, B_fw, w[2])
    mv_A_max_bw, mv_B_max_bw = maxpool_match(A_bw, B_bw, w[3])

    # cosine attention
    att_fw = cos_att(A_fw, B_fw)                 # (Ta, Tb)
    att_bw = cos_att(A_bw, B_bw)

    # attentive mean (matmul form; no (Ta,Tb,H) temporaries)
    att_mean_B_fw = jnp.dot(att_fw, B_fw, preferred_element_type=jnp.float32) / (
        jnp.sum(att_fw, axis=1, keepdims=True) + 1e-13)
    att_mean_B_bw = jnp.dot(att_bw, B_bw, preferred_element_type=jnp.float32) / (
        jnp.sum(att_bw, axis=1, keepdims=True) + 1e-13)
    att_mean_A_fw = jax.lax.dot_general(
        att_fw, A_fw, (((0,), (0,)), ((), ())),
        preferred_element_type=jnp.float32) / (
        jnp.sum(att_fw, axis=0)[:, None] + 1e-13)
    att_mean_A_bw = jax.lax.dot_general(
        att_bw, A_bw, (((0,), (0,)), ((), ())),
        preferred_element_type=jnp.float32) / (
        jnp.sum(att_bw, axis=0)[:, None] + 1e-13)

    mv_A_att_mean_fw = full_match(A_fw, att_mean_B_fw, w[4])
    mv_A_att_mean_bw = full_match(A_bw, att_mean_B_bw, w[5])
    mv_B_att_mean_fw = full_match(B_fw, att_mean_A_fw, w[4])
    mv_B_att_mean_bw = full_match(B_bw, att_mean_A_bw, w[5])

    # attentive max (broadcast temporaries kept only for this path)
    att_max_B_fw = jnp.max(B_fw[None, :, :] * att_fw[:, :, None], axis=1)
    att_max_B_bw = jnp.max(B_bw[None, :, :] * att_bw[:, :, None], axis=1)
    att_max_A_fw = jnp.max(A_fw[:, None, :] * att_fw[:, :, None], axis=0)
    att_max_A_bw = jnp.max(A_bw[:, None, :] * att_bw[:, :, None], axis=0)

    mv_A_att_max_fw = full_match(A_fw, att_max_B_fw, w[6])
    mv_A_att_max_bw = full_match(A_bw, att_max_B_bw, w[7])
    mv_B_att_max_fw = full_match(B_fw, att_max_A_fw, w[6])
    mv_B_att_max_bw = full_match(B_bw, att_max_A_bw, w[7])

    mv_a = jnp.concatenate(
        [mv_A_full_fw, mv_A_max_fw, mv_A_att_mean_fw, mv_A_att_max_fw,
         mv_A_full_bw, mv_A_max_bw, mv_A_att_mean_bw, mv_A_att_max_bw], axis=-1)
    mv_b = jnp.concatenate(
        [mv_B_full_fw, mv_B_max_fw, mv_B_att_mean_fw, mv_B_att_max_fw,
         mv_B_full_bw, mv_B_max_bw, mv_B_att_mean_bw, mv_B_att_max_bw], axis=-1)

    pad = out_w - 8 * l
    if pad > 0:
        mv_a = jnp.concatenate([mv_a, jnp.zeros((Ta, pad), jnp.float32)], axis=-1)
        mv_b = jnp.concatenate([mv_b, jnp.zeros((Tb, pad), jnp.float32)], axis=-1)
    mva_ref[0] = mv_a
    mvb_ref[0] = mv_b


def multi_perspective_match(ctx_A, ctx_B, mp_w_p, l, out_w):
    B, Ta, G2 = ctx_A.shape
    Tb = ctx_B.shape[1]
    gp = G2 // 2
    kernel = functools.partial(_matching_kernel, gp=gp, l=l, out_w=out_w)
    return pl.pallas_call(
        kernel,
        out_shape=(jax.ShapeDtypeStruct((B, Ta, out_w), jnp.float32),
                   jax.ShapeDtypeStruct((B, Tb, out_w), jnp.float32)),
        grid_spec=pltpu.PrefetchScalarGridSpec(
            num_scalar_prefetch=0,
            grid=(B,),
            in_specs=[
                pl.BlockSpec((1, Ta, G2), lambda b: (b, 0, 0)),
                pl.BlockSpec((1, Tb, G2), lambda b: (b, 0, 0)),
                pl.BlockSpec((8, l, gp), lambda b: (0, 0, 0)),
            ],
            out_specs=(pl.BlockSpec((1, Ta, out_w), lambda b: (b, 0, 0)),
                       pl.BlockSpec((1, Tb, out_w), lambda b: (b, 0, 0))),
        ),
        compiler_params=pltpu.CompilerParams(
            dimension_semantics=("parallel",)),
    )(ctx_A, ctx_B, mp_w_p)


# --------------------------------------------------------------------------
# Parameter init (deterministic, shapes mirror the PyTorch module)
# --------------------------------------------------------------------------
def init_params(key, args):
    H = args['hidden_size']
    Hc = args['char_hidden_size']
    Dw = args['word_dim']
    Dc = args['char_dim']
    l = args['num_perspective']
    C = args['classes']
    D_in = Dw + (Hc if args['use_char_emb'] else 0)
    ks = jax.random.split(key, 10)
    p = {}

    char_emb = jax.random.uniform(ks[0], (args['char_dict_size'], Dc),
                                  jnp.float32, -0.005, 0.005)
    p['char_emb'] = char_emb.at[0].set(0.0)                    # padding_idx=0
    p['word_emb'] = jax.random.normal(ks[1], (args['word_dict_size'], Dw),
                                      jnp.float32) * 0.1

    def lstm_params(k, din, h):
        k1, k2 = jax.random.split(k)
        wih = jax.random.normal(k1, (4, din, h), jnp.float32) * (din ** -0.5)
        whh = jax.random.normal(k2, (4, h, h), jnp.float32) * (h ** -0.5)
        b = jnp.zeros((4, h), jnp.float32)          # bias_ih + bias_hh = 0
        return (wih, whh, b)

    p['char_lstm'] = lstm_params(ks[2], Dc, Hc)
    p['ctx_fw'] = lstm_params(ks[3], D_in, H)
    p['ctx_bw'] = lstm_params(ks[4], D_in, H)
    p['agg_fw'] = lstm_params(ks[5], 8 * l, H)
    p['agg_bw'] = lstm_params(ks[6], 8 * l, H)
    p['mp_w'] = jax.random.normal(ks[7], (8, l, H), jnp.float32) * (H ** -0.5)
    p['fc1_w'] = jax.random.uniform(ks[8], (4 * H, 2 * H), jnp.float32, -0.005, 0.005)
    p['fc1_b'] = jnp.zeros((2 * H,), jnp.float32)
    p['fc2_w'] = jax.random.uniform(ks[9], (2 * H, C), jnp.float32, -0.005, 0.005)
    p['fc2_b'] = jnp.zeros((C,), jnp.float32)
    return p


def _fuse_lstm_dir(wih, whh, b, gp, in_pad=None):
    """Fuse the 4 gates and lane-pad each gate block to width `gp`.

    wih: (4, D, H), whh: (4, H, H), b: (4, H)  ->
      wih_p: (D_p, 4*gp), whh_p: (gp, 4*gp), b_p: (4*gp,)
    Gate k occupies lanes [k*gp, k*gp + H); all padding is exactly zero so the
    padded hidden channels stay 0 through the recurrence.
    """
    _, D, H = wih.shape
    D_p = D if in_pad is None else in_pad
    wih_p = jnp.zeros((D_p, 4 * gp), jnp.float32)
    whh_p = jnp.zeros((gp, 4 * gp), jnp.float32)
    b_p = jnp.zeros((4 * gp,), jnp.float32)
    for k in range(4):
        wih_p = wih_p.at[:D, k * gp:k * gp + H].set(wih[k])
        whh_p = whh_p.at[:H, k * gp:k * gp + H].set(whh[k])
        b_p = b_p.at[k * gp:k * gp + H].set(b[k])
    return (wih_p, whh_p, b_p)


# --------------------------------------------------------------------------
# BIMPM forward
# --------------------------------------------------------------------------
def bimpm_forward(params, ex, args):
    assert not args.get('use_elmo'), "ELMo path not implemented"  # TODO(synk)
    H = args['hidden_size']
    Hc = args['char_hidden_size']
    l = args['num_perspective']
    Lw = args['max_word_length']

    gp = _round_up(H, 128)           # per-gate / hidden lane-padded width
    gc = _round_up(Hc, 128)          # char-LSTM padded width
    out_w = _round_up(8 * l, 128)    # lane-dense matching output width

    B, Ta = ex['Atoken_ids'].shape
    Tb = ex['Btoken_ids'].shape[1]

    # word embeddings (XLA gather)
    A = params['word_emb'][ex['Atoken_ids']]                  # (B, Ta, Dw)
    Bw = params['word_emb'][ex['Btoken_ids']]                 # (B, Tb, Dw)

    Amask = ex['Amask'][:, :, None].astype(jnp.float32)
    Bmask = ex['Bmask'][:, :, None].astype(jnp.float32)

    # character path: char LSTM, keep final hidden state per word
    if args['use_char_emb']:
        char_f = _fuse_lstm_dir(*params['char_lstm'], gp=gc)

        def char_encode(char_ids, T):
            flat = char_ids.reshape(-1, Lw)                    # (B*T, Lw)
            emb = params['char_emb'][flat]                     # (B*T, Lw, Dc)
            xg = _gate_preact(emb, char_f[0], char_f[2])       # (Lw, B*T, 4*gc)
            last = lstm_last(xg, char_f[1], gc)                # (B*T, gc)
            return last[:, :Hc].reshape(B, T, Hc)

        char_A = char_encode(ex['Achar_ids'], Ta)
        char_B = char_encode(ex['Bchar_ids'], Tb)
        A = jnp.concatenate([A, char_A], axis=-1)              # (B, Ta, Dw+Hc)
        Bx = jnp.concatenate([Bw, char_B], axis=-1)
    else:
        Bx = Bw

    # context bidirectional LSTM (shared weights for A and B), then mask
    ctx_fw_f = _fuse_lstm_dir(*params['ctx_fw'], gp=gp)
    ctx_bw_f = _fuse_lstm_dir(*params['ctx_bw'], gp=gp)
    ctx_A = bilstm_ctx(A, ctx_fw_f, ctx_bw_f, gp) * Amask      # (B, Ta, 2*gp)
    ctx_B = bilstm_ctx(Bx, ctx_fw_f, ctx_bw_f, gp) * Bmask     # (B, Tb, 2*gp)

    # multi-perspective matching (hot path), then mask
    mp_w_p = jnp.zeros((8, l, gp), jnp.float32).at[:, :, :H].set(params['mp_w'])
    mv_A, mv_B = multi_perspective_match(ctx_A, ctx_B, mp_w_p, l, out_w)
    mv_A = mv_A * Amask                                        # (B, Ta, out_w)
    mv_B = mv_B * Bmask

    # aggregation BiLSTM: only final hidden states of each direction
    agg_fw_f = _fuse_lstm_dir(*params['agg_fw'], gp=gp, in_pad=out_w)
    agg_bw_f = _fuse_lstm_dir(*params['agg_bw'], gp=gp, in_pad=out_w)
    agg_A = bilstm_last(mv_A, agg_fw_f, agg_bw_f, gp)          # (B, 2*gp)
    agg_B = bilstm_last(mv_B, agg_fw_f, agg_bw_f, gp)

    def take_valid(x):   # strip the lane padding: (B, 2*gp) -> (B, 2*H)
        return jnp.concatenate([x[:, :H], x[:, gp:gp + H]], axis=-1)

    out = jnp.concatenate([take_valid(agg_A), take_valid(agg_B)], axis=-1)

    # prediction head: tiny -> plain XLA (a Pallas call here is pure overhead)
    h = jnp.tanh(out @ params['fc1_w'] + params['fc1_b'])
    logits = h @ params['fc2_w'] + params['fc2_b']
    return logits


if __name__ == "__main__":
    args = dict(
        max_word_length=16, dropout=0.1, num_perspective=4, use_char_emb=True,
        char_hidden_size=16, char_dim=8, hidden_size=16, rnn_layers=2,
        word_dim=32, word_dict_size=50, char_dict_size=30, classes=3,
        use_elmo=False)

    key = jax.random.PRNGKey(0)
    pkey, dkey = jax.random.split(key)
    params = init_params(pkey, args)

    B, Ta, Tb, Lw = 2, 8, 6, args['max_word_length']
    k1, k2, k3, k4 = jax.random.split(dkey, 4)
    ex = {
        'Atoken_ids': jax.random.randint(k1, (B, Ta), 1, args['word_dict_size']),
        'Btoken_ids': jax.random.randint(k2, (B, Tb), 1, args['word_dict_size']),
        'Achar_ids': jax.random.randint(k3, (B, Ta, Lw), 0, args['char_dict_size']),
        'Bchar_ids': jax.random.randint(k4, (B, Tb, Lw), 0, args['char_dict_size']),
        'Amask': jnp.ones((B, Ta), jnp.float32).at[1, Ta - 1].set(0.0),
        'Bmask': jnp.ones((B, Tb), jnp.float32).at[1, Tb - 1].set(0.0),
    }

    logits = bimpm_forward(params, ex, args)
    logits = jax.block_until_ready(logits)
    assert logits.shape == (B, args['classes'])
    assert bool(jnp.all(jnp.isfinite(logits)))
    print("KERNEL_OK")
</pallas_src>

<mosaic_0001>
module attributes {stable_mosaic.version = 11 : i64} {
  func.func @_uni_lstm_last_kernel(%arg0: i32, %arg1: memref<16x16x512xf32, #tpu.memory_space<vmem>>, %arg2: memref<128x512xf32, #tpu.memory_space<vmem>>, %arg3: memref<16x128xf32, #tpu.memory_space<vmem>>) attributes {dimension_semantics = [#tpu.dimension_semantics<arbitrary>], iteration_bounds = array<i64: 1>, scalar_prefetch = 0 : i64, scratch_operands = 0 : i64, tpu.core_type = #tpu.core_type<tc>, window_params = [{pipeline_mode = #tpu.pipeline_mode<synchronous>, transform_indices = @transform_0, window_bounds = array<i64: 16, 16, 512>}, {pipeline_mode = #tpu.pipeline_mode<synchronous>, transform_indices = @transform_1, window_bounds = array<i64: 128, 512>}, {pipeline_mode = #tpu.pipeline_mode<synchronous>, transform_indices = @transform_2, window_bounds = array<i64: 16, 128>}]} {
    %c0 = arith.constant 0 : index
    %c0_0 = arith.constant 0 : index
    %0 = vector.load %arg2[%c0, %c0_0] : memref<128x512xf32, #tpu.memory_space<vmem>>, vector<128x512xf32>
    %cst = arith.constant 0.000000e+00 : f32
    %1 = vector.broadcast %cst : f32 to vector<16x128xf32>
    %c0_i32 = arith.constant 0 : i32
    %2 = arith.index_cast %c0_i32 : i32 to index
    %c0_1 = arith.constant 0 : index
    %c0_2 = arith.constant 0 : index
    %3 = vector.load %arg1[%2, %c0_1, %c0_2] : memref<16x16x512xf32, #tpu.memory_space<vmem>>, vector<1x16x512xf32>
    %4 = vector.shape_cast %3 : vector<1x16x512xf32> to vector<16x512xf32>
    %cst_3 = arith.constant dense<0.000000e+00> : vector<16x512xf32>
    %5 = tpu.matmul %1, %0, %cst_3 {dimension_numbers = #tpu.dot_dimension_numbers<[1], [0], [0], [1], [0, 0, 1, 1], [], []>} : vector<16x128xf32>, vector<128x512xf32>, vector<16x512xf32> -> vector<16x512xf32>
    %6 = arith.addf %4, %5 : vector<16x512xf32>
    %7 = vector.extract_strided_slice %6 {offsets = [0, 0], sizes = [16, 128], strides = [1, 1]} : vector<16x512xf32> to vector<16x128xf32>
    %8 = arith.negf %7 : vector<16x128xf32>
    %9 = math.exp %8 : vector<16x128xf32>
    %cst_4 = arith.constant 1.000000e+00 : f32
    %10 = vector.broadcast %cst_4 : f32 to vector<16x128xf32>
    %11 = arith.addf %10, %9 : vector<16x128xf32>
    %12 = arith.divf %10, %11 : vector<16x128xf32>
    %13 = vector.extract_strided_slice %6 {offsets = [0, 128], sizes = [16, 128], strides = [1, 1]} : vector<16x512xf32> to vector<16x128xf32>
    %14 = arith.negf %13 : vector<16x128xf32>
    %15 = math.exp %14 : vector<16x128xf32>
    %cst_5 = arith.constant 1.000000e+00 : f32
    %16 = vector.broadcast %cst_5 : f32 to vector<16x128xf32>
    %17 = arith.addf %16, %15 : vector<16x128xf32>
    %18 = arith.divf %16, %17 : vector<16x128xf32>
    %19 = vector.extract_strided_slice %6 {offsets = [0, 256], sizes = [16, 128], strides = [1, 1]} : vector<16x512xf32> to vector<16x128xf32>
    %20 = math.tanh %19 : vector<16x128xf32>
    %21 = vector.extract_strided_slice %6 {offsets = [0, 384], sizes = [16, 128], strides = [1, 1]} : vector<16x512xf32> to vector<16x128xf32>
    %22 = arith.negf %21 : vector<16x128xf32>
    %23 = math.exp %22 : vector<16x128xf32>
    %cst_6 = arith.constant 1.000000e+00 : f32
    %24 = vector.broadcast %cst_6 : f32 to vector<16x128xf32>
    %25 = arith.addf %24, %23 : vector<16x128xf32>
    %26 = arith.divf %24, %25 : vector<16x128xf32>
    %27 = arith.mulf %18, %1 : vector<16x128xf32>
    %28 = arith.mulf %12, %20 : vector<16x128xf32>
    %29 = arith.addf %27, %28 : vector<16x128xf32>
    %30 = math.tanh %29 : vector<16x128xf32>
    %31 = arith.mulf %26, %30 : vector<16x128xf32>
    %c1_i32 = arith.constant 1 : i32
    %32 = arith.index_cast %c1_i32 : i32 to index
    %c0_7 = arith.constant 0 : index
    %c0_8 = arith.constant 0 : index
    %33 = vector.load %arg1[%32, %c0_7, %c0_8] : memref<16x16x512xf32, #tpu.memory_space<vmem>>, vector<1x16x512xf32>
    %34 = vector.shape_cast %33 : vector<1x16x512xf32> to vector<16x512xf32>
    %cst_9 = arith.constant dense<0.000000e+00> : vector<16x512xf32>
    %35 = tpu.matmul %31, %0, %cst_9 {dimension_numbers = #tpu.dot_dimension_numbers<[1], [0], [0], [1], [0, 0, 1, 1], [], []>} : vector<16x128xf32>, vector<128x512xf32>, vector<16x512xf32> -> vector<16x512xf32>
    %36 = arith.addf %34, %35 : vector<16x512xf32>
    %37 = vector.extract_strided_slice %36 {offsets = [0, 0], sizes = [16, 128], strides = [1, 1]} : vector<16x512xf32> to vector<16x128xf32>
    %38 = arith.negf %37 : vector<16x128xf32>
    %39 = math.exp %38 : vector<16x128xf32>
    %cst_10 = arith.constant 1.000000e+00 : f32
    %40 = vector.broadcast %cst_10 : f32 to vector<16x128xf32>
    %41 = arith.addf %40, %39 : vector<16x128xf32>
    %42 = arith.divf %40, %41 : vector<16x128xf32>
    %43 = vector.extract_strided_slice %36 {offsets = [0, 128], sizes = [16, 128], strides = [1, 1]} : vector<16x512xf32> to vector<16x128xf32>
    %44 = arith.negf %43 : vector<16x128xf32>
    %45 = math.exp %44 : vector<16x128xf32>
    %cst_11 = arith.constant 1.000000e+00 : f32
    %46 = vector.broadcast %cst_11 : f32 to vector<16x128xf32>
    %47 = arith.addf %46, %45 : vector<16x128xf32>
    %48 = arith.divf %46, %47 : vector<16x128xf32>
    %49 = vector.extract_strided_slice %36 {offsets = [0, 256], sizes = [16, 128], strides = [1, 1]} : vector<16x512xf32> to vector<16x128xf32>
    %50 = math.tanh %49 : vector<16x128xf32>
    %51 = vector.extract_strided_slice %36 {offsets = [0, 384], sizes = [16, 128], strides = [1, 1]} : vector<16x512xf32> to vector<16x128xf32>
    %52 = arith.negf %51 : vector<16x128xf32>
    %53 = math.exp %52 : vector<16x128xf32>
    %cst_12 = arith.constant 1.000000e+00 : f32
    %54 = vector.broadcast %cst_12 : f32 to vector<16x128xf32>
    %55 = arith.addf %54, %53 : vector<16x128xf32>
    %56 = arith.divf %54, %55 : vector<16x128xf32>
    %57 = arith.mulf %48, %29 : vector<16x128xf32>
    %58 = arith.mulf %42, %50 : vector<16x128xf32>
    %59 = arith.addf %57, %58 : vector<16x128xf32>
    %60 = math.tanh %59 : vector<16x128xf32>
    %61 = arith.mulf %56, %60 : vector<16x128xf32>
    %c2_i32 = arith.constant 2 : i32
    %62 = arith.index_cast %c2_i32 : i32 to index
    %c0_13 = arith.constant 0 : index
    %c0_14 = arith.constant 0 : index
    %63 = vector.load %arg1[%62, %c0_13, %c0_14] : memref<16x16x512xf32, #tpu.memory_space<vmem>>, vector<1x16x512xf32>
    %64 = vector.shape_cast %63 : vector<1x16x512xf32> to vector<16x512xf32>
    %cst_15 = arith.constant dense<0.000000e+00> : vector<16x512xf32>
    %65 = tpu.matmul %61, %0, %cst_15 {dimension_numbers = #tpu.dot_dimension_numbers<[1], [0], [0], [1], [0, 0, 1, 1], [], []>} : vector<16x128xf32>, vector<128x512xf32>, vector<16x512xf32> -> vector<16x512xf32>
    %66 = arith.addf %64, %65 : vector<16x512xf32>
    %67 = vector.extract_strided_slice %66 {offsets = [0, 0], sizes = [16, 128], strides = [1, 1]} : vector<16x512xf32> to vector<16x128xf32>
    %68 = arith.negf %67 : vector<16x128xf32>
    %69 = math.exp %68 : vector<16x128xf32>
    %cst_16 = arith.constant 1.000000e+00 : f32
    %70 = vector.broadcast %cst_16 : f32 to vector<16x128xf32>
    %71 = arith.addf %70, %69 : vector<16x128xf32>
    %72 = arith.divf %70, %71 : vector<16x128xf32>
    %73 = vector.extract_strided_slice %66 {offsets = [0, 128], sizes = [16, 128], strides = [1, 1]} : vector<16x512xf32> to vector<16x128xf32>
    %74 = arith.negf %73 : vector<16x128xf32>
    %75 = math.exp %74 : vector<16x128xf32>
    %cst_17 = arith.constant 1.000000e+00 : f32
    %76 = vector.broadcast %cst_17 : f32 to vector<16x128xf32>
    %77 = arith.addf %76, %75 : vector<16x128xf32>
    %78 = arith.divf %76, %77 : vector<16x128xf32>
    %79 = vector.extract_strided_slice %66 {offsets = [0, 256], sizes = [16, 128], strides = [1, 1]} : vector<16x512xf32> to vector<16x128xf32>
    %80 = math.tanh %79 : vector<16x128xf32>
    %81 = vector.extract_strided_slice %66 {offsets = [0, 384], sizes = [16, 128], strides = [1, 1]} : vector<16x512xf32> to vector<16x128xf32>
    %82 = arith.negf %81 : vector<16x128xf32>
    %83 = math.exp %82 : vector<16x128xf32>
    %cst_18 = arith.constant 1.000000e+00 : f32
    %84 = vector.broadcast %cst_18 : f32 to vector<16x128xf32>
    %85 = arith.addf %84, %83 : vector<16x128xf32>
    %86 = arith.divf %84, %85 : vector<16x128xf32>
    %87 = arith.mulf %78, %59 : vector<16x128xf32>
    %88 = arith.mulf %72, %80 : vector<16x128xf32>
    %89 = arith.addf %87, %88 : vector<16x128xf32>
    %90 = math.tanh %89 : vector<16x128xf32>
    %91 = arith.mulf %86, %90 : vector<16x128xf32>
    %c3_i32 = arith.constant 3 : i32
    %92 = arith.index_cast %c3_i32 : i32 to index
    %c0_19 = arith.constant 0 : index
    %c0_20 = arith.constant 0 : index
    %93 = vector.load %arg1[%92, %c0_19, %c0_20] : memref<16x16x512xf32, #tpu.memory_space<vmem>>, vector<1x16x512xf32>
    %94 = vector.shape_cast %93 : vector<1x16x512xf32> to vector<16x512xf32>
    %cst_21 = arith.constant dense<0.000000e+00> : vector<16x512xf32>
    %95 = tpu.matmul %91, %0, %cst_21 {dimension_numbers = #tpu.dot_dimension_numbers<[1], [0], [0], [1], [0, 0, 1, 1], [], []>} : vector<16x128xf32>, vector<128x512xf32>, vector<16x512xf32> -> vector<16x512xf32>
    %96 = arith.addf %94, %95 : vector<16x512xf32>
    %97 = vector.extract_strided_slice %96 {offsets = [0, 0], sizes = [16, 128], strides = [1, 1]} : vector<16x512xf32> to vector<16x128xf32>
    %98 = arith.negf %97 : vector<16x128xf32>
    %99 = math.exp %98 : vector<16x128xf32>
    %cst_22 = arith.constant 1.000000e+00 : f32
    %100 = vector.broadcast %cst_22 : f32 to vector<16x128xf32>
    %101 = arith.addf %100, %99 : vector<16x128xf32>
    %102 = arith.divf %100, %101 : vector<16x128xf32>
    %103 = vector.extract_strided_slice %96 {offsets = [0, 128], sizes = [16, 128], strides = [1, 1]} : vector<16x512xf32> to vector<16x128xf32>
    %104 = arith.negf %103 : vector<16x128xf32>
    %105 = math.exp %104 : vector<16x128xf32>
    %cst_23 = arith.constant 1.000000e+00 : f32
    %106 = vector.broadcast %cst_23 : f32 to vector<16x128xf32>
    %107 = arith.addf %106, %105 : vector<16x128xf32>
    %108 = arith.divf %106, %107 : vector<16x128xf32>
    %109 = vector.extract_strided_slice %96 {offsets = [0, 256], sizes = [16, 128], strides = [1, 1]} : vector<16x512xf32> to vector<16x128xf32>
    %110 = math.tanh %109 : vector<16x128xf32>
    %111 = vector.extract_strided_slice %96 {offsets = [0, 384], sizes = [16, 128], strides = [1, 1]} : vector<16x512xf32> to vector<16x128xf32>
    %112 = arith.negf %111 : vector<16x128xf32>
    %113 = math.exp %112 : vector<16x128xf32>
    %cst_24 = arith.constant 1.000000e+00 : f32
    %114 = vector.broadcast %cst_24 : f32 to vector<16x128xf32>
    %115 = arith.addf %114, %113 : vector<16x128xf32>
    %116 = arith.divf %114, %115 : vector<16x128xf32>
    %117 = arith.mulf %108, %89 : vector<16x128xf32>
    %118 = arith.mulf %102, %110 : vector<16x128xf32>
    %119 = arith.addf %117, %118 : vector<16x128xf32>
    %120 = math.tanh %119 : vector<16x128xf32>
    %121 = arith.mulf %116, %120 : vector<16x128xf32>
    %c4_i32 = arith.constant 4 : i32
    %122 = arith.index_cast %c4_i32 : i32 to index
    %c0_25 = arith.constant 0 : index
    %c0_26 = arith.constant 0 : index
    %123 = vector.load %arg1[%122, %c0_25, %c0_26] : memref<16x16x512xf32, #tpu.memory_space<vmem>>, vector<1x16x512xf32>
    %124 = vector.shape_cast %123 : vector<1x16x512xf32> to vector<16x512xf32>
    %cst_27 = arith.constant dense<0.000000e+00> : vector<16x512xf32>
    %125 = tpu.matmul %121, %0, %cst_27 {dimension_numbers = #tpu.dot_dimension_numbers<[1], [0], [0], [1], [0, 0, 1, 1], [], []>} : vector<16x128xf32>, vector<128x512xf32>, vector<16x512xf32> -> vector<16x512xf32>
    %126 = arith.addf %124, %125 : vector<16x512xf32>
    %127 = vector.extract_strided_slice %126 {offsets = [0, 0], sizes = [16, 128], strides = [1, 1]} : vector<16x512xf32> to vector<16x128xf32>
    %128 = arith.negf %127 : vector<16x128xf32>
    %129 = math.exp %128 : vector<16x128xf32>
    %cst_28 = arith.constant 1.000000e+00 : f32
    %130 = vector.broadcast %cst_28 : f32 to vector<16x128xf32>
    %131 = arith.addf %130, %129 : vector<16x128xf32>
    %132 = arith.divf %130, %131 : vector<16x128xf32>
    %133 = vector.extract_strided_slice %126 {offsets = [0, 128], sizes = [16, 128], strides = [1, 1]} : vector<16x512xf32> to vector<16x128xf32>
    %134 = arith.negf %133 : vector<16x128xf32>
    %135 = math.exp %134 : vector<16x128xf32>
    %cst_29 = arith.constant 1.000000e+00 : f32
    %136 = vector.broadcast %cst_29 : f32 to vector<16x128xf32>
    %137 = arith.addf %136, %135 : vector<16x128xf32>
    %138 = arith.divf %136, %137 : vector<16x128xf32>
    %139 = vector.extract_strided_slice %126 {offsets = [0, 256], sizes = [16, 128], strides = [1, 1]} : vector<16x512xf32> to vector<16x128xf32>
    %140 = math.tanh %139 : vector<16x128xf32>
    %141 = vector.extract_strided_slice %126 {offsets = [0, 384], sizes = [16, 128], strides = [1, 1]} : vector<16x512xf32> to vector<16x128xf32>
    %142 = arith.negf %141 : vector<16x128xf32>
    %143 = math.exp %142 : vector<16x128xf32>
    %cst_30 = arith.constant 1.000000e+00 : f32
    %144 = vector.broadcast %cst_30 : f32 to vector<16x128xf32>
    %145 = arith.addf %144, %143 : vector<16x128xf32>
    %146 = arith.divf %144, %145 : vector<16x128xf32>
    %147 = arith.mulf %138, %119 : vector<16x128xf32>
    %148 = arith.mulf %132, %140 : vector<16x128xf32>
    %149 = arith.addf %147, %148 : vector<16x128xf32>
    %150 = math.tanh %149 : vector<16x128xf32>
    %151 = arith.mulf %146, %150 : vector<16x128xf32>
    %c5_i32 = arith.constant 5 : i32
    %152 = arith.index_cast %c5_i32 : i32 to index
    %c0_31 = arith.constant 0 : index
    %c0_32 = arith.constant 0 : index
    %153 = vector.load %arg1[%152, %c0_31, %c0_32] : memref<16x16x512xf32, #tpu.memory_space<vmem>>, vector<1x16x512xf32>
    %154 = vector.shape_cast %153 : vector<1x16x512xf32> to vector<16x512xf32>
    %cst_33 = arith.constant dense<0.000000e+00> : vector<16x512xf32>
    %155 = tpu.matmul %151, %0, %cst_33 {dimension_numbers = #tpu.dot_dimension_numbers<[1], [0], [0], [1], [0, 0, 1, 1], [], []>} : vector<16x128xf32>, vector<128x512xf32>, vector<16x512xf32> -> vector<16x512xf32>
    %156 = arith.addf %154, %155 : vector<16x512xf32>
    %157 = vector.extract_strided_slice %156 {offsets = [0, 0], sizes = [16, 128], strides = [1, 1]} : vector<16x512xf32> to vector<16x128xf32>
    %158 = arith.negf %157 : vector<16x128xf32>
    %159 = math.exp %158 : vector<16x128xf32>
    %cst_34 = arith.constant 1.000000e+00 : f32
    %160 = vector.broadcast %cst_34 : f32 to vector<16x128xf32>
    %161 = arith.addf %160, %159 : vector<16x128xf32>
    %162 = arith.divf %160, %161 : vector<16x128xf32>
    %163 = vector.extract_strided_slice %156 {offsets = [0, 128], sizes = [16, 128], strides = [1, 1]} : vector<16x512xf32> to vector<16x128xf32>
    %164 = arith.negf %163 : vector<16x128xf32>
    %165 = math.exp %164 : vector<16x128xf32>
    %cst_35 = arith.constant 1.000000e+00 : f32
    %166 = vector.broadcast %cst_35 : f32 to vector<16x128xf32>
    %167 = arith.addf %166, %165 : vector<16x128xf32>
    %168 = arith.divf %166, %167 : vector<16x128xf32>
    %169 = vector.extract_strided_slice %156 {offsets = [0, 256], sizes = [16, 128], strides = [1, 1]} : vector<16x512xf32> to vector<16x128xf32>
    %170 = math.tanh %169 : vector<16x128xf32>
    %171 = vector.extract_strided_slice %156 {offsets = [0, 384], sizes = [16, 128], strides = [1, 1]} : vector<16x512xf32> to vector<16x128xf32>
    %172 = arith.negf %171 : vector<16x128xf32>
    %173 = math.exp %172 : vector<16x128xf32>
    %cst_36 = arith.constant 1.000000e+00 : f32
    %174 = vector.broadcast %cst_36 : f32 to vector<16x128xf32>
    %175 = arith.addf %174, %173 : vector<16x128xf32>
    %176 = arith.divf %174, %175 : vector<16x128xf32>
    %177 = arith.mulf %168, %149 : vector<16x128xf32>
    %178 = arith.mulf %162, %170 : vector<16x128xf32>
    %179 = arith.addf %177, %178 : vector<16x128xf32>
    %180 = math.tanh %179 : vector<16x128xf32>
    %181 = arith.mulf %176, %180 : vector<16x128xf32>
    %c6_i32 = arith.constant 6 : i32
    %182 = arith.index_cast %c6_i32 : i32 to index
    %c0_37 = arith.constant 0 : index
    %c0_38 = arith.constant 0 : index
    %183 = vector.load %arg1[%182, %c0_37, %c0_38] : memref<16x16x512xf32, #tpu.memory_space<vmem>>, vector<1x16x512xf32>
    %184 = vector.shape_cast %183 : vector<1x16x512xf32> to vector<16x512xf32>
    %cst_39 = arith.constant dense<0.000000e+00> : vector<16x512xf32>
    %185 = tpu.matmul %181, %0, %cst_39 {dimension_numbers = #tpu.dot_dimension_numbers<[1], [0], [0], [1], [0, 0, 1, 1], [], []>} : vector<16x128xf32>, vector<128x512xf32>, vector<16x512xf32> -> vector<16x512xf32>
    %186 = arith.addf %184, %185 : vector<16x512xf32>
    %187 = vector.extract_strided_slice %186 {offsets = [0, 0], sizes = [16, 128], strides = [1, 1]} : vector<16x512xf32> to vector<16x128xf32>
    %188 = arith.negf %187 : vector<16x128xf32>
    %189 = math.exp %188 : vector<16x128xf32>
    %cst_40 = arith.constant 1.000000e+00 : f32
    %190 = vector.broadcast %cst_40 : f32 to vector<16x128xf32>
    %191 = arith.addf %190, %189 : vector<16x128xf32>
    %192 = arith.divf %190, %191 : vector<16x128xf32>
    %193 = vector.extract_strided_slice %186 {offsets = [0, 128], sizes = [16, 128], strides = [1, 1]} : vector<16x512xf32> to vector<16x128xf32>
    %194 = arith.negf %193 : vector<16x128xf32>
    %195 = math.exp %194 : vector<16x128xf32>
    %cst_41 = arith.constant 1.000000e+00 : f32
    %196 = vector.broadcast %cst_41 : f32 to vector<16x128xf32>
    %197 = arith.addf %196, %195 : vector<16x128xf32>
    %198 = arith.divf %196, %197 : vector<16x128xf32>
    %199 = vector.extract_strided_slice %186 {offsets = [0, 256], sizes = [16, 128], strides = [1, 1]} : vector<16x512xf32> to vector<16x128xf32>
    %200 = math.tanh %199 : vector<16x128xf32>
    %201 = vector.extract_strided_slice %186 {offsets = [0, 384], sizes = [16, 128], strides = [1, 1]} : vector<16x512xf32> to vector<16x128xf32>
    %202 = arith.negf %201 : vector<16x128xf32>
    %203 = math.exp %202 : vector<16x128xf32>
    %cst_42 = arith.constant 1.000000e+00 : f32
    %204 = vector.broadcast %cst_42 : f32 to vector<16x128xf32>
    %205 = arith.addf %204, %203 : vector<16x128xf32>
    %206 = arith.divf %204, %205 : vector<16x128xf32>
    %207 = arith.mulf %198, %179 : vector<16x128xf32>
    %208 = arith.mulf %192, %200 : vector<16x128xf32>
    %209 = arith.addf %207, %208 : vector<16x128xf32>
    %210 = math.tanh %209 : vector<16x128xf32>
    %211 = arith.mulf %206, %210 : vector<16x128xf32>
    %c7_i32 = arith.constant 7 : i32
    %212 = arith.index_cast %c7_i32 : i32 to index
    %c0_43 = arith.constant 0 : index
    %c0_44 = arith.constant 0 : index
    %213 = vector.load %arg1[%212, %c0_43, %c0_44] : memref<16x16x512xf32, #tpu.memory_space<vmem>>, vector<1x16x512xf32>
    %214 = vector.shape_cast %213 : vector<1x16x512xf32> to vector<16x512xf32>
    %cst_45 = arith.constant dense<0.000000e+00> : vector<16x512xf32>
    %215 = tpu.matmul %211, %0, %cst_45 {dimension_numbers = #tpu.dot_dimension_numbers<[1], [0], [0], [1], [0, 0, 1, 1], [], []>} : vector<16x128xf32>, vector<128x512xf32>, vector<16x512xf32> -> vector<16x512xf32>
    %216 = arith.addf %214, %215 : vector<16x512xf32>
    %217 = vector.extract_strided_slice %216 {offsets = [0, 0], sizes = [16, 128], strides = [1, 1]} : vector<16x512xf32> to vector<16x128xf32>
    %218 = arith.negf %217 : vector<16x128xf32>
    %219 = math.exp %218 : vector<16x128xf32>
    %cst_46 = arith.constant 1.000000e+00 : f32
    %220 = vector.broadcast %cst_46 : f32 to vector<16x128xf32>
    %221 = arith.addf %220, %219 : vector<16x128xf32>
    %222 = arith.divf %220, %221 : vector<16x128xf32>
    %223 = vector.extract_strided_slice %216 {offsets = [0, 128], sizes = [16, 128], strides = [1, 1]} : vector<16x512xf32> to vector<16x128xf32>
    %224 = arith.negf %223 : vector<16x128xf32>
    %225 = math.exp %224 : vector<16x128xf32>
    %cst_47 = arith.constant 1.000000e+00 : f32
    %226 = vector.broadcast %cst_47 : f32 to vector<16x128xf32>
    %227 = arith.addf %226, %225 : vector<16x128xf32>
    %228 = arith.divf %226, %227 : vector<16x128xf32>
    %229 = vector.extract_strided_slice %216 {offsets = [0, 256], sizes = [16, 128], strides = [1, 1]} : vector<16x512xf32> to vector<16x128xf32>
    %230 = math.tanh %229 : vector<16x128xf32>
    %231 = vector.extract_strided_slice %216 {offsets = [0, 384], sizes = [16, 128], strides = [1, 1]} : vector<16x512xf32> to vector<16x128xf32>
    %232 = arith.negf %231 : vector<16x128xf32>
    %233 = math.exp %232 : vector<16x128xf32>
    %cst_48 = arith.constant 1.000000e+00 : f32
    %234 = vector.broadcast %cst_48 : f32 to vector<16x128xf32>
    %235 = arith.addf %234, %233 : vector<16x128xf32>
    %236 = arith.divf %234, %235 : vector<16x128xf32>
    %237 = arith.mulf %228, %209 : vector<16x128xf32>
    %238 = arith.mulf %222, %230 : vector<16x128xf32>
    %239 = arith.addf %237, %238 : vector<16x128xf32>
    %240 = math.tanh %239 : vector<16x128xf32>
    %241 = arith.mulf %236, %240 : vector<16x128xf32>
    %c8_i32 = arith.constant 8 : i32
    %242 = arith.index_cast %c8_i32 : i32 to index
    %c0_49 = arith.constant 0 : index
    %c0_50 = arith.constant 0 : index
    %243 = vector.load %arg1[%242, %c0_49, %c0_50] : memref<16x16x512xf32, #tpu.memory_space<vmem>>, vector<1x16x512xf32>
    %244 = vector.shape_cast %243 : vector<1x16x512xf32> to vector<16x512xf32>
    %cst_51 = arith.constant dense<0.000000e+00> : vector<16x512xf32>
    %245 = tpu.matmul %241, %0, %cst_51 {dimension_numbers = #tpu.dot_dimension_numbers<[1], [0], [0], [1], [0, 0, 1, 1], [], []>} : vector<16x128xf32>, vector<128x512xf32>, vector<16x512xf32> -> vector<16x512xf32>
    %246 = arith.addf %244, %245 : vector<16x512xf32>
    %247 = vector.extract_strided_slice %246 {offsets = [0, 0], sizes = [16, 128], strides = [1, 1]} : vector<16x512xf32> to vector<16x128xf32>
    %248 = arith.negf %247 : vector<16x128xf32>
    %249 = math.exp %248 : vector<16x128xf32>
    %cst_52 = arith.constant 1.000000e+00 : f32
    %250 = vector.broadcast %cst_52 : f32 to vector<16x128xf32>
    %251 = arith.addf %250, %249 : vector<16x128xf32>
    %252 = arith.divf %250, %251 : vector<16x128xf32>
    %253 = vector.extract_strided_slice %246 {offsets = [0, 128], sizes = [16, 128], strides = [1, 1]} : vector<16x512xf32> to vector<16x128xf32>
    %254 = arith.negf %253 : vector<16x128xf32>
    %255 = math.exp %254 : vector<16x128xf32>
    %cst_53 = arith.constant 1.000000e+00 : f32
    %256 = vector.broadcast %cst_53 : f32 to vector<16x128xf32>
    %257 = arith.addf %256, %255 : vector<16x128xf32>
    %258 = arith.divf %256, %257 : vector<16x128xf32>
    %259 = vector.extract_strided_slice %246 {offsets = [0, 256], sizes = [16, 128], strides = [1, 1]} : vector<16x512xf32> to vector<16x128xf32>
    %260 = math.tanh %259 : vector<16x128xf32>
    %261 = vector.extract_strided_slice %246 {offsets = [0, 384], sizes = [16, 128], strides = [1, 1]} : vector<16x512xf32> to vector<16x128xf32>
    %262 = arith.negf %261 : vector<16x128xf32>
    %263 = math.exp %262 : vector<16x128xf32>
    %cst_54 = arith.constant 1.000000e+00 : f32
    %264 = vector.broadcast %cst_54 : f32 to vector<16x128xf32>
    %265 = arith.addf %264, %263 : vector<16x128xf32>
    %266 = arith.divf %264, %265 : vector<16x128xf32>
    %267 = arith.mulf %258, %239 : vector<16x128xf32>
    %268 = arith.mulf %252, %260 : vector<16x128xf32>
    %269 = arith.addf %267, %268 : vector<16x128xf32>
    %270 = math.tanh %269 : vector<16x128xf32>
    %271 = arith.mulf %266, %270 : vector<16x128xf32>
    %c9_i32 = arith.constant 9 : i32
    %272 = arith.index_cast %c9_i32 : i32 to index
    %c0_55 = arith.constant 0 : index
    %c0_56 = arith.constant 0 : index
    %273 = vector.load %arg1[%272, %c0_55, %c0_56] : memref<16x16x512xf32, #tpu.memory_space<vmem>>, vector<1x16x512xf32>
    %274 = vector.shape_cast %273 : vector<1x16x512xf32> to vector<16x512xf32>
    %cst_57 = arith.constant dense<0.000000e+00> : vector<16x512xf32>
    %275 = tpu.matmul %271, %0, %cst_57 {dimension_numbers = #tpu.dot_dimension_numbers<[1], [0], [0], [1], [0, 0, 1, 1], [], []>} : vector<16x128xf32>, vector<128x512xf32>, vector<16x512xf32> -> vector<16x512xf32>
    %276 = arith.addf %274, %275 : vector<16x512xf32>
    %277 = vector.extract_strided_slice %276 {offsets = [0, 0], sizes = [16, 128], strides = [1, 1]} : vector<16x512xf32> to vector<16x128xf32>
    %278 = arith.negf %277 : vector<16x128xf32>
    %279 = math.exp %278 : vector<16x128xf32>
    %cst_58 = arith.constant 1.000000e+00 : f32
    %280 = vector.broadcast %cst_58 : f32 to vector<16x128xf32>
    %281 = arith.addf %280, %279 : vector<16x128xf32>
    %282 = arith.divf %280, %281 : vector<16x128xf32>
    %283 = vector.extract_strided_slice %276 {offsets = [0, 128], sizes = [16, 128], strides = [1, 1]} : vector<16x512xf32> to vector<16x128xf32>
    %284 = arith.negf %283 : vector<16x128xf32>
    %285 = math.exp %284 : vector<16x128xf32>
    %cst_59 = arith.constant 1.000000e+00 : f32
    %286 = vector.broadcast %cst_59 : f32 to vector<16x128xf32>
    %287 = arith.addf %286, %285 : vector<16x128xf32>
    %288 = arith.divf %286, %287 : vector<16x128xf32>
    %289 = vector.extract_strided_slice %276 {offsets = [0, 256], sizes = [16, 128], strides = [1, 1]} : vector<16x512xf32> to vector<16x128xf32>
    %290 = math.tanh %289 : vector<16x128xf32>
    %291 = vector.extract_strided_slice %276 {offsets = [0, 384], sizes = [16, 128], strides = [1, 1]} : vector<16x512xf32> to vector<16x128xf32>
    %292 = arith.negf %291 : vector<16x128xf32>
    %293 = math.exp %292 : vector<16x128xf32>
    %cst_60 = arith.constant 1.000000e+00 : f32
    %294 = vector.broadcast %cst_60 : f32 to vector<16x128xf32>
    %295 = arith.addf %294, %293 : vector<16x128xf32>
    %296 = arith.divf %294, %295 : vector<16x128xf32>
    %297 = arith.mulf %288, %269 : vector<16x128xf32>
    %298 = arith.mulf %282, %290 : vector<16x128xf32>
    %299 = arith.addf %297, %298 : vector<16x128xf32>
    %300 = math.tanh %299 : vector<16x128xf32>
    %301 = arith.mulf %296, %300 : vector<16x128xf32>
    %c10_i32 = arith.constant 10 : i32
    %302 = arith.index_cast %c10_i32 : i32 to index
    %c0_61 = arith.constant 0 : index
    %c0_62 = arith.constant 0 : index
    %303 = vector.load %arg1[%302, %c0_61, %c0_62] : memref<16x16x512xf32, #tpu.memory_space<vmem>>, vector<1x16x512xf32>
    %304 = vector.shape_cast %303 : vector<1x16x512xf32> to vector<16x512xf32>
    %cst_63 = arith.constant dense<0.000000e+00> : vector<16x512xf32>
    %305 = tpu.matmul %301, %0, %cst_63 {dimension_numbers = #tpu.dot_dimension_numbers<[1], [0], [0], [1], [0, 0, 1, 1], [], []>} : vector<16x128xf32>, vector<128x512xf32>, vector<16x512xf32> -> vector<16x512xf32>
    %306 = arith.addf %304, %305 : vector<16x512xf32>
    %307 = vector.extract_strided_slice %306 {offsets = [0, 0], sizes = [16, 128], strides = [1, 1]} : vector<16x512xf32> to vector<16x128xf32>
    %308 = arith.negf %307 : vector<16x128xf32>
    %309 = math.exp %308 : vector<16x128xf32>
    %cst_64 = arith.constant 1.000000e+00 : f32
    %310 = vector.broadcast %cst_64 : f32 to vector<16x128xf32>
    %311 = arith.addf %310, %309 : vector<16x128xf32>
    %312 = arith.divf %310, %311 : vector<16x128xf32>
    %313 = vector.extract_strided_slice %306 {offsets = [0, 128], sizes = [16, 128], strides = [1, 1]} : vector<16x512xf32> to vector<16x128xf32>
    %314 = arith.negf %313 : vector<16x128xf32>
    %315 = math.exp %314 : vector<16x128xf32>
    %cst_65 = arith.constant 1.000000e+00 : f32
    %316 = vector.broadcast %cst_65 : f32 to vector<16x128xf32>
    %317 = arith.addf %316, %315 : vector<16x128xf32>
    %318 = arith.divf %316, %317 : vector<16x128xf32>
    %319 = vector.extract_strided_slice %306 {offsets = [0, 256], sizes = [16, 128], strides = [1, 1]} : vector<16x512xf32> to vector<16x128xf32>
    %320 = math.tanh %319 : vector<16x128xf32>
    %321 = vector.extract_strided_slice %306 {offsets = [0, 384], sizes = [16, 128], strides = [1, 1]} : vector<16x512xf32> to vector<16x128xf32>
    %322 = arith.negf %321 : vector<16x128xf32>
    %323 = math.exp %322 : vector<16x128xf32>
    %cst_66 = arith.constant 1.000000e+00 : f32
    %324 = vector.broadcast %cst_66 : f32 to vector<16x128xf32>
    %325 = arith.addf %324, %323 : vector<16x128xf32>
    %326 = arith.divf %324, %325 : vector<16x128xf32>
    %327 = arith.mulf %318, %299 : vector<16x128xf32>
    %328 = arith.mulf %312, %320 : vector<16x128xf32>
    %329 = arith.addf %327, %328 : vector<16x128xf32>
    %330 = math.tanh %329 : vector<16x128xf32>
    %331 = arith.mulf %326, %330 : vector<16x128xf32>
    %c11_i32 = arith.constant 11 : i32
    %332 = arith.index_cast %c11_i32 : i32 to index
    %c0_67 = arith.constant 0 : index
    %c0_68 = arith.constant 0 : index
    %333 = vector.load %arg1[%332, %c0_67, %c0_68] : memref<16x16x512xf32, #tpu.memory_space<vmem>>, vector<1x16x512xf32>
    %334 = vector.shape_cast %333 : vector<1x16x512xf32> to vector<16x512xf32>
    %cst_69 = arith.constant dense<0.000000e+00> : vector<16x512xf32>
    %335 = tpu.matmul %331, %0, %cst_69 {dimension_numbers = #tpu.dot_dimension_numbers<[1], [0], [0], [1], [0, 0, 1, 1], [], []>} : vector<16x128xf32>, vector<128x512xf32>, vector<16x512xf32> -> vector<16x512xf32>
    %336 = arith.addf %334, %335 : vector<16x512xf32>
    %337 = vector.extract_strided_slice %336 {offsets = [0, 0], sizes = [16, 128], strides = [1, 1]} : vector<16x512xf32> to vector<16x128xf32>
    %338 = arith.negf %337 : vector<16x128xf32>
    %339 = math.exp %338 : vector<16x128xf32>
    %cst_70 = arith.constant 1.000000e+00 : f32
    %340 = vector.broadcast %cst_70 : f32 to vector<16x128xf32>
    %341 = arith.addf %340, %339 : vector<16x128xf32>
    %342 = arith.divf %340, %341 : vector<16x128xf32>
    %343 = vector.extract_strided_slice %336 {offsets = [0, 128], sizes = [16, 128], strides = [1, 1]} : vector<16x512xf32> to vector<16x128xf32>
    %344 = arith.negf %343 : vector<16x128xf32>
    %345 = math.exp %344 : vector<16x128xf32>
    %cst_71 = arith.constant 1.000000e+00 : f32
    %346 = vector.broadcast %cst_71 : f32 to vector<16x128xf32>
    %347 = arith.addf %346, %345 : vector<16x128xf32>
    %348 = arith.divf %346, %347 : vector<16x128xf32>
    %349 = vector.extract_strided_slice %336 {offsets = [0, 256], sizes = [16, 128], strides = [1, 1]} : vector<16x512xf32> to vector<16x128xf32>
    %350 = math.tanh %349 : vector<16x128xf32>
    %351 = vector.extract_strided_slice %336 {offsets = [0, 384], sizes = [16, 128], strides = [1, 1]} : vector<16x512xf32> to vector<16x128xf32>
    %352 = arith.negf %351 : vector<16x128xf32>
    %353 = math.exp %352 : vector<16x128xf32>
    %cst_72 = arith.constant 1.000000e+00 : f32
    %354 = vector.broadcast %cst_72 : f32 to vector<16x128xf32>
    %355 = arith.addf %354, %353 : vector<16x128xf32>
    %356 = arith.divf %354, %355 : vector<16x128xf32>
    %357 = arith.mulf %348, %329 : vector<16x128xf32>
    %358 = arith.mulf %342, %350 : vector<16x128xf32>
    %359 = arith.addf %357, %358 : vector<16x128xf32>
    %360 = math.tanh %359 : vector<16x128xf32>
    %361 = arith.mulf %356, %360 : vector<16x128xf32>
    %c12_i32 = arith.constant 12 : i32
    %362 = arith.index_cast %c12_i32 : i32 to index
    %c0_73 = arith.constant 0 : index
    %c0_74 = arith.constant 0 : index
    %363 = vector.load %arg1[%362, %c0_73, %c0_74] : memref<16x16x512xf32, #tpu.memory_space<vmem>>, vector<1x16x512xf32>
    %364 = vector.shape_cast %363 : vector<1x16x512xf32> to vector<16x512xf32>
    %cst_75 = arith.constant dense<0.000000e+00> : vector<16x512xf32>
    %365 = tpu.matmul %361, %0, %cst_75 {dimension_numbers = #tpu.dot_dimension_numbers<[1], [0], [0], [1], [0, 0, 1, 1], [], []>} : vector<16x128xf32>, vector<128x512xf32>, vector<16x512xf32> -> vector<16x512xf32>
    %366 = arith.addf %364, %365 : vector<16x512xf32>
    %367 = vector.extract_strided_slice %366 {offsets = [0, 0], sizes = [16, 128], strides = [1, 1]} : vector<16x512xf32> to vector<16x128xf32>
    %368 = arith.negf %367 : vector<16x128xf32>
    %369 = math.exp %368 : vector<16x128xf32>
    %cst_76 = arith.constant 1.000000e+00 : f32
    %370 = vector.broadcast %cst_76 : f32 to vector<16x128xf32>
    %371 = arith.addf %370, %369 : vector<16x128xf32>
    %372 = arith.divf %370, %371 : vector<16x128xf32>
    %373 = vector.extract_strided_slice %366 {offsets = [0, 128], sizes = [16, 128], strides = [1, 1]} : vector<16x512xf32> to vector<16x128xf32>
    %374 = arith.negf %373 : vector<16x128xf32>
    %375 = math.exp %374 : vector<16x128xf32>
    %cst_77 = arith.constant 1.000000e+00 : f32
    %376 = vector.broadcast %cst_77 : f32 to vector<16x128xf32>
    %377 = arith.addf %376, %375 : vector<16x128xf32>
    %378 = arith.divf %376, %377 : vector<16x128xf32>
    %379 = vector.extract_strided_slice %366 {offsets = [0, 256], sizes = [16, 128], strides = [1, 1]} : vector<16x512xf32> to vector<16x128xf32>
    %380 = math.tanh %379 : vector<16x128xf32>
    %381 = vector.extract_strided_slice %366 {offsets = [0, 384], sizes = [16, 128], strides = [1, 1]} : vector<16x512xf32> to vector<16x128xf32>
    %382 = arith.negf %381 : vector<16x128xf32>
    %383 = math.exp %382 : vector<16x128xf32>
    %cst_78 = arith.constant 1.000000e+00 : f32
    %384 = vector.broadcast %cst_78 : f32 to vector<16x128xf32>
    %385 = arith.addf %384, %383 : vector<16x128xf32>
    %386 = arith.divf %384, %385 : vector<16x128xf32>
    %387 = arith.mulf %378, %359 : vector<16x128xf32>
    %388 = arith.mulf %372, %380 : vector<16x128xf32>
    %389 = arith.addf %387, %388 : vector<16x128xf32>
    %390 = math.tanh %389 : vector<16x128xf32>
    %391 = arith.mulf %386, %390 : vector<16x128xf32>
    %c13_i32 = arith.constant 13 : i32
    %392 = arith.index_cast %c13_i32 : i32 to index
    %c0_79 = arith.constant 0 : index
    %c0_80 = arith.constant 0 : index
    %393 = vector.load %arg1[%392, %c0_79, %c0_80] : memref<16x16x512xf32, #tpu.memory_space<vmem>>, vector<1x16x512xf32>
    %394 = vector.shape_cast %393 : vector<1x16x512xf32> to vector<16x512xf32>
    %cst_81 = arith.constant dense<0.000000e+00> : vector<16x512xf32>
    %395 = tpu.matmul %391, %0, %cst_81 {dimension_numbers = #tpu.dot_dimension_numbers<[1], [0], [0], [1], [0, 0, 1, 1], [], []>} : vector<16x128xf32>, vector<128x512xf32>, vector<16x512xf32> -> vector<16x512xf32>
    %396 = arith.addf %394, %395 : vector<16x512xf32>
    %397 = vector.extract_strided_slice %396 {offsets = [0, 0], sizes = [16, 128], strides = [1, 1]} : vector<16x512xf32> to vector<16x128xf32>
    %398 = arith.negf %397 : vector<16x128xf32>
    %399 = math.exp %398 : vector<16x128xf32>
    %cst_82 = arith.constant 1.000000e+00 : f32
    %400 = vector.broadcast %cst_82 : f32 to vector<16x128xf32>
    %401 = arith.addf %400, %399 : vector<16x128xf32>
    %402 = arith.divf %400, %401 : vector<16x128xf32>
    %403 = vector.extract_strided_slice %396 {offsets = [0, 128], sizes = [16, 128], strides = [1, 1]} : vector<16x512xf32> to vector<16x128xf32>
    %404 = arith.negf %403 : vector<16x128xf32>
    %405 = math.exp %404 : vector<16x128xf32>
    %cst_83 = arith.constant 1.000000e+00 : f32
    %406 = vector.broadcast %cst_83 : f32 to vector<16x128xf32>
    %407 = arith.addf %406, %405 : vector<16x128xf32>
    %408 = arith.divf %406, %407 : vector<16x128xf32>
    %409 = vector.extract_strided_slice %396 {offsets = [0, 256], sizes = [16, 128], strides = [1, 1]} : vector<16x512xf32> to vector<16x128xf32>
    %410 = math.tanh %409 : vector<16x128xf32>
    %411 = vector.extract_strided_slice %396 {offsets = [0, 384], sizes = [16, 128], strides = [1, 1]} : vector<16x512xf32> to vector<16x128xf32>
    %412 = arith.negf %411 : vector<16x128xf32>
    %413 = math.exp %412 : vector<16x128xf32>
    %cst_84 = arith.constant 1.000000e+00 : f32
    %414 = vector.broadcast %cst_84 : f32 to vector<16x128xf32>
    %415 = arith.addf %414, %413 : vector<16x128xf32>
    %416 = arith.divf %414, %415 : vector<16x128xf32>
    %417 = arith.mulf %408, %389 : vector<16x128xf32>
    %418 = arith.mulf %402, %410 : vector<16x128xf32>
    %419 = arith.addf %417, %418 : vector<16x128xf32>
    %420 = math.tanh %419 : vector<16x128xf32>
    %421 = arith.mulf %416, %420 : vector<16x128xf32>
    %c14_i32 = arith.constant 14 : i32
    %422 = arith.index_cast %c14_i32 : i32 to index
    %c0_85 = arith.constant 0 : index
    %c0_86 = arith.constant 0 : index
    %423 = vector.load %arg1[%422, %c0_85, %c0_86] : memref<16x16x512xf32, #tpu.memory_space<vmem>>, vector<1x16x512xf32>
    %424 = vector.shape_cast %423 : vector<1x16x512xf32> to vector<16x512xf32>
    %cst_87 = arith.constant dense<0.000000e+00> : vector<16x512xf32>
    %425 = tpu.matmul %421, %0, %cst_87 {dimension_numbers = #tpu.dot_dimension_numbers<[1], [0], [0], [1], [0, 0, 1, 1], [], []>} : vector<16x128xf32>, vector<128x512xf32>, vector<16x512xf32> -> vector<16x512xf32>
    %426 = arith.addf %424, %425 : vector<16x512xf32>
    %427 = vector.extract_strided_slice %426 {offsets = [0, 0], sizes = [16, 128], strides = [1, 1]} : vector<16x512xf32> to vector<16x128xf32>
    %428 = arith.negf %427 : vector<16x128xf32>
    %429 = math.exp %428 : vector<16x128xf32>
    %cst_88 = arith.constant 1.000000e+00 : f32
    %430 = vector.broadcast %cst_88 : f32 to vector<16x128xf32>
    %431 = arith.addf %430, %429 : vector<16x128xf32>
    %432 = arith.divf %430, %431 : vector<16x128xf32>
    %433 = vector.extract_strided_slice %426 {offsets = [0, 128], sizes = [16, 128], strides = [1, 1]} : vector<16x512xf32> to vector<16x128xf32>
    %434 = arith.negf %433 : vector<16x128xf32>
    %435 = math.exp %434 : vector<16x128xf32>
    %cst_89 = arith.constant 1.000000e+00 : f32
    %436 = vector.broadcast %cst_89 : f32 to vector<16x128xf32>
    %437 = arith.addf %436, %435 : vector<16x128xf32>
    %438 = arith.divf %436, %437 : vector<16x128xf32>
    %439 = vector.extract_strided_slice %426 {offsets = [0, 256], sizes = [16, 128], strides = [1, 1]} : vector<16x512xf32> to vector<16x128xf32>
    %440 = math.tanh %439 : vector<16x128xf32>
    %441 = vector.extract_strided_slice %426 {offsets = [0, 384], sizes = [16, 128], strides = [1, 1]} : vector<16x512xf32> to vector<16x128xf32>
    %442 = arith.negf %441 : vector<16x128xf32>
    %443 = math.exp %442 : vector<16x128xf32>
    %cst_90 = arith.constant 1.000000e+00 : f32
    %444 = vector.broadcast %cst_90 : f32 to vector<16x128xf32>
    %445 = arith.addf %444, %443 : vector<16x128xf32>
    %446 = arith.divf %444, %445 : vector<16x128xf32>
    %447 = arith.mulf %438, %419 : vector<16x128xf32>
    %448 = arith.mulf %432, %440 : vector<16x128xf32>
    %449 = arith.addf %447, %448 : vector<16x128xf32>
    %450 = math.tanh %449 : vector<16x128xf32>
    %451 = arith.mulf %446, %450 : vector<16x128xf32>
    %c15_i32 = arith.constant 15 : i32
    %452 = arith.index_cast %c15_i32 : i32 to index
    %c0_91 = arith.constant 0 : index
    %c0_92 = arith.constant 0 : index
    %453 = vector.load %arg1[%452, %c0_91, %c0_92] : memref<16x16x512xf32, #tpu.memory_space<vmem>>, vector<1x16x512xf32>
    %454 = vector.shape_cast %453 : vector<1x16x512xf32> to vector<16x512xf32>
    %cst_93 = arith.constant dense<0.000000e+00> : vector<16x512xf32>
    %455 = tpu.matmul %451, %0, %cst_93 {dimension_numbers = #tpu.dot_dimension_numbers<[1], [0], [0], [1], [0, 0, 1, 1], [], []>} : vector<16x128xf32>, vector<128x512xf32>, vector<16x512xf32> -> vector<16x512xf32>
    %456 = arith.addf %454, %455 : vector<16x512xf32>
    %457 = vector.extract_strided_slice %456 {offsets = [0, 0], sizes = [16, 128], strides = [1, 1]} : vector<16x512xf32> to vector<16x128xf32>
    %458 = arith.negf %457 : vector<16x128xf32>
    %459 = math.exp %458 : vector<16x128xf32>
    %cst_94 = arith.constant 1.000000e+00 : f32
    %460 = vector.broadcast %cst_94 : f32 to vector<16x128xf32>
    %461 = arith.addf %460, %459 : vector<16x128xf32>
    %462 = arith.divf %460, %461 : vector<16x128xf32>
    %463 = vector.extract_strided_slice %456 {offsets = [0, 128], sizes = [16, 128], strides = [1, 1]} : vector<16x512xf32> to vector<16x128xf32>
    %464 = arith.negf %463 : vector<16x128xf32>
    %465 = math.exp %464 : vector<16x128xf32>
    %cst_95 = arith.constant 1.000000e+00 : f32
    %466 = vector.broadcast %cst_95 : f32 to vector<16x128xf32>
    %467 = arith.addf %466, %465 : vector<16x128xf32>
    %468 = arith.divf %466, %467 : vector<16x128xf32>
    %469 = vector.extract_strided_slice %456 {offsets = [0, 256], sizes = [16, 128], strides = [1, 1]} : vector<16x512xf32> to vector<16x128xf32>
    %470 = math.tanh %469 : vector<16x128xf32>
    %471 = vector.extract_strided_slice %456 {offsets = [0, 384], sizes = [16, 128], strides = [1, 1]} : vector<16x512xf32> to vector<16x128xf32>
    %472 = arith.negf %471 : vector<16x128xf32>
    %473 = math.exp %472 : vector<16x128xf32>
    %cst_96 = arith.constant 1.000000e+00 : f32
    %474 = vector.broadcast %cst_96 : f32 to vector<16x128xf32>
    %475 = arith.addf %474, %473 : vector<16x128xf32>
    %476 = arith.divf %474, %475 : vector<16x128xf32>
    %477 = arith.mulf %468, %449 : vector<16x128xf32>
    %478 = arith.mulf %462, %470 : vector<16x128xf32>
    %479 = arith.addf %477, %478 : vector<16x128xf32>
    %480 = math.tanh %479 : vector<16x128xf32>
    %481 = arith.mulf %476, %480 : vector<16x128xf32>
    %c16_i32 = arith.constant 16 : i32
    %c0_97 = arith.constant 0 : index
    %c0_98 = arith.constant 0 : index
    %482 = vector.load %arg3[%c0_97, %c0_98] : memref<16x128xf32, #tpu.memory_space<vmem>>, vector<16x128xf32>
    tpu.vector_store %arg3[%c0_97, %c0_98], %481 {strides = array<i32>} : memref<16x128xf32, #tpu.memory_space<vmem>>, vector<16x128xf32>,
    return
  }
  func.func @transform_0(%arg0: i32) -> (i32, i32, i32) {
    %c0_i32 = arith.constant 0 : i32
    %c0_i32_0 = arith.constant 0 : i32
    %c0_i32_1 = arith.constant 0 : i32
    %c0_i32_2 = arith.constant 0 : i32
    return %c0_i32, %c0_i32_0, %c0_i32_1 : i32, i32, i32
  }
  func.func @transform_1(%arg0: i32) -> (i32, i32) {
    %c0_i32 = arith.constant 0 : i32
    %c0_i32_0 = arith.constant 0 : i32
    %c0_i32_1 = arith.constant 0 : i32
    return %c0_i32, %c0_i32_0 : i32, i32
  }
  func.func @transform_2(%arg0: i32) -> (i32, i32) {
    %c0_i32 = arith.constant 0 : i32
    %c0_i32_0 = arith.constant 0 : i32
    %c0_i32_1 = arith.constant 0 : i32
    return %c0_i32, %c0_i32_0 : i32, i32
  }
}

</mosaic_0001>

<bundles_post_ra>
// kernel: tpu_custom_call.1
= control target key start
LH: loop header
LB: loop body
LE: loop exit
PB: predicated region body
PF: predicated region fallthrough
CT: control target
= control target key end

     0   :  { %7 = vsyncpa [#allocation3], 0  ;;  %s6162_s0 = inlined_call_operand.hbm [shape: f32[16,16,512], index: 0, kind: input, shape index: {}]   ;;  %s6163_s1 = inlined_call_operand.hbm [shape: f32[128,512], index: 1, kind: input, shape index: {}]   ;;  %s6164_s2 = inlined_call_operand.hbm [shape: f32[16,128], index: 2, kind: output, shape index: {}]  }
   0x1   :  { %8 = vsyncpa [#allocation6], 0 }
   0x2   :  { %9 = vsyncpa [#allocation4], 0  ;;  %s5339_s9 = smov [#allocation2]   ;;  %s5267_s13 = scalar_lea.hbm %s6162_s0, 16384 }
   0x3   :  { %s15_s10 = sshll.u32 %s5339_s9, 4  ;;  %p5268_p0 = scmp.ne.s32.totalorder %s6162_s0, %s5267_s13  ;;  %s16_s10 = int_to_ptr.vmem [resolvable:$true] %s15_s10 }
   0x4   :  { %p5271_p1 = scmp.lt.u32.totalorder %s5267_s13, %s6162_s0 }
   0x6   :  { %p5273_p2 = pnand %p5271_p1, %p5268_p0 }
   0x8   :  { %5276 = shalt.err (!%p5273_p2)
}
   0x9   :  { %s5277_s18 = scalar_lea.vmem %s16_s10, 16384  ;;  %p5282_p4 = scmp.lt.s32.totalorder %s16_s10, %s16_s10 }
   0xa   :  { %p5278_p3 = scmp.ne.s32.totalorder %s16_s10, %s5277_s18  ;;  %p5283_p5 = scmp.lt.s32.totalorder %s5277_s18, %s5277_s18 }
   0xc   :  { %p5284_p6 = por %p5283_p5, %p5282_p4 }
   0xe   :  { %p5285_p7 = pnand %p5284_p6, %p5278_p3 }
  0x10   :  { %5288 = shalt.err (!%p5285_p7)
}
  0x11   :  { %s5340_s19 = smov 512   ;;  %s5341_s20 = smov 32  }
  0x12   :  { %21 = dma.hbm_to_vmem [thread:$0]  %s6162_s0, 16384, %s16_s10, [#allocation3], %s5340_s19, %s5340_s19, %s5341_s20  }
  0x13   :  { %s5342_s23 = smov [#allocation5]   ;;  %s5289_s27 = scalar_lea.hbm %s6163_s1, 8192 }
  0x14   :  { %s27_s24 = sshll.u32 %s5342_s23, 4  ;;  %p5290_p8 = scmp.ne.s32.totalorder %s6163_s1, %s5289_s27  ;;  %s28_s24 = int_to_ptr.vmem [resolvable:$true] %s27_s24 }
  0x15   :  { %p5293_p9 = scmp.lt.u32.totalorder %s5289_s27, %s6163_s1 }
  0x17   :  { %p5295_p10 = pnand %p5293_p9, %p5290_p8 }
  0x19   :  { %5298 = shalt.err (!%p5295_p10)
}
  0x1a   :  { %s5299_s4 = scalar_lea.vmem %s28_s24, 8192  ;;  %p5304_p12 = scmp.lt.s32.totalorder %s28_s24, %s28_s24 }
  0x1b   :  { %p5300_p11 = scmp.ne.s32.totalorder %s28_s24, %s5299_s4  ;;  %p5305_p13 = scmp.lt.s32.totalorder %s5299_s4, %s5299_s4 }
  0x1d   :  { %p5306_p0 = por %p5305_p13, %p5304_p12 }
  0x1f   :  { %p5307_p1 = pnand %p5306_p0, %p5300_p11 }
  0x21   :  { %5310 = shalt.err (!%p5307_p1)
}
  0x22   :  { %33 = dma.hbm_to_vmem [thread:$0]  %s6163_s1, 8192, %s28_s24, [#allocation6], %s5340_s19, %s5340_s19, %s5341_s20  }
  0x23   :  { %5333 = dma.done.wait [#allocation3], 16384  }
  0x24   :  { %5334 = vsyncadd [#allocation3], 4294950912 }
  0x25   :  { %5335 = dma.done.wait [#allocation6], 8192  }
  0x26   :  { %5336 = vsyncadd [#allocation6], 4294959104  ;;  %v5343_v0 = vmov 0.0   ;;  %v41_v1 = vld [vmem:[#allocation5 + $0x8] sm:$0xff]  ;;  %v40_v3 = vld [vmem:[#allocation5] sm:$0xff]  ;;  %s5344_s1 = smov [#allocation7]  }
  0x27   :  { %176 = vmatprep.mubr.f32.mxu0 %v5343_v0  ;;  %253 = vmatprep.mubr.f32.mxu1 %v5343_v0  ;;  %v45_v2 = vld [vmem:[#allocation5 + $0x28] sm:$0xff]  ;;  %v44_v5 = vld [vmem:[#allocation5 + $0x20] sm:$0xff]  ;;  %v43_v19 = vld [vmem:[#allocation5 + $0x18] sm:$0xff]  ;;  %s3614_s6 = sshll.u32 %s5344_s1, 4  ;;  %s3615_s6 = int_to_ptr.vmem [resolvable:$true] %s3614_s6 }
  0x28   :  { %v5388_v4 = vpack.c.bf16 %v45_v2, %v41_v1  ;;  %v49_v6 = vld [vmem:[#allocation5 + $0x48] sm:$0xff]  ;;  %v5390_v8 = vpack.c.bf16 %v44_v5, %v40_v3  ;;  %v48_v10 = vld [vmem:[#allocation5 + $0x40] sm:$0xff]  ;;  %v47_v20 = vld [vmem:[#allocation5 + $0x38] sm:$0xff]  ;;  %s5311_s7 = scalar_lea.vmem %s3615_s6, 256  ;;  %p5316_p3 = scmp.lt.s32.totalorder %s3615_s6, %s3615_s6 }
  0x29   :  { %v53_v7 = vld [vmem:[#allocation5 + $0x68] sm:$0xff]  ;;  %v52_v11 = vld [vmem:[#allocation5 + $0x60] sm:$0xff]  ;;  %v5401_v22 = vpack.c.bf16 %v47_v20, %v43_v19  ;;  %v42_v23 = vld [vmem:[#allocation5 + $0x10] sm:$0xff]  ;;  %p5312_p2 = scmp.ne.s32.totalorder %s3615_s6, %s5311_s7  ;;  %p5317_p4 = scmp.lt.s32.totalorder %s5311_s7, %s5311_s7 }
  0x2a   :  { %v5392_v9 = vpack.c.bf16 %v53_v7, %v49_v6  ;;  %v57_v12 = vld [vmem:[#allocation5 + $0x88] sm:$0xff]  ;;  %3724 = vmatprep.subr.bf16.mxu0 %v5388_v4  ;;  %v5396_v14 = vpack.c.bf16 %v52_v11, %v48_v10  ;;  %v56_v15 = vld [vmem:[#allocation5 + $0x80] sm:$0xff]  ;;  %v46_v24 = vld [vmem:[#allocation5 + $0x30] sm:$0xff] }
  0x2b   :  { %v61_v13 = vld [vmem:[#allocation5 + $0xa8] sm:$0xff]  ;;  %3726 = vmatpush1.bf16.msra.mxu0 %v5390_v8  ;;  %v60_v16 = vld [vmem:[#allocation5 + $0xa0] sm:$0xff]  ;;  %v5403_v25 = vpack.c.bf16 %v46_v24, %v42_v23  ;;  %3756 = vmatprep.subr.bf16.mxu1 %v5401_v22  ;;  %v51_v27 = vld [vmem:[#allocation5 + $0x58] sm:$0xff]  ;;  %p5318_p5 = por %p5317_p4, %p5316_p3 }
  0x2c   :  { %3728 = vmatprep.subr.bf16.mxu0 %v5392_v9  ;;  %v5399_v17 = vpack.c.bf16 %v61_v13, %v57_v12  ;;  %v65_v18 = vld [vmem:[#allocation5 + $0xc8] sm:$0xff]  ;;  %v5406_v26 = vpack.c.bf16 %v60_v16, %v56_v15  ;;  %v55_v28 = vld [vmem:[#allocation5 + $0x78] sm:$0xff]  ;;  %v50_v29 = vld [vmem:[#allocation5 + $0x50] sm:$0xff] }
  0x2d   :  { %v69_v21 = vld [vmem:[#allocation5 + $0xe8] sm:$0xff]  ;;  %v64_v31 = vld [vmem:[#allocation5 + $0xc0] sm:$0xff]  ;;  %3758 = vmatpush1.bf16.msra.mxu1 %v5403_v25  ;;  %v5413_v33 = vpack.c.bf16 %v55_v28, %v51_v27  ;;  %v54_v34 = vld [vmem:[#allocation5 + $0x70] sm:$0xff]  ;;  %p5319_p6 = pnand %p5318_p5, %p5312_p2 }
  0x2e   :  { %v5410_v30 = vpack.c.bf16 %v69_v21, %v65_v18  ;;  %v68_v32 = vld [vmem:[#allocation5 + $0xe0] sm:$0xff]  ;;  %v73_v35 = vld [vmem:[#allocation5 + $0x108] sm:$0xff]  ;;  %v5415_v37 = vpack.c.bf16 %v54_v34, %v50_v29  ;;  %v59_v38 = vld [vmem:[#allocation5 + $0x98] sm:$0xff] }
  0x2f   :  { %3730 = vmatpush1.bf16.msra.mxu0 %v5396_v14  ;;  %v77_v36 = vld [vmem:[#allocation5 + $0x128] sm:$0xff]  ;;  %3760 = vmatprep.subr.bf16.mxu1 %v5413_v33  ;;  %v63_v39 = vld [vmem:[#allocation5 + $0xb8] sm:$0xff]  ;;  %v58_v40 = vld [vmem:[#allocation5 + $0x90] sm:$0xff]  ;;  %v5419_v42 = vpack.c.bf16 %v68_v32, %v64_v31 }
  0x30   :  { %3732 = vmatprep.subr.bf16.mxu0 %v5399_v17  ;;  %v62_v41 = vld [vmem:[#allocation5 + $0xb0] sm:$0xff]  ;;  %v72_v43 = vld [vmem:[#allocation5 + $0x100] sm:$0xff]  ;;  %v5421_v45 = vpack.c.bf16 %v63_v39, %v59_v38  ;;  %v5424_v46 = vpack.c.bf16 %v77_v36, %v73_v35  ;;  %v81_v47 = vld [vmem:[#allocation5 + $0x148] sm:$0xff] }
  0x31   :  { %v76_v44 = vld [vmem:[#allocation5 + $0x120] sm:$0xff]  ;;  %3762 = vmatpush1.bf16.msra.mxu1 %v5415_v37  ;;  %v5427_v48 = vpack.c.bf16 %v62_v41, %v58_v40  ;;  %v67_v49 = vld [vmem:[#allocation5 + $0xd8] sm:$0xff]  ;;  %v85_v51 = vld [vmem:[#allocation5 + $0x168] sm:$0xff] }
  0x32   :  { %v71_v50 = vld [vmem:[#allocation5 + $0xf8] sm:$0xff]  ;;  %3764 = vmatprep.subr.bf16.mxu1 %v5421_v45  ;;  %v66_v53 = vld [vmem:[#allocation5 + $0xd0] sm:$0xff]  ;;  %v5433_v55 = vpack.c.bf16 %v76_v44, %v72_v43  ;;  %v5436_v58 = vpack.c.bf16 %v85_v51, %v81_v47  ;;  %v80_v59 = vld [vmem:[#allocation5 + $0x140] sm:$0xff] }
  0x33   :  { %3734 = vmatpush1.bf16.msra.mxu0 %v5406_v26  ;;  %v5430_v52 = vpack.c.bf16 %v71_v50, %v67_v49  ;;  %v70_v54 = vld [vmem:[#allocation5 + $0xf0] sm:$0xff]  ;;  %v75_v56 = vld [vmem:[#allocation5 + $0x118] sm:$0xff]  ;;  %v84_v60 = vld [vmem:[#allocation5 + $0x160] sm:$0xff] }
  0x34   :  { %3736 = vmatprep.subr.bf16.mxu0 %v5410_v30  ;;  %v79_v57 = vld [vmem:[#allocation5 + $0x138] sm:$0xff]  ;;  %v89_v61 = vld [vmem:[#allocation5 + $0x188] sm:$0xff]  ;;  %v5439_v62 = vpack.c.bf16 %v70_v54, %v66_v53  ;;  %v74_v2 = vld [vmem:[#allocation5 + $0x110] sm:$0xff]  ;;  %v5445_v7 = vpack.c.bf16 %v84_v60, %v80_v59 }
  0x35   :  { %3766 = vmatpush1.bf16.msra.mxu1 %v5427_v48  ;;  %v93_v63 = vld [vmem:[#allocation5 + $0x1a8] sm:$0xff]  ;;  %v5442_v1 = vpack.c.bf16 %v79_v57, %v75_v56  ;;  %v78_v3 = vld [vmem:[#allocation5 + $0x130] sm:$0xff]  ;;  %v83_v5 = vld [vmem:[#allocation5 + $0x158] sm:$0xff] }
  0x36   :  { %3768 = vmatprep.subr.bf16.mxu1 %v5430_v52  ;;  %v87_v6 = vld [vmem:[#allocation5 + $0x178] sm:$0xff]  ;;  %v5448_v10 = vpack.c.bf16 %v93_v63, %v89_v61  ;;  %v88_v11 = vld [vmem:[#allocation5 + $0x180] sm:$0xff]  ;;  %v97_v13 = vld [vmem:[#allocation5 + $0x1c8] sm:$0xff]  ;;  %v5451_v15 = vpack.c.bf16 %v78_v3, %v74_v2 }
  0x37   :  { %3738 = vmatpush1.bf16.msra.mxu0 %v5419_v42  ;;  %v92_v12 = vld [vmem:[#allocation5 + $0x1a0] sm:$0xff]  ;;  %v101_v16 = vld [vmem:[#allocation5 + $0x1e8] sm:$0xff]  ;;  %v5454_v18 = vpack.c.bf16 %v87_v6, %v83_v5  ;;  %v82_v19 = vld [vmem:[#allocation5 + $0x150] sm:$0xff] }
  0x38   :  { %3740 = vmatprep.subr.bf16.mxu0 %v5424_v46  ;;  %v86_v20 = vld [vmem:[#allocation5 + $0x170] sm:$0xff]  ;;  %v91_v21 = vld [vmem:[#allocation5 + $0x198] sm:$0xff]  ;;  %v5457_v24 = vpack.c.bf16 %v92_v12, %v88_v11  ;;  %v5460_v27 = vpack.c.bf16 %v101_v16, %v97_v13  ;;  %v96_v28 = vld [vmem:[#allocation5 + $0x1c0] sm:$0xff] }
  0x39   :  { %3770 = vmatpush1.bf16.msra.mxu1 %v5439_v62  ;;  %v95_v23 = vld [vmem:[#allocation5 + $0x1b8] sm:$0xff]  ;;  %v100_v29 = vld [vmem:[#allocation5 + $0x1e0] sm:$0xff]  ;;  %v5463_v31 = vpack.c.bf16 %v86_v20, %v82_v19  ;;  %v90_v34 = vld [vmem:[#allocation5 + $0x190] sm:$0xff] }
  0x3a   :  { %3772 = vmatprep.subr.bf16.mxu1 %v5442_v1  ;;  %v5466_v32 = vpack.c.bf16 %v95_v23, %v91_v21  ;;  %v94_v35 = vld [vmem:[#allocation5 + $0x1b0] sm:$0xff]  ;;  %v99_v36 = vld [vmem:[#allocation5 + $0x1d8] sm:$0xff]  ;;  %v5469_v39 = vpack.c.bf16 %v100_v29, %v96_v28  ;;  %v104_v49 = vld [vmem:[#allocation2] sm:$0xff] }
  0x3b   :  { %3742 = vmatpush1.bf16.msra.mxu0 %v5433_v55  ;;  %v103_v38 = vld [vmem:[#allocation5 + $0x1f8] sm:$0xff]  ;;  %v5473_v40 = vpack.c.bf16 %v94_v35, %v90_v34  ;;  %v98_v43 = vld [vmem:[#allocation5 + $0x1d0] sm:$0xff]  ;;  %v105_v50 = vld [vmem:[#allocation2 + $0x8] sm:$0xff] }
  0x3c   :  { %3744 = vmatprep.subr.bf16.mxu0 %v5436_v58  ;;  %v5476_v41 = vpack.c.bf16 %v103_v38, %v99_v36  ;;  %v102_v44 = vld [vmem:[#allocation5 + $0x1f0] sm:$0xff]  ;;  %v108_v57 = vld [vmem:[#allocation2 + $0x20] sm:$0xff]  ;;  %v109_v60 = vld [vmem:[#allocation2 + $0x28] sm:$0xff] }
  0x3d   :  { %3774 = vmatpush1.bf16.msra.mxu1 %v5451_v15  ;;  %v5480_v47 = vpack.c.bf16 %v102_v44, %v98_v43  ;;  %v107_v2 = vld [vmem:[#allocation2 + $0x18] sm:$0xff]  ;;  %v106_v21 = vld [vmem:[#allocation2 + $0x10] sm:$0xff] }
  0x3e   :  { %3776 = vmatprep.subr.bf16.mxu1 %v5454_v18  ;;  %v111_v20 = vld [vmem:[#allocation2 + $0x38] sm:$0xff]  ;;  %v110_v36 = vld [vmem:[#allocation2 + $0x30] sm:$0xff] }
  0x3f   :  { %3746 = vmatpush1.bf16.msra.mxu0 %v5445_v7 }
  0x40   :  { %3748 = vmatprep.subr.bf16.mxu0 %v5448_v10 }
  0x41   :  { %3778 = vmatpush1.bf16.msra.mxu1 %v5463_v31 }
  0x42   :  { %3780 = vmatprep.subr.bf16.mxu1 %v5466_v32 }
  0x43   :  { %3750 = vmatpush1.bf16.msra.mxu0 %v5457_v24 }
  0x44   :  { %3752 = vmatprep.subr.bf16.mxu0 %v5460_v27 }
  0x45   :  { %3782 = vmatpush1.bf16.msra.mxu1 %v5473_v40 }
  0x46   :  { %3784 = vmatprep.subr.bf16.mxu1 %v5476_v41 }
  0x47   :  { %3754 = vmatpush1.bf16.msra.mxu0 %v5469_v39 }
  0x48   :  { %3788 = vmatprep.subr.bf16.mxu0 %v5388_v4 }
  0x49   :  { %3786 = vmatpush1.bf16.msra.mxu1 %v5480_v47 }
  0x4a   :  { %177 = vmatmul.mubr.f32.vlgmr.msra.gmra.mrb[0].mxu0 %v5343_v0  ;;  %3820 = vmatprep.subr.bf16.mxu1 %v5401_v22 }
  0x4b   :  { %182 = vmatprep.mubr.f32.mxu0 %v5343_v0  ;;  %3790 = vmatpush1.bf16.msra.mxu0 %v5390_v8 }
  0x4c   :  { %3792 = vmatprep.subr.bf16.mxu0 %v5392_v9  ;;  %254 = vmatmul.mubr.f32.vlgmr.msra.gmra.mrb[0].mxu1 %v5343_v0 }
  0x4d   :  { %259 = vmatprep.mubr.f32.mxu1 %v5343_v0  ;;  %3822 = vmatpush1.bf16.msra.mxu1 %v5403_v25 }
  0x4e   :  { %183 = vmatmul.mubr.f32.gmra.mrb[2].mxu0 %v5343_v0  ;;  %3824 = vmatprep.subr.bf16.mxu1 %v5413_v33 }
  0x4f   :  { %3794 = vmatpush1.bf16.msra.mxu0 %v5396_v14  ;;  %395 = vmatprep.mubr.f32.mxu0 %v5343_v0 }
  0x50   :  { %3796 = vmatprep.subr.bf16.mxu0 %v5399_v17  ;;  %260 = vmatmul.mubr.f32.gmra.mrb[2].mxu1 %v5343_v0 }
  0x51   :  { %3826 = vmatpush1.bf16.msra.mxu1 %v5415_v37  ;;  %472 = vmatprep.mubr.f32.mxu1 %v5343_v0 }
  0x52   :  { %3828 = vmatprep.subr.bf16.mxu1 %v5421_v45 }
  0x53   :  { %3798 = vmatpush1.bf16.msra.mxu0 %v5406_v26 }
  0x54   :  { %3800 = vmatprep.subr.bf16.mxu0 %v5410_v30 }
  0x55   :  { %3830 = vmatpush1.bf16.msra.mxu1 %v5427_v48 }
  0x56   :  { %3832 = vmatprep.subr.bf16.mxu1 %v5430_v52 }
  0x57   :  { %3802 = vmatpush1.bf16.msra.mxu0 %v5419_v42 }
  0x58   :  { %3804 = vmatprep.subr.bf16.mxu0 %v5424_v46 }
  0x59   :  { %3834 = vmatpush1.bf16.msra.mxu1 %v5439_v62 }
  0x5a   :  { %3836 = vmatprep.subr.bf16.mxu1 %v5442_v1 }
  0x5b   :  { %3806 = vmatpush1.bf16.msra.mxu0 %v5433_v55 }
  0x5c   :  { %3808 = vmatprep.subr.bf16.mxu0 %v5436_v58 }
  0x5d   :  { %3838 = vmatpush1.bf16.msra.mxu1 %v5451_v15 }
  0x5e   :  { %3840 = vmatprep.subr.bf16.mxu1 %v5454_v18 }
  0x5f   :  { %3810 = vmatpush1.bf16.msra.mxu0 %v5445_v7 }
  0x60   :  { %3812 = vmatprep.subr.bf16.mxu0 %v5448_v10 }
  0x61   :  { %3842 = vmatpush1.bf16.msra.mxu1 %v5463_v31 }
  0x62   :  { %3844 = vmatprep.subr.bf16.mxu1 %v5466_v32 }
  0x63   :  { %3814 = vmatpush1.bf16.msra.mxu0 %v5457_v24 }
  0x64   :  { %3816 = vmatprep.subr.bf16.mxu0 %v5460_v27 }
  0x65   :  { %3846 = vmatpush1.bf16.msra.mxu1 %v5473_v40 }
  0x66   :  { %3848 = vmatprep.subr.bf16.mxu1 %v5476_v41 }
  0x67   :  { %3818 = vmatpush1.bf16.msra.mxu0 %v5469_v39 }
  0x68   :  { %3852 = vmatprep.subr.bf16.mxu0 %v5388_v4 }
  0x69   :  { %3850 = vmatpush1.bf16.msra.mxu1 %v5480_v47 }
  0x6a   :  { %3884 = vmatprep.subr.bf16.mxu1 %v5401_v22 }
 0x11d   :  { %v178_v51 = vpop.f32.mrb[0].mxu0 }
 0x11e   :  { %v266_v53 = vadd.f32 %v178_v51, %v104_v49  ;;  %v180_v54 = vpop.f32.mrb[1].mxu0 }
 0x11f   :  { %v267_v56 = vadd.f32 %v180_v54, %v105_v50  ;;  %v255_v6 = vpop.f32.mrb[0].mxu1 }
 0x120   :  { %v3627_v59 = vmul.f32 -1.442695, %v266_v53  ;;  %v257_v12 = vpop.f32.mrb[1].mxu1  ;;  %v268_v35 = vadd.f32 %v255_v6, %v106_v21 }
 0x121   :  { %v3629_v61 = vmul.f32 -1.442695, %v267_v56  ;;  %v184_v63 = vpop.f32.mrb[2].mxu0  ;;  %v269_v16 = vadd.f32 %v257_v12, %v107_v2 }
 0x122   :  { %4755 = vpow2.f32 %v3627_v59  ;;  %v270_v3 = vadd.f32 %v184_v63, %v108_v57  ;;  %v186_v5 = vpop.f32.mrb[3].mxu0 }
 0x123   :  { %4757 = vpow2.f32 %v3629_v61  ;;  %v271_v11 = vadd.f32 %v186_v5, %v109_v60  ;;  %v261_v23 = vpop.f32.mrb[2].mxu1  ;;  %v3631_v29 = vmul.f32 -1.442695, %v269_v16 }
 0x124   :  { %v3628_v13 = vmul.f32 -1.442695, %v270_v3  ;;  %v263_v28 = vpop.f32.mrb[3].mxu1  ;;  %v272_v50 = vadd.f32 %v261_v23, %v110_v36 }
 0x125   :  { %v3630_v19 = vmul.f32 -1.442695, %v271_v11  ;;  %v273_v34 = vadd.f32 %v263_v28, %v111_v20 }
 0x126   :  { %4759 = vpow2.f32 %v3628_v13 }
 0x127   :  { %4761 = vpow2.f32 %v3630_v19  ;;  %v3632_v38 = vmul.f32 -1.442695, %v273_v34 }
 0x128   :  { %4763 = vpow2.f32 %v3631_v29 }
 0x129   :  { %4765 = vtanh.f32 %v268_v35 }
 0x12a   :  { %4767 = vpow2.f32 %v3632_v38 }
 0x12c   :  { %v4756_v43 = vpop.eup %4755 }
 0x12d   :  { %v4758_v44 = vpop.eup %4757  ;;  %v280_v49 = vadd.f32 1.0, %v4756_v43  ;;  %v323_v43 = vld [vmem:[#allocation2 + $0x40] sm:$0xff] }
 0x12e   :  { %v292_v51 = vadd.f32 1.0, %v4758_v44  ;;  %v324_v44 = vld [vmem:[#allocation2 + $0x48] sm:$0xff] }
 0x12f   :  { %4769 = vrcp.f32 %v280_v49 }
 0x130   :  { %v4760_v53 = vpop.eup %4759  ;;  %4771 = vrcp.f32 %v292_v51 }
 0x131   :  { %v4762_v54 = vpop.eup %4761  ;;  %v281_v56 = vadd.f32 1.0, %v4760_v53  ;;  %4773 = vtanh.f32 %v272_v50 }
 0x132   :  { %v293_v57 = vadd.f32 1.0, %v4762_v54  ;;  %v4764_v59 = vpop.eup %4763 }
 0x133   :  { %4775 = vrcp.f32 %v281_v56  ;;  %v4766_v60 = vpop.eup %4765  ;;  %v306_v2 = vadd.f32 1.0, %v4764_v59 }
 0x134   :  { %4777 = vrcp.f32 %v293_v57  ;;  %v4768_v61 = vpop.eup %4767  ;;  %v327_v57 = vld [vmem:[#allocation2 + $0x60] sm:$0xff] }
 0x135   :  { %4779 = vrcp.f32 %v306_v2  ;;  %v307_v16 = vadd.f32 1.0, %v4768_v61 }
 0x139   :  { %v4770_v63 = vpop.eup %4769 }
 0x13a   :  { %v4772_v3 = vpop.eup %4771  ;;  %v314_v5 = vmul.f32 %v4770_v63, %v4766_v60  ;;  %v328_v60 = vld [vmem:[#allocation2 + $0x68] sm:$0xff] }
 0x13b   :  { %v4774_v6 = vpop.eup %4773  ;;  %v312_v11 = vmul.f32 0.0, %v4772_v3  ;;  %v326_v3 = vld [vmem:[#allocation2 + $0x58] sm:$0xff] }
 0x13d   :  { %v4776_v12 = vpop.eup %4775  ;;  %v5526_v13 = vadd.f32 %v314_v5, %v312_v11 }
 0x13e   :  { %v4778_v19 = vpop.eup %4777  ;;  %v315_v20 = vmul.f32 %v4776_v12, %v4774_v6 }
 0x13f   :  { %v313_v21 = vmul.f32 0.0, %v4778_v19  ;;  %4781 = vtanh.f32 %v5526_v13  ;;  %v4780_v28 = vpop.eup %4779 }
 0x140   :  { %4783 = vrcp.f32 %v307_v16 }
 0x141   :  { %v5529_v23 = vadd.f32 %v315_v20, %v313_v21  ;;  %v330_v21 = vld [vmem:[#allocation2 + $0x78] sm:$0xff] }
 0x143   :  { %4785 = vtanh.f32 %v5529_v23 }
 0x149   :  { %v4782_v29 = vpop.eup %4781 }
 0x14a   :  { %v320_v34 = vmul.f32 %v4782_v29, %v4780_v28  ;;  %v4784_v35 = vpop.eup %4783  ;;  %v325_v28 = vld [vmem:[#allocation2 + $0x50] sm:$0xff] }
 0x14c   :  { %396 = vmatmul.mubr.f32.vlgmr.msra.gmra.mrb[4].mxu0 %v320_v34  ;;  %473 = vmatmul.mubr.f32.vlgmr.msra.gmra.mrb[4].mxu1 %v320_v34 }
 0x14d   :  { %v4786_v36 = vpop.eup %4785  ;;  %401 = vmatprep.mubr.f32.mxu0 %v5343_v0  ;;  %478 = vmatprep.mubr.f32.mxu1 %v5343_v0 }
 0x14e   :  { %v321_v38 = vmul.f32 %v4786_v36, %v4784_v35  ;;  %3854 = vmatpush1.bf16.msra.mxu0 %v5390_v8  ;;  %3886 = vmatpush1.bf16.msra.mxu1 %v5403_v25  ;;  %v329_v36 = vld [vmem:[#allocation2 + $0x70] sm:$0xff] }
 0x14f   :  { %3856 = vmatprep.subr.bf16.mxu0 %v5392_v9  ;;  %3888 = vmatprep.subr.bf16.mxu1 %v5413_v33 }
 0x150   :  { %402 = vmatmul.mubr.f32.gmra.mrb[6].mxu0 %v321_v38  ;;  %479 = vmatmul.mubr.f32.gmra.mrb[6].mxu1 %v321_v38 }
 0x151   :  { %614 = vmatprep.mubr.f32.mxu0 %v5343_v0  ;;  %691 = vmatprep.mubr.f32.mxu1 %v5343_v0 }
 0x152   :  { %3858 = vmatpush1.bf16.msra.mxu0 %v5396_v14  ;;  %3890 = vmatpush1.bf16.msra.mxu1 %v5415_v37 }
 0x153   :  { %3860 = vmatprep.subr.bf16.mxu0 %v5399_v17  ;;  %3892 = vmatprep.subr.bf16.mxu1 %v5421_v45 }
 0x156   :  { %3862 = vmatpush1.bf16.msra.mxu0 %v5406_v26  ;;  %3894 = vmatpush1.bf16.msra.mxu1 %v5427_v48 }
 0x157   :  { %3864 = vmatprep.subr.bf16.mxu0 %v5410_v30  ;;  %3896 = vmatprep.subr.bf16.mxu1 %v5430_v52 }
 0x15a   :  { %3866 = vmatpush1.bf16.msra.mxu0 %v5419_v42  ;;  %3898 = vmatpush1.bf16.msra.mxu1 %v5439_v62 }
 0x15b   :  { %3868 = vmatprep.subr.bf16.mxu0 %v5424_v46  ;;  %3900 = vmatprep.subr.bf16.mxu1 %v5442_v1 }
 0x15e   :  { %3870 = vmatpush1.bf16.msra.mxu0 %v5433_v55  ;;  %3902 = vmatpush1.bf16.msra.mxu1 %v5451_v15 }
 0x15f   :  { %3872 = vmatprep.subr.bf16.mxu0 %v5436_v58  ;;  %3904 = vmatprep.subr.bf16.mxu1 %v5454_v18 }
 0x162   :  { %3874 = vmatpush1.bf16.msra.mxu0 %v5445_v7  ;;  %3906 = vmatpush1.bf16.msra.mxu1 %v5463_v31 }
 0x163   :  { %3876 = vmatprep.subr.bf16.mxu0 %v5448_v10  ;;  %3908 = vmatprep.subr.bf16.mxu1 %v5466_v32 }
 0x166   :  { %3878 = vmatpush1.bf16.msra.mxu0 %v5457_v24  ;;  %3910 = vmatpush1.bf16.msra.mxu1 %v5473_v40 }
 0x167   :  { %3880 = vmatprep.subr.bf16.mxu0 %v5460_v27  ;;  %3912 = vmatprep.subr.bf16.mxu1 %v5476_v41 }
 0x16a   :  { %3882 = vmatpush1.bf16.msra.mxu0 %v5469_v39  ;;  %3914 = vmatpush1.bf16.msra.mxu1 %v5480_v47 }
 0x16b   :  { %3916 = vmatprep.subr.bf16.mxu0 %v5388_v4  ;;  %3948 = vmatprep.subr.bf16.mxu1 %v5401_v22 }
 0x21f   :  { %v397_v49 = vpop.f32.mrb[4].mxu0  ;;  %v474_v50 = vpop.f32.mrb[4].mxu1 }
 0x220   :  { %v485_v51 = vadd.f32 %v397_v49, %v323_v43  ;;  %v399_v53 = vpop.f32.mrb[5].mxu0  ;;  %v476_v54 = vpop.f32.mrb[5].mxu1  ;;  %v487_v35 = vadd.f32 %v474_v50, %v325_v28 }
 0x221   :  { %v486_v56 = vadd.f32 %v399_v53, %v324_v44  ;;  %v488_v19 = vadd.f32 %v476_v54, %v326_v3 }
 0x222   :  { %v3633_v59 = vmul.f32 -1.442695, %v485_v51 }
 0x223   :  { %v3635_v61 = vmul.f32 -1.442695, %v486_v56  ;;  %v403_v63 = vpop.f32.mrb[6].mxu0  ;;  %v480_v2 = vpop.f32.mrb[6].mxu1  ;;  %v3637_v29 = vmul.f32 -1.442695, %v488_v19 }
 0x224   :  { %4787 = vpow2.f32 %v3633_v59  ;;  %v489_v5 = vadd.f32 %v403_v63, %v327_v57  ;;  %v405_v6 = vpop.f32.mrb[7].mxu0  ;;  %v482_v11 = vpop.f32.mrb[7].mxu1  ;;  %v491_v53 = vadd.f32 %v480_v2, %v329_v36 }
 0x225   :  { %4789 = vpow2.f32 %v3635_v61  ;;  %v490_v12 = vadd.f32 %v405_v6, %v328_v60  ;;  %v492_v34 = vadd.f32 %v482_v11, %v330_v21 }
 0x226   :  { %v3634_v16 = vmul.f32 -1.442695, %v489_v5 }
 0x227   :  { %v3636_v20 = vmul.f32 -1.442695, %v490_v12  ;;  %v3638_v49 = vmul.f32 -1.442695, %v492_v34 }
 0x228   :  { %4791 = vpow2.f32 %v3634_v16 }
 0x229   :  { %4793 = vpow2.f32 %v3636_v20 }
 0x22a   :  { %4795 = vpow2.f32 %v3637_v29 }
 0x22b   :  { %4797 = vtanh.f32 %v487_v35 }
 0x22e   :  { %v4788_v38 = vpop.eup %4787 }
 0x22f   :  { %v4790_v43 = vpop.eup %4789  ;;  %v499_v44 = vadd.f32 1.0, %v4788_v38 }
 0x230   :  { %v511_v51 = vadd.f32 1.0, %v4790_v43 }
 0x231   :  { %4799 = vrcp.f32 %v499_v44  ;;  %v543_v44 = vld [vmem:[#allocation2 + $0x88] sm:$0xff] }
 0x232   :  { %v4792_v56 = vpop.eup %4791  ;;  %4801 = vrcp.f32 %v511_v51 }
 0x233   :  { %v4794_v54 = vpop.eup %4793  ;;  %v500_v57 = vadd.f32 1.0, %v4792_v56  ;;  %4803 = vpow2.f32 %v3638_v49 }
 0x234   :  { %4805 = vtanh.f32 %v491_v53  ;;  %v512_v59 = vadd.f32 1.0, %v4794_v54  ;;  %v4796_v50 = vpop.eup %4795 }
 0x235   :  { %4807 = vrcp.f32 %v500_v57  ;;  %v4798_v60 = vpop.eup %4797  ;;  %v525_v5 = vadd.f32 1.0, %v4796_v50 }
 0x236   :  { %4809 = vrcp.f32 %v512_v59  ;;  %v546_v59 = vld [vmem:[#allocation2 + $0xa0] sm:$0xff] }
 0x237   :  { %4811 = vrcp.f32 %v525_v5  ;;  %v545_v5 = vld [vmem:[#allocation2 + $0x98] sm:$0xff] }
 0x23b   :  { %v4800_v61 = vpop.eup %4799 }
 0x23c   :  { %v4802_v63 = vpop.eup %4801  ;;  %v533_v3 = vmul.f32 %v4800_v61, %v4798_v60  ;;  %v547_v60 = vld [vmem:[#allocation2 + $0xa8] sm:$0xff] }
 0x23d   :  { %v4804_v6 = vpop.eup %4803  ;;  %v531_v11 = vmul.f32 %v4802_v63, %v5526_v13 }
 0x23e   :  { %v4806_v2 = vpop.eup %4805  ;;  %v526_v21 = vadd.f32 1.0, %v4804_v6 }
 0x23f   :  { %v4808_v12 = vpop.eup %4807  ;;  %v5569_v16 = vadd.f32 %v533_v3, %v531_v11 }
 0x240   :  { %v4810_v19 = vpop.eup %4809  ;;  %v534_v20 = vmul.f32 %v4808_v12, %v4806_v2 }
 0x241   :  { %4813 = vtanh.f32 %v5569_v16  ;;  %v532_v28 = vmul.f32 %v4810_v19, %v5529_v23  ;;  %v4812_v34 = vpop.eup %4811  ;;  %v542_v23 = vld [vmem:[#allocation2 + $0x80] sm:$0xff] }
 0x242   :  { %4815 = vrcp.f32 %v526_v21 }
 0x243   :  { %v5573_v29 = vadd.f32 %v534_v20, %v532_v28  ;;  %v549_v28 = vld [vmem:[#allocation2 + $0xb8] sm:$0xff] }
 0x245   :  { %4817 = vtanh.f32 %v5573_v29 }
 0x24b   :  { %v4814_v35 = vpop.eup %4813 }
 0x24c   :  { %v539_v13 = vmul.f32 %v4814_v35, %v4812_v34  ;;  %v4816_v36 = vpop.eup %4815  ;;  %v544_v34 = vld [vmem:[#allocation2 + $0x90] sm:$0xff] }
 0x24e   :  { %615 = vmatmul.mubr.f32.vlgmr.msra.gmra.mrb[8].mxu0 %v539_v13  ;;  %692 = vmatmul.mubr.f32.vlgmr.msra.gmra.mrb[8].mxu1 %v539_v13 }
 0x24f   :  { %v4818_v38 = vpop.eup %4817  ;;  %620 = vmatprep.mubr.f32.mxu0 %v5343_v0  ;;  %697 = vmatprep.mubr.f32.mxu1 %v5343_v0 }
 0x250   :  { %v540_v43 = vmul.f32 %v4818_v38, %v4816_v36  ;;  %3918 = vmatpush1.bf16.msra.mxu0 %v5390_v8  ;;  %3950 = vmatpush1.bf16.msra.mxu1 %v5403_v25  ;;  %v548_v38 = vld [vmem:[#allocation2 + $0xb0] sm:$0xff] }
 0x251   :  { %3920 = vmatprep.subr.bf16.mxu0 %v5392_v9  ;;  %3952 = vmatprep.subr.bf16.mxu1 %v5413_v33 }
 0x252   :  { %621 = vmatmul.mubr.f32.gmra.mrb[10].mxu0 %v540_v43  ;;  %698 = vmatmul.mubr.f32.gmra.mrb[10].mxu1 %v540_v43 }
 0x253   :  { %833 = vmatprep.mubr.f32.mxu0 %v5343_v0  ;;  %910 = vmatprep.mubr.f32.mxu1 %v5343_v0 }
 0x254   :  { %3922 = vmatpush1.bf16.msra.mxu0 %v5396_v14  ;;  %3954 = vmatpush1.bf16.msra.mxu1 %v5415_v37 }
 0x255   :  { %3924 = vmatprep.subr.bf16.mxu0 %v5399_v17  ;;  %3956 = vmatprep.subr.bf16.mxu1 %v5421_v45 }
 0x258   :  { %3926 = vmatpush1.bf16.msra.mxu0 %v5406_v26  ;;  %3958 = vmatpush1.bf16.msra.mxu1 %v5427_v48 }
 0x259   :  { %3928 = vmatprep.subr.bf16.mxu0 %v5410_v30  ;;  %3960 = vmatprep.subr.bf16.mxu1 %v5430_v52 }
 0x25c   :  { %3930 = vmatpush1.bf16.msra.mxu0 %v5419_v42  ;;  %3962 = vmatpush1.bf16.msra.mxu1 %v5439_v62 }
 0x25d   :  { %3932 = vmatprep.subr.bf16.mxu0 %v5424_v46  ;;  %3964 = vmatprep.subr.bf16.mxu1 %v5442_v1 }
 0x260   :  { %3934 = vmatpush1.bf16.msra.mxu0 %v5433_v55  ;;  %3966 = vmatpush1.bf16.msra.mxu1 %v5451_v15 }
 0x261   :  { %3936 = vmatprep.subr.bf16.mxu0 %v5436_v58  ;;  %3968 = vmatprep.subr.bf16.mxu1 %v5454_v18 }
 0x264   :  { %3938 = vmatpush1.bf16.msra.mxu0 %v5445_v7  ;;  %3970 = vmatpush1.bf16.msra.mxu1 %v5463_v31 }
 0x265   :  { %3940 = vmatprep.subr.bf16.mxu0 %v5448_v10  ;;  %3972 = vmatprep.subr.bf16.mxu1 %v5466_v32 }
 0x268   :  { %3942 = vmatpush1.bf16.msra.mxu0 %v5457_v24  ;;  %3974 = vmatpush1.bf16.msra.mxu1 %v5473_v40 }
 0x269   :  { %3944 = vmatprep.subr.bf16.mxu0 %v5460_v27  ;;  %3976 = vmatprep.subr.bf16.mxu1 %v5476_v41 }
 0x26c   :  { %3946 = vmatpush1.bf16.msra.mxu0 %v5469_v39  ;;  %3978 = vmatpush1.bf16.msra.mxu1 %v5480_v47 }
 0x26d   :  { %3980 = vmatprep.subr.bf16.mxu0 %v5388_v4  ;;  %4012 = vmatprep.subr.bf16.mxu1 %v5401_v22 }
 0x321   :  { %v616_v49 = vpop.f32.mrb[8].mxu0  ;;  %v693_v51 = vpop.f32.mrb[8].mxu1 }
 0x322   :  { %v704_v53 = vadd.f32 %v616_v49, %v542_v23  ;;  %v618_v56 = vpop.f32.mrb[9].mxu0  ;;  %v695_v54 = vpop.f32.mrb[9].mxu1  ;;  %v706_v36 = vadd.f32 %v693_v51, %v544_v34 }
 0x323   :  { %v705_v57 = vadd.f32 %v618_v56, %v543_v44  ;;  %v707_v20 = vadd.f32 %v695_v54, %v545_v5 }
 0x324   :  { %v3639_v50 = vmul.f32 -1.442695, %v704_v53 }
 0x325   :  { %v3641_v61 = vmul.f32 -1.442695, %v705_v57  ;;  %v622_v63 = vpop.f32.mrb[10].mxu0  ;;  %v699_v3 = vpop.f32.mrb[10].mxu1  ;;  %v3643_v35 = vmul.f32 -1.442695, %v707_v20 }
 0x326   :  { %4819 = vpow2.f32 %v3639_v50  ;;  %v708_v6 = vadd.f32 %v622_v63, %v546_v59  ;;  %v624_v11 = vpop.f32.mrb[11].mxu0  ;;  %v701_v2 = vpop.f32.mrb[11].mxu1  ;;  %v710_v56 = vadd.f32 %v699_v3, %v548_v38 }
 0x327   :  { %4821 = vpow2.f32 %v3641_v61  ;;  %v709_v12 = vadd.f32 %v624_v11, %v547_v60  ;;  %v711_v13 = vadd.f32 %v701_v2, %v549_v28 }
 0x328   :  { %v3640_v19 = vmul.f32 -1.442695, %v708_v6 }
 0x329   :  { %v3642_v21 = vmul.f32 -1.442695, %v709_v12  ;;  %v3644_v49 = vmul.f32 -1.442695, %v711_v13 }
 0x32a   :  { %4823 = vpow2.f32 %v3640_v19 }
 0x32b   :  { %4825 = vpow2.f32 %v3642_v21 }
 0x32c   :  { %4827 = vpow2.f32 %v3643_v35 }
 0x32d   :  { %4829 = vtanh.f32 %v706_v36 }
 0x330   :  { %v4820_v43 = vpop.eup %4819 }
 0x331   :  { %v4822_v23 = vpop.eup %4821  ;;  %v718_v44 = vadd.f32 1.0, %v4820_v43 }
 0x332   :  { %v730_v53 = vadd.f32 1.0, %v4822_v23 }
 0x333   :  { %4831 = vrcp.f32 %v718_v44  ;;  %v762_v44 = vld [vmem:[#allocation2 + $0xc8] sm:$0xff] }
 0x334   :  { %v4824_v57 = vpop.eup %4823  ;;  %4833 = vrcp.f32 %v730_v53 }
 0x335   :  { %v4826_v54 = vpop.eup %4825  ;;  %v719_v59 = vadd.f32 1.0, %v4824_v57  ;;  %4835 = vpow2.f32 %v3644_v49 }
 0x336   :  { %4837 = vtanh.f32 %v710_v56  ;;  %v731_v50 = vadd.f32 1.0, %v4826_v54  ;;  %v4828_v51 = vpop.eup %4827 }
 0x337   :  { %4839 = vrcp.f32 %v719_v59  ;;  %v4830_v60 = vpop.eup %4829  ;;  %v744_v6 = vadd.f32 1.0, %v4828_v51 }
 0x338   :  { %4841 = vrcp.f32 %v731_v50  ;;  %v765_v50 = vld [vmem:[#allocation2 + $0xe0] sm:$0xff] }
 0x339   :  { %4843 = vrcp.f32 %v744_v6  ;;  %v764_v6 = vld [vmem:[#allocation2 + $0xd8] sm:$0xff] }
 0x33d   :  { %v4832_v61 = vpop.eup %4831 }
 0x33e   :  { %v4834_v63 = vpop.eup %4833  ;;  %v752_v5 = vmul.f32 %v4832_v61, %v4830_v60  ;;  %v766_v60 = vld [vmem:[#allocation2 + $0xe8] sm:$0xff] }
 0x33f   :  { %v4836_v11 = vpop.eup %4835  ;;  %v750_v2 = vmul.f32 %v4834_v63, %v5569_v16 }
 0x340   :  { %v4838_v3 = vpop.eup %4837  ;;  %v745_v28 = vadd.f32 1.0, %v4836_v11 }
 0x341   :  { %v4840_v12 = vpop.eup %4839  ;;  %v5613_v19 = vadd.f32 %v752_v5, %v750_v2 }
 0x342   :  { %v4842_v20 = vpop.eup %4841  ;;  %v753_v21 = vmul.f32 %v4840_v12, %v4838_v3 }
 0x343   :  { %4845 = vtanh.f32 %v5613_v19  ;;  %v751_v34 = vmul.f32 %v4842_v20, %v5573_v29  ;;  %v4844_v13 = vpop.eup %4843  ;;  %v761_v29 = vld [vmem:[#allocation2 + $0xc0] sm:$0xff] }
 0x344   :  { %4847 = vrcp.f32 %v745_v28 }
 0x345   :  { %v5617_v35 = vadd.f32 %v753_v21, %v751_v34  ;;  %v768_v34 = vld [vmem:[#allocation2 + $0xf8] sm:$0xff] }
 0x347   :  { %4849 = vtanh.f32 %v5617_v35 }
 0x34d   :  { %v4846_v36 = vpop.eup %4845 }
 0x34e   :  { %v758_v16 = vmul.f32 %v4846_v36, %v4844_v13  ;;  %v4848_v38 = vpop.eup %4847  ;;  %v763_v13 = vld [vmem:[#allocation2 + $0xd0] sm:$0xff] }
 0x350   :  { %834 = vmatmul.mubr.f32.vlgmr.msra.gmra.mrb[12].mxu0 %v758_v16  ;;  %911 = vmatmul.mubr.f32.vlgmr.msra.gmra.mrb[12].mxu1 %v758_v16 }
 0x351   :  { %v4850_v43 = vpop.eup %4849  ;;  %839 = vmatprep.mubr.f32.mxu0 %v5343_v0  ;;  %916 = vmatprep.mubr.f32.mxu1 %v5343_v0 }
 0x352   :  { %v759_v23 = vmul.f32 %v4850_v43, %v4848_v38  ;;  %3982 = vmatpush1.bf16.msra.mxu0 %v5390_v8  ;;  %4014 = vmatpush1.bf16.msra.mxu1 %v5403_v25  ;;  %v767_v43 = vld [vmem:[#allocation2 + $0xf0] sm:$0xff] }
 0x353   :  { %3984 = vmatprep.subr.bf16.mxu0 %v5392_v9  ;;  %4016 = vmatprep.subr.bf16.mxu1 %v5413_v33 }
 0x354   :  { %840 = vmatmul.mubr.f32.gmra.mrb[14].mxu0 %v759_v23  ;;  %917 = vmatmul.mubr.f32.gmra.mrb[14].mxu1 %v759_v23 }
 0x355   :  { %1052 = vmatprep.mubr.f32.mxu0 %v5343_v0  ;;  %1129 = vmatprep.mubr.f32.mxu1 %v5343_v0 }
 0x356   :  { %3986 = vmatpush1.bf16.msra.mxu0 %v5396_v14  ;;  %4018 = vmatpush1.bf16.msra.mxu1 %v5415_v37 }
 0x357   :  { %3988 = vmatprep.subr.bf16.mxu0 %v5399_v17  ;;  %4020 = vmatprep.subr.bf16.mxu1 %v5421_v45 }
 0x35a   :  { %3990 = vmatpush1.bf16.msra.mxu0 %v5406_v26  ;;  %4022 = vmatpush1.bf16.msra.mxu1 %v5427_v48 }
 0x35b   :  { %3992 = vmatprep.subr.bf16.mxu0 %v5410_v30  ;;  %4024 = vmatprep.subr.bf16.mxu1 %v5430_v52 }
 0x35e   :  { %3994 = vmatpush1.bf16.msra.mxu0 %v5419_v42  ;;  %4026 = vmatpush1.bf16.msra.mxu1 %v5439_v62 }
 0x35f   :  { %3996 = vmatprep.subr.bf16.mxu0 %v5424_v46  ;;  %4028 = vmatprep.subr.bf16.mxu1 %v5442_v1 }
 0x362   :  { %3998 = vmatpush1.bf16.msra.mxu0 %v5433_v55  ;;  %4030 = vmatpush1.bf16.msra.mxu1 %v5451_v15 }
 0x363   :  { %4000 = vmatprep.subr.bf16.mxu0 %v5436_v58  ;;  %4032 = vmatprep.subr.bf16.mxu1 %v5454_v18 }
 0x366   :  { %4002 = vmatpush1.bf16.msra.mxu0 %v5445_v7  ;;  %4034 = vmatpush1.bf16.msra.mxu1 %v5463_v31 }
 0x367   :  { %4004 = vmatprep.subr.bf16.mxu0 %v5448_v10  ;;  %4036 = vmatprep.subr.bf16.mxu1 %v5466_v32 }
 0x36a   :  { %4006 = vmatpush1.bf16.msra.mxu0 %v5457_v24  ;;  %4038 = vmatpush1.bf16.msra.mxu1 %v5473_v40 }
 0x36b   :  { %4008 = vmatprep.subr.bf16.mxu0 %v5460_v27  ;;  %4040 = vmatprep.subr.bf16.mxu1 %v5476_v41 }
 0x36e   :  { %4010 = vmatpush1.bf16.msra.mxu0 %v5469_v39  ;;  %4042 = vmatpush1.bf16.msra.mxu1 %v5480_v47 }
 0x36f   :  { %4044 = vmatprep.subr.bf16.mxu0 %v5388_v4  ;;  %4076 = vmatprep.subr.bf16.mxu1 %v5401_v22 }
 0x423   :  { %v835_v49 = vpop.f32.mrb[12].mxu0  ;;  %v912_v53 = vpop.f32.mrb[12].mxu1 }
 0x424   :  { %v923_v56 = vadd.f32 %v835_v49, %v761_v29  ;;  %v837_v57 = vpop.f32.mrb[13].mxu0  ;;  %v914_v54 = vpop.f32.mrb[13].mxu1  ;;  %v925_v38 = vadd.f32 %v912_v53, %v763_v13 }
 0x425   :  { %v924_v59 = vadd.f32 %v837_v57, %v762_v44  ;;  %v926_v21 = vadd.f32 %v914_v54, %v764_v6 }
 0x426   :  { %v3645_v51 = vmul.f32 -1.442695, %v923_v56 }
 0x427   :  { %v3647_v61 = vmul.f32 -1.442695, %v924_v59  ;;  %v841_v63 = vpop.f32.mrb[14].mxu0  ;;  %v918_v5 = vpop.f32.mrb[14].mxu1  ;;  %v3649_v36 = vmul.f32 -1.442695, %v926_v21 }
 0x428   :  { %4851 = vpow2.f32 %v3645_v51  ;;  %v927_v11 = vadd.f32 %v841_v63, %v765_v50  ;;  %v843_v2 = vpop.f32.mrb[15].mxu0  ;;  %v920_v3 = vpop.f32.mrb[15].mxu1  ;;  %v929_v57 = vadd.f32 %v918_v5, %v767_v43 }
 0x429   :  { %4853 = vpow2.f32 %v3647_v61  ;;  %v928_v12 = vadd.f32 %v843_v2, %v766_v60  ;;  %v930_v16 = vadd.f32 %v920_v3, %v768_v34 }
 0x42a   :  { %v3646_v20 = vmul.f32 -1.442695, %v927_v11 }
 0x42b   :  { %v3648_v28 = vmul.f32 -1.442695, %v928_v12  ;;  %v3650_v49 = vmul.f32 -1.442695, %v930_v16 }
 0x42c   :  { %4855 = vpow2.f32 %v3646_v20 }
 0x42d   :  { %4857 = vpow2.f32 %v3648_v28 }
 0x42e   :  { %4859 = vpow2.f32 %v3649_v36 }
 0x42f   :  { %4861 = vtanh.f32 %v925_v38 }
 0x432   :  { %v4852_v23 = vpop.eup %4851 }
 0x433   :  { %v4854_v29 = vpop.eup %4853  ;;  %v937_v44 = vadd.f32 1.0, %v4852_v23 }
 0x434   :  { %v949_v56 = vadd.f32 1.0, %v4854_v29 }
 0x435   :  { %4863 = vrcp.f32 %v937_v44  ;;  %v981_v44 = vld [vmem:[#allocation2 + $0x108] sm:$0xff] }
 0x436   :  { %v4856_v59 = vpop.eup %4855  ;;  %4865 = vrcp.f32 %v949_v56 }
 0x437   :  { %v4858_v54 = vpop.eup %4857  ;;  %v938_v50 = vadd.f32 1.0, %v4856_v59  ;;  %4867 = vpow2.f32 %v3650_v49 }
 0x438   :  { %4869 = vtanh.f32 %v929_v57  ;;  %v950_v51 = vadd.f32 1.0, %v4858_v54  ;;  %v4860_v53 = vpop.eup %4859 }
 0x439   :  { %4871 = vrcp.f32 %v938_v50  ;;  %v4862_v60 = vpop.eup %4861  ;;  %v963_v11 = vadd.f32 1.0, %v4860_v53 }
 0x43a   :  { %4873 = vrcp.f32 %v950_v51  ;;  %v984_v51 = vld [vmem:[#allocation2 + $0x120] sm:$0xff] }
 0x43b   :  { %4875 = vrcp.f32 %v963_v11  ;;  %v983_v11 = vld [vmem:[#allocation2 + $0x118] sm:$0xff] }
 0x43f   :  { %v4864_v61 = vpop.eup %4863 }
 0x440   :  { %v4866_v63 = vpop.eup %4865  ;;  %v971_v6 = vmul.f32 %v4864_v61, %v4862_v60  ;;  %v985_v60 = vld [vmem:[#allocation2 + $0x128] sm:$0xff] }
 0x441   :  { %v4868_v2 = vpop.eup %4867  ;;  %v969_v3 = vmul.f32 %v4866_v63, %v5613_v19 }
 0x442   :  { %v4870_v5 = vpop.eup %4869  ;;  %v964_v34 = vadd.f32 1.0, %v4868_v2 }
 0x443   :  { %v4872_v12 = vpop.eup %4871  ;;  %v5657_v20 = vadd.f32 %v971_v6, %v969_v3 }
 0x444   :  { %v4874_v21 = vpop.eup %4873  ;;  %v972_v28 = vmul.f32 %v4872_v12, %v4870_v5 }
 0x445   :  { %4877 = vtanh.f32 %v5657_v20  ;;  %v970_v13 = vmul.f32 %v4874_v21, %v5617_v35  ;;  %v4876_v16 = vpop.eup %4875  ;;  %v980_v35 = vld [vmem:[#allocation2 + $0x100] sm:$0xff] }
 0x446   :  { %4879 = vrcp.f32 %v964_v34 }
 0x447   :  { %v5661_v36 = vadd.f32 %v972_v28, %v970_v13  ;;  %v987_v13 = vld [vmem:[#allocation2 + $0x138] sm:$0xff] }
 0x449   :  { %4881 = vtanh.f32 %v5661_v36 }
 0x44f   :  { %v4878_v38 = vpop.eup %4877 }
 0x450   :  { %v977_v19 = vmul.f32 %v4878_v38, %v4876_v16  ;;  %v4880_v43 = vpop.eup %4879  ;;  %v982_v16 = vld [vmem:[#allocation2 + $0x110] sm:$0xff] }
 0x452   :  { %1053 = vmatmul.mubr.f32.vlgmr.msra.gmra.mrb[16].mxu0 %v977_v19  ;;  %1130 = vmatmul.mubr.f32.vlgmr.msra.gmra.mrb[16].mxu1 %v977_v19 }
 0x453   :  { %v4882_v23 = vpop.eup %4881  ;;  %1058 = vmatprep.mubr.f32.mxu0 %v5343_v0  ;;  %1135 = vmatprep.mubr.f32.mxu1 %v5343_v0 }
 0x454   :  { %v978_v29 = vmul.f32 %v4882_v23, %v4880_v43  ;;  %4046 = vmatpush1.bf16.msra.mxu0 %v5390_v8  ;;  %4078 = vmatpush1.bf16.msra.mxu1 %v5403_v25  ;;  %v986_v23 = vld [vmem:[#allocation2 + $0x130] sm:$0xff] }
 0x455   :  { %4048 = vmatprep.subr.bf16.mxu0 %v5392_v9  ;;  %4080 = vmatprep.subr.bf16.mxu1 %v5413_v33 }
 0x456   :  { %1059 = vmatmul.mubr.f32.gmra.mrb[18].mxu0 %v978_v29  ;;  %1136 = vmatmul.mubr.f32.gmra.mrb[18].mxu1 %v978_v29 }
 0x457   :  { %1271 = vmatprep.mubr.f32.mxu0 %v5343_v0  ;;  %1348 = vmatprep.mubr.f32.mxu1 %v5343_v0 }
 0x458   :  { %4050 = vmatpush1.bf16.msra.mxu0 %v5396_v14  ;;  %4082 = vmatpush1.bf16.msra.mxu1 %v5415_v37 }
 0x459   :  { %4052 = vmatprep.subr.bf16.mxu0 %v5399_v17  ;;  %4084 = vmatprep.subr.bf16.mxu1 %v5421_v45 }
 0x45c   :  { %4054 = vmatpush1.bf16.msra.mxu0 %v5406_v26  ;;  %4086 = vmatpush1.bf16.msra.mxu1 %v5427_v48 }
 0x45d   :  { %4056 = vmatprep.subr.bf16.mxu0 %v5410_v30  ;;  %4088 = vmatprep.subr.bf16.mxu1 %v5430_v52 }
 0x460   :  { %4058 = vmatpush1.bf16.msra.mxu0 %v5419_v42  ;;  %4090 = vmatpush1.bf16.msra.mxu1 %v5439_v62 }
 0x461   :  { %4060 = vmatprep.subr.bf16.mxu0 %v5424_v46  ;;  %4092 = vmatprep.subr.bf16.mxu1 %v5442_v1 }
 0x464   :  { %4062 = vmatpush1.bf16.msra.mxu0 %v5433_v55  ;;  %4094 = vmatpush1.bf16.msra.mxu1 %v5451_v15 }
 0x465   :  { %4064 = vmatprep.subr.bf16.mxu0 %v5436_v58  ;;  %4096 = vmatprep.subr.bf16.mxu1 %v5454_v18 }
 0x468   :  { %4066 = vmatpush1.bf16.msra.mxu0 %v5445_v7  ;;  %4098 = vmatpush1.bf16.msra.mxu1 %v5463_v31 }
 0x469   :  { %4068 = vmatprep.subr.bf16.mxu0 %v5448_v10  ;;  %4100 = vmatprep.subr.bf16.mxu1 %v5466_v32 }
 0x46c   :  { %4070 = vmatpush1.bf16.msra.mxu0 %v5457_v24  ;;  %4102 = vmatpush1.bf16.msra.mxu1 %v5473_v40 }
 0x46d   :  { %4072 = vmatprep.subr.bf16.mxu0 %v5460_v27  ;;  %4104 = vmatprep.subr.bf16.mxu1 %v5476_v41 }
 0x470   :  { %4074 = vmatpush1.bf16.msra.mxu0 %v5469_v39  ;;  %4106 = vmatpush1.bf16.msra.mxu1 %v5480_v47 }
 0x471   :  { %4108 = vmatprep.subr.bf16.mxu0 %v5388_v4  ;;  %4140 = vmatprep.subr.bf16.mxu1 %v5401_v22 }
 0x525   :  { %v1054_v49 = vpop.f32.mrb[16].mxu0  ;;  %v1131_v56 = vpop.f32.mrb[16].mxu1 }
 0x526   :  { %v1142_v57 = vadd.f32 %v1054_v49, %v980_v35  ;;  %v1056_v59 = vpop.f32.mrb[17].mxu0  ;;  %v1133_v54 = vpop.f32.mrb[17].mxu1  ;;  %v1144_v43 = vadd.f32 %v1131_v56, %v982_v16 }
 0x527   :  { %v1143_v50 = vadd.f32 %v1056_v59, %v981_v44  ;;  %v1145_v28 = vadd.f32 %v1133_v54, %v983_v11 }
 0x528   :  { %v3651_v53 = vmul.f32 -1.442695, %v1142_v57 }
 0x529   :  { %v3653_v61 = vmul.f32 -1.442695, %v1143_v50  ;;  %v1060_v63 = vpop.f32.mrb[18].mxu0  ;;  %v1137_v6 = vpop.f32.mrb[18].mxu1  ;;  %v3655_v38 = vmul.f32 -1.442695, %v1145_v28 }
 0x52a   :  { %4883 = vpow2.f32 %v3651_v53  ;;  %v1146_v2 = vadd.f32 %v1060_v63, %v984_v51  ;;  %v1062_v3 = vpop.f32.mrb[19].mxu0  ;;  %v1139_v5 = vpop.f32.mrb[19].mxu1  ;;  %v1148_v59 = vadd.f32 %v1137_v6, %v986_v23 }
 0x52b   :  { %4885 = vpow2.f32 %v3653_v61  ;;  %v1147_v12 = vadd.f32 %v1062_v3, %v985_v60  ;;  %v1149_v19 = vadd.f32 %v1139_v5, %v987_v13 }
 0x52c   :  { %v3652_v21 = vmul.f32 -1.442695, %v1146_v2 }
 0x52d   :  { %v3654_v34 = vmul.f32 -1.442695, %v1147_v12  ;;  %v3656_v49 = vmul.f32 -1.442695, %v1149_v19 }
 0x52e   :  { %4887 = vpow2.f32 %v3652_v21 }
 0x52f   :  { %4889 = vpow2.f32 %v3654_v34 }
 0x530   :  { %4891 = vpow2.f32 %v3655_v38 }
 0x531   :  { %4893 = vtanh.f32 %v1144_v43 }
 0x534   :  { %v4884_v29 = vpop.eup %4883 }
 0x535   :  { %v4886_v35 = vpop.eup %4885  ;;  %v1156_v44 = vadd.f32 1.0, %v4884_v29 }
 0x536   :  { %v1168_v57 = vadd.f32 1.0, %v4886_v35 }
 0x537   :  { %4895 = vrcp.f32 %v1156_v44  ;;  %v1200_v44 = vld [vmem:[#allocation2 + $0x148] sm:$0xff] }
 0x538   :  { %v4888_v50 = vpop.eup %4887  ;;  %4897 = vrcp.f32 %v1168_v57 }
 0x539   :  { %v4890_v54 = vpop.eup %4889  ;;  %v1157_v51 = vadd.f32 1.0, %v4888_v50  ;;  %4899 = vpow2.f32 %v3656_v49 }
 0x53a   :  { %4901 = vtanh.f32 %v1148_v59  ;;  %v1169_v53 = vadd.f32 1.0, %v4890_v54  ;;  %v4892_v56 = vpop.eup %4891 }
 0x53b   :  { %4903 = vrcp.f32 %v1157_v51  ;;  %v4894_v60 = vpop.eup %4893  ;;  %v1182_v2 = vadd.f32 1.0, %v4892_v56 }
 0x53c   :  { %4905 = vrcp.f32 %v1169_v53  ;;  %v1203_v53 = vld [vmem:[#allocation2 + $0x160] sm:$0xff] }
 0x53d   :  { %4907 = vrcp.f32 %v1182_v2  ;;  %v1202_v2 = vld [vmem:[#allocation2 + $0x158] sm:$0xff] }
 0x541   :  { %v4896_v61 = vpop.eup %4895 }
 0x542   :  { %v4898_v63 = vpop.eup %4897  ;;  %v1190_v11 = vmul.f32 %v4896_v61, %v4894_v60  ;;  %v1204_v60 = vld [vmem:[#allocation2 + $0x168] sm:$0xff] }
 0x543   :  { %v4900_v3 = vpop.eup %4899  ;;  %v1188_v5 = vmul.f32 %v4898_v63, %v5657_v20 }
 0x544   :  { %v4902_v6 = vpop.eup %4901  ;;  %v1183_v13 = vadd.f32 1.0, %v4900_v3 }
 0x545   :  { %v4904_v12 = vpop.eup %4903  ;;  %v5701_v21 = vadd.f32 %v1190_v11, %v1188_v5 }
 0x546   :  { %v4906_v28 = vpop.eup %4905  ;;  %v1191_v34 = vmul.f32 %v4904_v12, %v4902_v6 }
 0x547   :  { %4909 = vtanh.f32 %v5701_v21  ;;  %v1189_v16 = vmul.f32 %v4906_v28, %v5661_v36  ;;  %v4908_v19 = vpop.eup %4907  ;;  %v1199_v36 = vld [vmem:[#allocation2 + $0x140] sm:$0xff] }
 0x548   :  { %4911 = vrcp.f32 %v1183_v13 }
 0x549   :  { %v5705_v38 = vadd.f32 %v1191_v34, %v1189_v16  ;;  %v1206_v16 = vld [vmem:[#allocation2 + $0x178] sm:$0xff] }
 0x54b   :  { %4913 = vtanh.f32 %v5705_v38 }
 0x551   :  { %v4910_v43 = vpop.eup %4909 }
 0x552   :  { %v1196_v20 = vmul.f32 %v4910_v43, %v4908_v19  ;;  %v4912_v23 = vpop.eup %4911  ;;  %v1201_v19 = vld [vmem:[#allocation2 + $0x150] sm:$0xff] }
 0x554   :  { %1272 = vmatmul.mubr.f32.vlgmr.msra.gmra.mrb[20].mxu0 %v1196_v20  ;;  %1349 = vmatmul.mubr.f32.vlgmr.msra.gmra.mrb[20].mxu1 %v1196_v20 }
 0x555   :  { %v4914_v29 = vpop.eup %4913  ;;  %1277 = vmatprep.mubr.f32.mxu0 %v5343_v0  ;;  %1354 = vmatprep.mubr.f32.mxu1 %v5343_v0 }
 0x556   :  { %v1197_v35 = vmul.f32 %v4914_v29, %v4912_v23  ;;  %4110 = vmatpush1.bf16.msra.mxu0 %v5390_v8  ;;  %4142 = vmatpush1.bf16.msra.mxu1 %v5403_v25  ;;  %v1205_v29 = vld [vmem:[#allocation2 + $0x170] sm:$0xff] }
 0x557   :  { %4112 = vmatprep.subr.bf16.mxu0 %v5392_v9  ;;  %4144 = vmatprep.subr.bf16.mxu1 %v5413_v33 }
 0x558   :  { %1278 = vmatmul.mubr.f32.gmra.mrb[22].mxu0 %v1197_v35  ;;  %1355 = vmatmul.mubr.f32.gmra.mrb[22].mxu1 %v1197_v35 }
 0x559   :  { %1490 = vmatprep.mubr.f32.mxu0 %v5343_v0  ;;  %1567 = vmatprep.mubr.f32.mxu1 %v5343_v0 }
 0x55a   :  { %4114 = vmatpush1.bf16.msra.mxu0 %v5396_v14  ;;  %4146 = vmatpush1.bf16.msra.mxu1 %v5415_v37 }
 0x55b   :  { %4116 = vmatprep.subr.bf16.mxu0 %v5399_v17  ;;  %4148 = vmatprep.subr.bf16.mxu1 %v5421_v45 }
 0x55e   :  { %4118 = vmatpush1.bf16.msra.mxu0 %v5406_v26  ;;  %4150 = vmatpush1.bf16.msra.mxu1 %v5427_v48 }
 0x55f   :  { %4120 = vmatprep.subr.bf16.mxu0 %v5410_v30  ;;  %4152 = vmatprep.subr.bf16.mxu1 %v5430_v52 }
 0x562   :  { %4122 = vmatpush1.bf16.msra.mxu0 %v5419_v42  ;;  %4154 = vmatpush1.bf16.msra.mxu1 %v5439_v62 }
 0x563   :  { %4124 = vmatprep.subr.bf16.mxu0 %v5424_v46  ;;  %4156 = vmatprep.subr.bf16.mxu1 %v5442_v1 }
 0x566   :  { %4126 = vmatpush1.bf16.msra.mxu0 %v5433_v55  ;;  %4158 = vmatpush1.bf16.msra.mxu1 %v5451_v15 }
 0x567   :  { %4128 = vmatprep.subr.bf16.mxu0 %v5436_v58  ;;  %4160 = vmatprep.subr.bf16.mxu1 %v5454_v18 }
 0x56a   :  { %4130 = vmatpush1.bf16.msra.mxu0 %v5445_v7  ;;  %4162 = vmatpush1.bf16.msra.mxu1 %v5463_v31 }
 0x56b   :  { %4132 = vmatprep.subr.bf16.mxu0 %v5448_v10  ;;  %4164 = vmatprep.subr.bf16.mxu1 %v5466_v32 }
 0x56e   :  { %4134 = vmatpush1.bf16.msra.mxu0 %v5457_v24  ;;  %4166 = vmatpush1.bf16.msra.mxu1 %v5473_v40 }
 0x56f   :  { %4136 = vmatprep.subr.bf16.mxu0 %v5460_v27  ;;  %4168 = vmatprep.subr.bf16.mxu1 %v5476_v41 }
 0x572   :  { %4138 = vmatpush1.bf16.msra.mxu0 %v5469_v39  ;;  %4170 = vmatpush1.bf16.msra.mxu1 %v5480_v47 }
 0x573   :  { %4172 = vmatprep.subr.bf16.mxu0 %v5388_v4  ;;  %4204 = vmatprep.subr.bf16.mxu1 %v5401_v22 }
 0x627   :  { %v1273_v49 = vpop.f32.mrb[20].mxu0  ;;  %v1350_v57 = vpop.f32.mrb[20].mxu1 }
 0x628   :  { %v1361_v59 = vadd.f32 %v1273_v49, %v1199_v36  ;;  %v1275_v50 = vpop.f32.mrb[21].mxu0  ;;  %v1352_v54 = vpop.f32.mrb[21].mxu1  ;;  %v1363_v23 = vadd.f32 %v1350_v57, %v1201_v19 }
 0x629   :  { %v1362_v51 = vadd.f32 %v1275_v50, %v1200_v44  ;;  %v1364_v34 = vadd.f32 %v1352_v54, %v1202_v2 }
 0x62a   :  { %v3657_v56 = vmul.f32 -1.442695, %v1361_v59 }
 0x62b   :  { %v3659_v61 = vmul.f32 -1.442695, %v1362_v51  ;;  %v1279_v63 = vpop.f32.mrb[22].mxu0  ;;  %v1356_v11 = vpop.f32.mrb[22].mxu1  ;;  %v3661_v43 = vmul.f32 -1.442695, %v1364_v34 }
 0x62c   :  { %4915 = vpow2.f32 %v3657_v56  ;;  %v1365_v3 = vadd.f32 %v1279_v63, %v1203_v53  ;;  %v1281_v5 = vpop.f32.mrb[23].mxu0  ;;  %v1358_v6 = vpop.f32.mrb[23].mxu1  ;;  %v1367_v50 = vadd.f32 %v1356_v11, %v1205_v29 }
 0x62d   :  { %4917 = vpow2.f32 %v3659_v61  ;;  %v1366_v12 = vadd.f32 %v1281_v5, %v1204_v60  ;;  %v1368_v20 = vadd.f32 %v1358_v6, %v1206_v16 }
 0x62e   :  { %v3658_v28 = vmul.f32 -1.442695, %v1365_v3 }
 0x62f   :  { %v3660_v13 = vmul.f32 -1.442695, %v1366_v12  ;;  %v3662_v49 = vmul.f32 -1.442695, %v1368_v20 }
 0x630   :  { %4919 = vpow2.f32 %v3658_v28 }
 0x631   :  { %4921 = vpow2.f32 %v3660_v13 }
 0x632   :  { %4923 = vpow2.f32 %v3661_v43 }
 0x633   :  { %4925 = vtanh.f32 %v1363_v23 }
 0x636   :  { %v4916_v35 = vpop.eup %4915 }
 0x637   :  { %v4918_v36 = vpop.eup %4917  ;;  %v1375_v44 = vadd.f32 1.0, %v4916_v35 }
 0x638   :  { %v1387_v59 = vadd.f32 1.0, %v4918_v36 }
 0x639   :  { %4927 = vrcp.f32 %v1375_v44  ;;  %v1419_v44 = vld [vmem:[#allocation2 + $0x188] sm:$0xff] }
 0x63a   :  { %v4920_v51 = vpop.eup %4919  ;;  %4929 = vrcp.f32 %v1387_v59 }
 0x63b   :  { %v4922_v54 = vpop.eup %4921  ;;  %v1376_v53 = vadd.f32 1.0, %v4920_v51  ;;  %4931 = vpow2.f32 %v3662_v49 }
 0x63c   :  { %4933 = vtanh.f32 %v1367_v50  ;;  %v1388_v56 = vadd.f32 1.0, %v4922_v54  ;;  %v4924_v57 = vpop.eup %4923 }
 0x63d   :  { %4935 = vrcp.f32 %v1376_v53  ;;  %v4926_v60 = vpop.eup %4925  ;;  %v1401_v3 = vadd.f32 1.0, %v4924_v57 }
 0x63e   :  { %4937 = vrcp.f32 %v1388_v56  ;;  %v1422_v56 = vld [vmem:[#allocation2 + $0x1a0] sm:$0xff] }
 0x63f   :  { %4939 = vrcp.f32 %v1401_v3  ;;  %v1421_v3 = vld [vmem:[#allocation2 + $0x198] sm:$0xff] }
 0x643   :  { %v4928_v61 = vpop.eup %4927 }
 0x644   :  { %v4930_v63 = vpop.eup %4929  ;;  %v1409_v2 = vmul.f32 %v4928_v61, %v4926_v60  ;;  %v1423_v60 = vld [vmem:[#allocation2 + $0x1a8] sm:$0xff] }
 0x645   :  { %v4932_v5 = vpop.eup %4931  ;;  %v1407_v6 = vmul.f32 %v4930_v63, %v5701_v21 }
 0x646   :  { %v4934_v11 = vpop.eup %4933  ;;  %v1402_v16 = vadd.f32 1.0, %v4932_v5 }
 0x647   :  { %v4936_v12 = vpop.eup %4935  ;;  %v5745_v28 = vadd.f32 %v1409_v2, %v1407_v6 }
 0x648   :  { %v4938_v34 = vpop.eup %4937  ;;  %v1410_v13 = vmul.f32 %v4936_v12, %v4934_v11 }
 0x649   :  { %4941 = vtanh.f32 %v5745_v28  ;;  %v1408_v19 = vmul.f32 %v4938_v34, %v5705_v38  ;;  %v4940_v20 = vpop.eup %4939  ;;  %v1418_v38 = vld [vmem:[#allocation2 + $0x180] sm:$0xff] }
 0x64a   :  { %4943 = vrcp.f32 %v1402_v16 }
 0x64b   :  { %v5749_v43 = vadd.f32 %v1410_v13, %v1408_v19  ;;  %v1425_v19 = vld [vmem:[#allocation2 + $0x1b8] sm:$0xff] }
 0x64d   :  { %4945 = vtanh.f32 %v5749_v43 }
 0x653   :  { %v4942_v23 = vpop.eup %4941 }
 0x654   :  { %v1415_v21 = vmul.f32 %v4942_v23, %v4940_v20  ;;  %v4944_v29 = vpop.eup %4943  ;;  %v1420_v20 = vld [vmem:[#allocation2 + $0x190] sm:$0xff] }
 0x656   :  { %1491 = vmatmul.mubr.f32.vlgmr.msra.gmra.mrb[24].mxu0 %v1415_v21  ;;  %1568 = vmatmul.mubr.f32.vlgmr.msra.gmra.mrb[24].mxu1 %v1415_v21 }
 0x657   :  { %v4946_v35 = vpop.eup %4945  ;;  %1496 = vmatprep.mubr.f32.mxu0 %v5343_v0  ;;  %1573 = vmatprep.mubr.f32.mxu1 %v5343_v0 }
 0x658   :  { %v1416_v36 = vmul.f32 %v4946_v35, %v4944_v29  ;;  %4174 = vmatpush1.bf16.msra.mxu0 %v5390_v8  ;;  %4206 = vmatpush1.bf16.msra.mxu1 %v5403_v25  ;;  %v1424_v35 = vld [vmem:[#allocation2 + $0x1b0] sm:$0xff] }
 0x659   :  { %4176 = vmatprep.subr.bf16.mxu0 %v5392_v9  ;;  %4208 = vmatprep.subr.bf16.mxu1 %v5413_v33 }
 0x65a   :  { %1497 = vmatmul.mubr.f32.gmra.mrb[26].mxu0 %v1416_v36  ;;  %1574 = vmatmul.mubr.f32.gmra.mrb[26].mxu1 %v1416_v36 }
 0x65b   :  { %1709 = vmatprep.mubr.f32.mxu0 %v5343_v0  ;;  %1786 = vmatprep.mubr.f32.mxu1 %v5343_v0 }
 0x65c   :  { %4178 = vmatpush1.bf16.msra.mxu0 %v5396_v14  ;;  %4210 = vmatpush1.bf16.msra.mxu1 %v5415_v37 }
 0x65d   :  { %4180 = vmatprep.subr.bf16.mxu0 %v5399_v17  ;;  %4212 = vmatprep.subr.bf16.mxu1 %v5421_v45 }
 0x660   :  { %4182 = vmatpush1.bf16.msra.mxu0 %v5406_v26  ;;  %4214 = vmatpush1.bf16.msra.mxu1 %v5427_v48 }
 0x661   :  { %4184 = vmatprep.subr.bf16.mxu0 %v5410_v30  ;;  %4216 = vmatprep.subr.bf16.mxu1 %v5430_v52 }
 0x664   :  { %4186 = vmatpush1.bf16.msra.mxu0 %v5419_v42  ;;  %4218 = vmatpush1.bf16.msra.mxu1 %v5439_v62 }
 0x665   :  { %4188 = vmatprep.subr.bf16.mxu0 %v5424_v46  ;;  %4220 = vmatprep.subr.bf16.mxu1 %v5442_v1 }
 0x668   :  { %4190 = vmatpush1.bf16.msra.mxu0 %v5433_v55  ;;  %4222 = vmatpush1.bf16.msra.mxu1 %v5451_v15 }
 0x669   :  { %4192 = vmatprep.subr.bf16.mxu0 %v5436_v58  ;;  %4224 = vmatprep.subr.bf16.mxu1 %v5454_v18 }
 0x66c   :  { %4194 = vmatpush1.bf16.msra.mxu0 %v5445_v7  ;;  %4226 = vmatpush1.bf16.msra.mxu1 %v5463_v31 }
 0x66d   :  { %4196 = vmatprep.subr.bf16.mxu0 %v5448_v10  ;;  %4228 = vmatprep.subr.bf16.mxu1 %v5466_v32 }
 0x670   :  { %4198 = vmatpush1.bf16.msra.mxu0 %v5457_v24  ;;  %4230 = vmatpush1.bf16.msra.mxu1 %v5473_v40 }
 0x671   :  { %4200 = vmatprep.subr.bf16.mxu0 %v5460_v27  ;;  %4232 = vmatprep.subr.bf16.mxu1 %v5476_v41 }
 0x674   :  { %4202 = vmatpush1.bf16.msra.mxu0 %v5469_v39  ;;  %4234 = vmatpush1.bf16.msra.mxu1 %v5480_v47 }
 0x675   :  { %4236 = vmatprep.subr.bf16.mxu0 %v5388_v4  ;;  %4268 = vmatprep.subr.bf16.mxu1 %v5401_v22 }
 0x729   :  { %v1492_v49 = vpop.f32.mrb[24].mxu0  ;;  %v1569_v59 = vpop.f32.mrb[24].mxu1 }
 0x72a   :  { %v1580_v50 = vadd.f32 %v1492_v49, %v1418_v38  ;;  %v1494_v51 = vpop.f32.mrb[25].mxu0  ;;  %v1571_v54 = vpop.f32.mrb[25].mxu1  ;;  %v1582_v29 = vadd.f32 %v1569_v59, %v1420_v20 }
 0x72b   :  { %v1581_v53 = vadd.f32 %v1494_v51, %v1419_v44  ;;  %v1583_v13 = vadd.f32 %v1571_v54, %v1421_v3 }
 0x72c   :  { %v3663_v57 = vmul.f32 -1.442695, %v1580_v50 }
 0x72d   :  { %v3665_v61 = vmul.f32 -1.442695, %v1581_v53  ;;  %v1498_v63 = vpop.f32.mrb[26].mxu0  ;;  %v1575_v2 = vpop.f32.mrb[26].mxu1  ;;  %v3667_v23 = vmul.f32 -1.442695, %v1583_v13 }
 0x72e   :  { %4947 = vpow2.f32 %v3663_v57  ;;  %v1584_v5 = vadd.f32 %v1498_v63, %v1422_v56  ;;  %v1500_v6 = vpop.f32.mrb[27].mxu0  ;;  %v1577_v11 = vpop.f32.mrb[27].mxu1  ;;  %v1586_v51 = vadd.f32 %v1575_v2, %v1424_v35 }
 0x72f   :  { %4949 = vpow2.f32 %v3665_v61  ;;  %v1585_v12 = vadd.f32 %v1500_v6, %v1423_v60  ;;  %v1587_v21 = vadd.f32 %v1577_v11, %v1425_v19 }
 0x730   :  { %v3664_v34 = vmul.f32 -1.442695, %v1584_v5 }
 0x731   :  { %v3666_v16 = vmul.f32 -1.442695, %v1585_v12  ;;  %v3668_v49 = vmul.f32 -1.442695, %v1587_v21 }
 0x732   :  { %4951 = vpow2.f32 %v3664_v34 }
 0x733   :  { %4953 = vpow2.f32 %v3666_v16 }
 0x734   :  { %4955 = vpow2.f32 %v3667_v23 }
 0x735   :  { %4957 = vtanh.f32 %v1582_v29 }
 0x738   :  { %v4948_v36 = vpop.eup %4947 }
 0x739   :  { %v4950_v38 = vpop.eup %4949  ;;  %v1594_v44 = vadd.f32 1.0, %v4948_v36 }
 0x73a   :  { %v1606_v50 = vadd.f32 1.0, %v4950_v38 }
 0x73b   :  { %4959 = vrcp.f32 %v1594_v44  ;;  %v1638_v44 = vld [vmem:[#allocation2 + $0x1c8] sm:$0xff] }
 0x73c   :  { %v4952_v53 = vpop.eup %4951  ;;  %4961 = vrcp.f32 %v1606_v50 }
 0x73d   :  { %v4954_v54 = vpop.eup %4953  ;;  %v1595_v56 = vadd.f32 1.0, %v4952_v53  ;;  %4963 = vpow2.f32 %v3668_v49 }
 0x73e   :  { %4965 = vtanh.f32 %v1586_v51  ;;  %v1607_v57 = vadd.f32 1.0, %v4954_v54  ;;  %v4956_v59 = vpop.eup %4955 }
 0x73f   :  { %4967 = vrcp.f32 %v1595_v56  ;;  %v4958_v60 = vpop.eup %4957  ;;  %v1620_v5 = vadd.f32 1.0, %v4956_v59 }
 0x740   :  { %4969 = vrcp.f32 %v1607_v57  ;;  %v1641_v57 = vld [vmem:[#allocation2 + $0x1e0] sm:$0xff] }
 0x741   :  { %4971 = vrcp.f32 %v1620_v5  ;;  %v1640_v5 = vld [vmem:[#allocation2 + $0x1d8] sm:$0xff] }
 0x745   :  { %v4960_v61 = vpop.eup %4959 }
 0x746   :  { %v4962_v63 = vpop.eup %4961  ;;  %v1628_v3 = vmul.f32 %v4960_v61, %v4958_v60  ;;  %v1642_v60 = vld [vmem:[#allocation2 + $0x1e8] sm:$0xff] }
 0x747   :  { %v4964_v6 = vpop.eup %4963  ;;  %v1626_v11 = vmul.f32 %v4962_v63, %v5745_v28 }
 0x748   :  { %v4966_v2 = vpop.eup %4965  ;;  %v1621_v19 = vadd.f32 1.0, %v4964_v6 }
 0x749   :  { %v4968_v12 = vpop.eup %4967  ;;  %v5789_v34 = vadd.f32 %v1628_v3, %v1626_v11 }
 0x74a   :  { %v4970_v13 = vpop.eup %4969  ;;  %v1629_v16 = vmul.f32 %v4968_v12, %v4966_v2 }
 0x74b   :  { %4973 = vtanh.f32 %v5789_v34  ;;  %v1627_v20 = vmul.f32 %v4970_v13, %v5749_v43  ;;  %v4972_v21 = vpop.eup %4971  ;;  %v1637_v43 = vld [vmem:[#allocation2 + $0x1c0] sm:$0xff] }
 0x74c   :  { %4975 = vrcp.f32 %v1621_v19 }
 0x74d   :  { %v5793_v23 = vadd.f32 %v1629_v16, %v1627_v20  ;;  %v1644_v20 = vld [vmem:[#allocation2 + $0x1f8] sm:$0xff] }
 0x74f   :  { %4977 = vtanh.f32 %v5793_v23 }
 0x755   :  { %v4974_v29 = vpop.eup %4973 }
 0x756   :  { %v1634_v28 = vmul.f32 %v4974_v29, %v4972_v21  ;;  %v4976_v35 = vpop.eup %4975  ;;  %v1639_v21 = vld [vmem:[#allocation2 + $0x1d0] sm:$0xff] }
 0x758   :  { %1710 = vmatmul.mubr.f32.vlgmr.msra.gmra.mrb[28].mxu0 %v1634_v28  ;;  %1787 = vmatmul.mubr.f32.vlgmr.msra.gmra.mrb[28].mxu1 %v1634_v28 }
 0x759   :  { %v4978_v36 = vpop.eup %4977  ;;  %1715 = vmatprep.mubr.f32.mxu0 %v5343_v0  ;;  %1792 = vmatprep.mubr.f32.mxu1 %v5343_v0 }
 0x75a   :  { %v1635_v38 = vmul.f32 %v4978_v36, %v4976_v35  ;;  %4238 = vmatpush1.bf16.msra.mxu0 %v5390_v8  ;;  %4270 = vmatpush1.bf16.msra.mxu1 %v5403_v25  ;;  %v1643_v36 = vld [vmem:[#allocation2 + $0x1f0] sm:$0xff] }
 0x75b   :  { %4240 = vmatprep.subr.bf16.mxu0 %v5392_v9  ;;  %4272 = vmatprep.subr.bf16.mxu1 %v5413_v33 }
 0x75c   :  { %1716 = vmatmul.mubr.f32.gmra.mrb[30].mxu0 %v1635_v38  ;;  %1793 = vmatmul.mubr.f32.gmra.mrb[30].mxu1 %v1635_v38 }
 0x75d   :  { %1928 = vmatprep.mubr.f32.mxu0 %v5343_v0  ;;  %2005 = vmatprep.mubr.f32.mxu1 %v5343_v0 }
 0x75e   :  { %4242 = vmatpush1.bf16.msra.mxu0 %v5396_v14  ;;  %4274 = vmatpush1.bf16.msra.mxu1 %v5415_v37 }
 0x75f   :  { %4244 = vmatprep.subr.bf16.mxu0 %v5399_v17  ;;  %4276 = vmatprep.subr.bf16.mxu1 %v5421_v45 }
 0x762   :  { %4246 = vmatpush1.bf16.msra.mxu0 %v5406_v26  ;;  %4278 = vmatpush1.bf16.msra.mxu1 %v5427_v48 }
 0x763   :  { %4248 = vmatprep.subr.bf16.mxu0 %v5410_v30  ;;  %4280 = vmatprep.subr.bf16.mxu1 %v5430_v52 }
 0x766   :  { %4250 = vmatpush1.bf16.msra.mxu0 %v5419_v42  ;;  %4282 = vmatpush1.bf16.msra.mxu1 %v5439_v62 }
 0x767   :  { %4252 = vmatprep.subr.bf16.mxu0 %v5424_v46  ;;  %4284 = vmatprep.subr.bf16.mxu1 %v5442_v1 }
 0x76a   :  { %4254 = vmatpush1.bf16.msra.mxu0 %v5433_v55  ;;  %4286 = vmatpush1.bf16.msra.mxu1 %v5451_v15 }
 0x76b   :  { %4256 = vmatprep.subr.bf16.mxu0 %v5436_v58  ;;  %4288 = vmatprep.subr.bf16.mxu1 %v5454_v18 }
 0x76e   :  { %4258 = vmatpush1.bf16.msra.mxu0 %v5445_v7  ;;  %4290 = vmatpush1.bf16.msra.mxu1 %v5463_v31 }
 0x76f   :  { %4260 = vmatprep.subr.bf16.mxu0 %v5448_v10  ;;  %4292 = vmatprep.subr.bf16.mxu1 %v5466_v32 }
 0x772   :  { %4262 = vmatpush1.bf16.msra.mxu0 %v5457_v24  ;;  %4294 = vmatpush1.bf16.msra.mxu1 %v5473_v40 }
 0x773   :  { %4264 = vmatprep.subr.bf16.mxu0 %v5460_v27  ;;  %4296 = vmatprep.subr.bf16.mxu1 %v5476_v41 }
 0x776   :  { %4266 = vmatpush1.bf16.msra.mxu0 %v5469_v39  ;;  %4298 = vmatpush1.bf16.msra.mxu1 %v5480_v47 }
 0x777   :  { %4300 = vmatprep.subr.bf16.mxu0 %v5388_v4  ;;  %4332 = vmatprep.subr.bf16.mxu1 %v5401_v22 }
 0x82b   :  { %v1711_v49 = vpop.f32.mrb[28].mxu0  ;;  %v1788_v50 = vpop.f32.mrb[28].mxu1 }
 0x82c   :  { %v1799_v51 = vadd.f32 %v1711_v49, %v1637_v43  ;;  %v1713_v53 = vpop.f32.mrb[29].mxu0  ;;  %v1790_v54 = vpop.f32.mrb[29].mxu1  ;;  %v1801_v35 = vadd.f32 %v1788_v50, %v1639_v21 }
 0x82d   :  { %v1800_v56 = vadd.f32 %v1713_v53, %v1638_v44  ;;  %v1802_v16 = vadd.f32 %v1790_v54, %v1640_v5 }
 0x82e   :  { %v3669_v59 = vmul.f32 -1.442695, %v1799_v51 }
 0x82f   :  { %v3671_v61 = vmul.f32 -1.442695, %v1800_v56  ;;  %v1717_v63 = vpop.f32.mrb[30].mxu0  ;;  %v1794_v3 = vpop.f32.mrb[30].mxu1  ;;  %v3673_v29 = vmul.f32 -1.442695, %v1802_v16 }
 0x830   :  { %4979 = vpow2.f32 %v3669_v59  ;;  %v1803_v6 = vadd.f32 %v1717_v63, %v1641_v57  ;;  %v1719_v11 = vpop.f32.mrb[31].mxu0  ;;  %v1796_v2 = vpop.f32.mrb[31].mxu1  ;;  %v1805_v53 = vadd.f32 %v1794_v3, %v1643_v36 }
 0x831   :  { %4981 = vpow2.f32 %v3671_v61  ;;  %v1804_v12 = vadd.f32 %v1719_v11, %v1642_v60  ;;  %v1806_v28 = vadd.f32 %v1796_v2, %v1644_v20 }
 0x832   :  { %v3670_v13 = vmul.f32 -1.442695, %v1803_v6 }
 0x833   :  { %v3672_v19 = vmul.f32 -1.442695, %v1804_v12  ;;  %v3674_v49 = vmul.f32 -1.442695, %v1806_v28 }
 0x834   :  { %4983 = vpow2.f32 %v3670_v13 }
 0x835   :  { %4985 = vpow2.f32 %v3672_v19 }
 0x836   :  { %4987 = vpow2.f32 %v3673_v29 }
 0x837   :  { %4989 = vtanh.f32 %v1801_v35 }
 0x83a   :  { %v4980_v38 = vpop.eup %4979 }
 0x83b   :  { %v4982_v43 = vpop.eup %4981  ;;  %v1813_v44 = vadd.f32 1.0, %v4980_v38 }
 0x83c   :  { %v1825_v51 = vadd.f32 1.0, %v4982_v43 }
 0x83d   :  { %4991 = vrcp.f32 %v1813_v44  ;;  %v1857_v44 = vld [vmem:[#allocation2 + $0x208] sm:$0xff] }
 0x83e   :  { %v4984_v56 = vpop.eup %4983  ;;  %4993 = vrcp.f32 %v1825_v51 }
 0x83f   :  { %v4986_v54 = vpop.eup %4985  ;;  %v1814_v57 = vadd.f32 1.0, %v4984_v56  ;;  %4995 = vpow2.f32 %v3674_v49 }
 0x840   :  { %4997 = vtanh.f32 %v1805_v53  ;;  %v1826_v59 = vadd.f32 1.0, %v4986_v54  ;;  %v4988_v50 = vpop.eup %4987 }
 0x841   :  { %4999 = vrcp.f32 %v1814_v57  ;;  %v4990_v60 = vpop.eup %4989  ;;  %v1839_v6 = vadd.f32 1.0, %v4988_v50 }
 0x842   :  { %5001 = vrcp.f32 %v1826_v59  ;;  %v1860_v59 = vld [vmem:[#allocation2 + $0x220] sm:$0xff] }
 0x843   :  { %5003 = vrcp.f32 %v1839_v6  ;;  %v1859_v6 = vld [vmem:[#allocation2 + $0x218] sm:$0xff] }
 0x847   :  { %v4992_v61 = vpop.eup %4991 }
 0x848   :  { %v4994_v63 = vpop.eup %4993  ;;  %v1847_v5 = vmul.f32 %v4992_v61, %v4990_v60  ;;  %v1861_v60 = vld [vmem:[#allocation2 + $0x228] sm:$0xff] }
 0x849   :  { %v4996_v11 = vpop.eup %4995  ;;  %v1845_v2 = vmul.f32 %v4994_v63, %v5789_v34 }
 0x84a   :  { %v4998_v3 = vpop.eup %4997  ;;  %v1840_v20 = vadd.f32 1.0, %v4996_v11 }
 0x84b   :  { %v5000_v12 = vpop.eup %4999  ;;  %v5833_v13 = vadd.f32 %v1847_v5, %v1845_v2 }
 0x84c   :  { %v5002_v16 = vpop.eup %5001  ;;  %v1848_v19 = vmul.f32 %v5000_v12, %v4998_v3 }
 0x84d   :  { %5005 = vtanh.f32 %v5833_v13  ;;  %v1846_v21 = vmul.f32 %v5002_v16, %v5793_v23  ;;  %v5004_v28 = vpop.eup %5003  ;;  %v1856_v23 = vld [vmem:[#allocation2 + $0x200] sm:$0xff] }
 0x84e   :  { %5007 = vrcp.f32 %v1840_v20 }
 0x84f   :  { %v5837_v29 = vadd.f32 %v1848_v19, %v1846_v21  ;;  %v1863_v21 = vld [vmem:[#allocation2 + $0x238] sm:$0xff] }
 0x851   :  { %5009 = vtanh.f32 %v5837_v29 }
 0x857   :  { %v5006_v35 = vpop.eup %5005 }
 0x858   :  { %v1853_v34 = vmul.f32 %v5006_v35, %v5004_v28  ;;  %v5008_v36 = vpop.eup %5007  ;;  %v1858_v28 = vld [vmem:[#allocation2 + $0x210] sm:$0xff] }
 0x85a   :  { %1929 = vmatmul.mubr.f32.vlgmr.msra.gmra.mrb[32].mxu0 %v1853_v34  ;;  %2006 = vmatmul.mubr.f32.vlgmr.msra.gmra.mrb[32].mxu1 %v1853_v34 }
 0x85b   :  { %v5010_v38 = vpop.eup %5009  ;;  %1934 = vmatprep.mubr.f32.mxu0 %v5343_v0  ;;  %2011 = vmatprep.mubr.f32.mxu1 %v5343_v0 }
 0x85c   :  { %v1854_v43 = vmul.f32 %v5010_v38, %v5008_v36  ;;  %4302 = vmatpush1.bf16.msra.mxu0 %v5390_v8  ;;  %4334 = vmatpush1.bf16.msra.mxu1 %v5403_v25  ;;  %v1862_v38 = vld [vmem:[#allocation2 + $0x230] sm:$0xff] }
 0x85d   :  { %4304 = vmatprep.subr.bf16.mxu0 %v5392_v9  ;;  %4336 = vmatprep.subr.bf16.mxu1 %v5413_v33 }
 0x85e   :  { %1935 = vmatmul.mubr.f32.gmra.mrb[34].mxu0 %v1854_v43  ;;  %2012 = vmatmul.mubr.f32.gmra.mrb[34].mxu1 %v1854_v43 }
 0x85f   :  { %2147 = vmatprep.mubr.f32.mxu0 %v5343_v0  ;;  %2224 = vmatprep.mubr.f32.mxu1 %v5343_v0 }
 0x860   :  { %4306 = vmatpush1.bf16.msra.mxu0 %v5396_v14  ;;  %4338 = vmatpush1.bf16.msra.mxu1 %v5415_v37 }
 0x861   :  { %4308 = vmatprep.subr.bf16.mxu0 %v5399_v17  ;;  %4340 = vmatprep.subr.bf16.mxu1 %v5421_v45 }
 0x864   :  { %4310 = vmatpush1.bf16.msra.mxu0 %v5406_v26  ;;  %4342 = vmatpush1.bf16.msra.mxu1 %v5427_v48 }
 0x865   :  { %4312 = vmatprep.subr.bf16.mxu0 %v5410_v30  ;;  %4344 = vmatprep.subr.bf16.mxu1 %v5430_v52 }
 0x868   :  { %4314 = vmatpush1.bf16.msra.mxu0 %v5419_v42  ;;  %4346 = vmatpush1.bf16.msra.mxu1 %v5439_v62 }
 0x869   :  { %4316 = vmatprep.subr.bf16.mxu0 %v5424_v46  ;;  %4348 = vmatprep.subr.bf16.mxu1 %v5442_v1 }
 0x86c   :  { %4318 = vmatpush1.bf16.msra.mxu0 %v5433_v55  ;;  %4350 = vmatpush1.bf16.msra.mxu1 %v5451_v15 }
 0x86d   :  { %4320 = vmatprep.subr.bf16.mxu0 %v5436_v58  ;;  %4352 = vmatprep.subr.bf16.mxu1 %v5454_v18 }
 0x870   :  { %4322 = vmatpush1.bf16.msra.mxu0 %v5445_v7  ;;  %4354 = vmatpush1.bf16.msra.mxu1 %v5463_v31 }
 0x871   :  { %4324 = vmatprep.subr.bf16.mxu0 %v5448_v10  ;;  %4356 = vmatprep.subr.bf16.mxu1 %v5466_v32 }
 0x874   :  { %4326 = vmatpush1.bf16.msra.mxu0 %v5457_v24  ;;  %4358 = vmatpush1.bf16.msra.mxu1 %v5473_v40 }
 0x875   :  { %4328 = vmatprep.subr.bf16.mxu0 %v5460_v27  ;;  %4360 = vmatprep.subr.bf16.mxu1 %v5476_v41 }
 0x878   :  { %4330 = vmatpush1.bf16.msra.mxu0 %v5469_v39  ;;  %4362 = vmatpush1.bf16.msra.mxu1 %v5480_v47 }
 0x879   :  { %4364 = vmatprep.subr.bf16.mxu0 %v5388_v4  ;;  %4396 = vmatprep.subr.bf16.mxu1 %v5401_v22 }
 0x92d   :  { %v1930_v49 = vpop.f32.mrb[32].mxu0  ;;  %v2007_v51 = vpop.f32.mrb[32].mxu1 }
 0x92e   :  { %v2018_v53 = vadd.f32 %v1930_v49, %v1856_v23  ;;  %v1932_v56 = vpop.f32.mrb[33].mxu0  ;;  %v2009_v54 = vpop.f32.mrb[33].mxu1  ;;  %v2020_v36 = vadd.f32 %v2007_v51, %v1858_v28 }
 0x92f   :  { %v2019_v57 = vadd.f32 %v1932_v56, %v1857_v44  ;;  %v2021_v19 = vadd.f32 %v2009_v54, %v1859_v6 }
 0x930   :  { %v3675_v50 = vmul.f32 -1.442695, %v2018_v53 }
 0x931   :  { %v3677_v61 = vmul.f32 -1.442695, %v2019_v57  ;;  %v1936_v63 = vpop.f32.mrb[34].mxu0  ;;  %v2013_v5 = vpop.f32.mrb[34].mxu1  ;;  %v3679_v35 = vmul.f32 -1.442695, %v2021_v19 }
 0x932   :  { %5011 = vpow2.f32 %v3675_v50  ;;  %v2022_v11 = vadd.f32 %v1936_v63, %v1860_v59  ;;  %v1938_v2 = vpop.f32.mrb[35].mxu0  ;;  %v2015_v3 = vpop.f32.mrb[35].mxu1  ;;  %v2024_v56 = vadd.f32 %v2013_v5, %v1862_v38 }
 0x933   :  { %5013 = vpow2.f32 %v3677_v61  ;;  %v2023_v12 = vadd.f32 %v1938_v2, %v1861_v60  ;;  %v2025_v34 = vadd.f32 %v2015_v3, %v1863_v21 }
 0x934   :  { %v3676_v16 = vmul.f32 -1.442695, %v2022_v11 }
 0x935   :  { %v3678_v20 = vmul.f32 -1.442695, %v2023_v12  ;;  %v3680_v49 = vmul.f32 -1.442695, %v2025_v34 }
 0x936   :  { %5015 = vpow2.f32 %v3676_v16 }
 0x937   :  { %5017 = vpow2.f32 %v3678_v20 }
 0x938   :  { %5019 = vpow2.f32 %v3679_v35 }
 0x939   :  { %5021 = vtanh.f32 %v2020_v36 }
 0x93c   :  { %v5012_v43 = vpop.eup %5011 }
 0x93d   :  { %v5014_v23 = vpop.eup %5013  ;;  %v2032_v44 = vadd.f32 1.0, %v5012_v43 }
 0x93e   :  { %v2044_v53 = vadd.f32 1.0, %v5014_v23 }
 0x93f   :  { %5023 = vrcp.f32 %v2032_v44  ;;  %v2076_v44 = vld [vmem:[#allocation2 + $0x248] sm:$0xff] }
 0x940   :  { %v5016_v57 = vpop.eup %5015  ;;  %5025 = vrcp.f32 %v2044_v53 }
 0x941   :  { %v5018_v54 = vpop.eup %5017  ;;  %v2033_v59 = vadd.f32 1.0, %v5016_v57  ;;  %5027 = vpow2.f32 %v3680_v49 }
 0x942   :  { %5029 = vtanh.f32 %v2024_v56  ;;  %v2045_v50 = vadd.f32 1.0, %v5018_v54  ;;  %v5020_v51 = vpop.eup %5019 }
 0x943   :  { %5031 = vrcp.f32 %v2033_v59  ;;  %v5022_v60 = vpop.eup %5021  ;;  %v2058_v11 = vadd.f32 1.0, %v5020_v51 }
 0x944   :  { %5033 = vrcp.f32 %v2045_v50  ;;  %v2079_v50 = vld [vmem:[#allocation2 + $0x260] sm:$0xff] }
 0x945   :  { %5035 = vrcp.f32 %v2058_v11  ;;  %v2078_v11 = vld [vmem:[#allocation2 + $0x258] sm:$0xff] }
 0x949   :  { %v5024_v61 = vpop.eup %5023 }
 0x94a   :  { %v5026_v63 = vpop.eup %5025  ;;  %v2066_v6 = vmul.f32 %v5024_v61, %v5022_v60  ;;  %v2080_v60 = vld [vmem:[#allocation2 + $0x268] sm:$0xff] }
 0x94b   :  { %v5028_v2 = vpop.eup %5027  ;;  %v2064_v3 = vmul.f32 %v5026_v63, %v5833_v13 }
 0x94c   :  { %v5030_v5 = vpop.eup %5029  ;;  %v2059_v21 = vadd.f32 1.0, %v5028_v2 }
 0x94d   :  { %v5032_v12 = vpop.eup %5031  ;;  %v5877_v16 = vadd.f32 %v2066_v6, %v2064_v3 }
 0x94e   :  { %v5034_v19 = vpop.eup %5033  ;;  %v2067_v20 = vmul.f32 %v5032_v12, %v5030_v5 }
 0x94f   :  { %5037 = vtanh.f32 %v5877_v16  ;;  %v2065_v28 = vmul.f32 %v5034_v19, %v5837_v29  ;;  %v5036_v34 = vpop.eup %5035  ;;  %v2075_v29 = vld [vmem:[#allocation2 + $0x240] sm:$0xff] }
 0x950   :  { %5039 = vrcp.f32 %v2059_v21 }
 0x951   :  { %v5881_v35 = vadd.f32 %v2067_v20, %v2065_v28  ;;  %v2082_v28 = vld [vmem:[#allocation2 + $0x278] sm:$0xff] }
 0x953   :  { %5041 = vtanh.f32 %v5881_v35 }
 0x959   :  { %v5038_v36 = vpop.eup %5037 }
 0x95a   :  { %v2072_v13 = vmul.f32 %v5038_v36, %v5036_v34  ;;  %v5040_v38 = vpop.eup %5039  ;;  %v2077_v34 = vld [vmem:[#allocation2 + $0x250] sm:$0xff] }
 0x95c   :  { %2148 = vmatmul.mubr.f32.vlgmr.msra.gmra.mrb[36].mxu0 %v2072_v13  ;;  %2225 = vmatmul.mubr.f32.vlgmr.msra.gmra.mrb[36].mxu1 %v2072_v13 }
 0x95d   :  { %v5042_v43 = vpop.eup %5041  ;;  %2153 = vmatprep.mubr.f32.mxu0 %v5343_v0  ;;  %2230 = vmatprep.mubr.f32.mxu1 %v5343_v0 }
 0x95e   :  { %v2073_v23 = vmul.f32 %v5042_v43, %v5040_v38  ;;  %4366 = vmatpush1.bf16.msra.mxu0 %v5390_v8  ;;  %4398 = vmatpush1.bf16.msra.mxu1 %v5403_v25  ;;  %v2081_v43 = vld [vmem:[#allocation2 + $0x270] sm:$0xff] }
 0x95f   :  { %4368 = vmatprep.subr.bf16.mxu0 %v5392_v9  ;;  %4400 = vmatprep.subr.bf16.mxu1 %v5413_v33 }
 0x960   :  { %2154 = vmatmul.mubr.f32.gmra.mrb[38].mxu0 %v2073_v23  ;;  %2231 = vmatmul.mubr.f32.gmra.mrb[38].mxu1 %v2073_v23 }
 0x961   :  { %2366 = vmatprep.mubr.f32.mxu0 %v5343_v0  ;;  %2443 = vmatprep.mubr.f32.mxu1 %v5343_v0 }
 0x962   :  { %4370 = vmatpush1.bf16.msra.mxu0 %v5396_v14  ;;  %4402 = vmatpush1.bf16.msra.mxu1 %v5415_v37 }
 0x963   :  { %4372 = vmatprep.subr.bf16.mxu0 %v5399_v17  ;;  %4404 = vmatprep.subr.bf16.mxu1 %v5421_v45 }
 0x966   :  { %4374 = vmatpush1.bf16.msra.mxu0 %v5406_v26  ;;  %4406 = vmatpush1.bf16.msra.mxu1 %v5427_v48 }
 0x967   :  { %4376 = vmatprep.subr.bf16.mxu0 %v5410_v30  ;;  %4408 = vmatprep.subr.bf16.mxu1 %v5430_v52 }
 0x96a   :  { %4378 = vmatpush1.bf16.msra.mxu0 %v5419_v42  ;;  %4410 = vmatpush1.bf16.msra.mxu1 %v5439_v62 }
 0x96b   :  { %4380 = vmatprep.subr.bf16.mxu0 %v5424_v46  ;;  %4412 = vmatprep.subr.bf16.mxu1 %v5442_v1 }
 0x96e   :  { %4382 = vmatpush1.bf16.msra.mxu0 %v5433_v55  ;;  %4414 = vmatpush1.bf16.msra.mxu1 %v5451_v15 }
 0x96f   :  { %4384 = vmatprep.subr.bf16.mxu0 %v5436_v58  ;;  %4416 = vmatprep.subr.bf16.mxu1 %v5454_v18 }
 0x972   :  { %4386 = vmatpush1.bf16.msra.mxu0 %v5445_v7  ;;  %4418 = vmatpush1.bf16.msra.mxu1 %v5463_v31 }
 0x973   :  { %4388 = vmatprep.subr.bf16.mxu0 %v5448_v10  ;;  %4420 = vmatprep.subr.bf16.mxu1 %v5466_v32 }
 0x976   :  { %4390 = vmatpush1.bf16.msra.mxu0 %v5457_v24  ;;  %4422 = vmatpush1.bf16.msra.mxu1 %v5473_v40 }
 0x977   :  { %4392 = vmatprep.subr.bf16.mxu0 %v5460_v27  ;;  %4424 = vmatprep.subr.bf16.mxu1 %v5476_v41 }
 0x97a   :  { %4394 = vmatpush1.bf16.msra.mxu0 %v5469_v39  ;;  %4426 = vmatpush1.bf16.msra.mxu1 %v5480_v47 }
 0x97b   :  { %4428 = vmatprep.subr.bf16.mxu0 %v5388_v4  ;;  %4460 = vmatprep.subr.bf16.mxu1 %v5401_v22 }
 0xa2f   :  { %v2149_v49 = vpop.f32.mrb[36].mxu0  ;;  %v2226_v53 = vpop.f32.mrb[36].mxu1 }
 0xa30   :  { %v2237_v56 = vadd.f32 %v2149_v49, %v2075_v29  ;;  %v2151_v57 = vpop.f32.mrb[37].mxu0  ;;  %v2228_v54 = vpop.f32.mrb[37].mxu1  ;;  %v2239_v38 = vadd.f32 %v2226_v53, %v2077_v34 }
 0xa31   :  { %v2238_v59 = vadd.f32 %v2151_v57, %v2076_v44  ;;  %v2240_v20 = vadd.f32 %v2228_v54, %v2078_v11 }
 0xa32   :  { %v3681_v51 = vmul.f32 -1.442695, %v2237_v56 }
 0xa33   :  { %v3683_v61 = vmul.f32 -1.442695, %v2238_v59  ;;  %v2155_v63 = vpop.f32.mrb[38].mxu0  ;;  %v2232_v6 = vpop.f32.mrb[38].mxu1  ;;  %v3685_v36 = vmul.f32 -1.442695, %v2240_v20 }
 0xa34   :  { %5043 = vpow2.f32 %v3681_v51  ;;  %v2241_v2 = vadd.f32 %v2155_v63, %v2079_v50  ;;  %v2157_v3 = vpop.f32.mrb[39].mxu0  ;;  %v2234_v5 = vpop.f32.mrb[39].mxu1  ;;  %v2243_v57 = vadd.f32 %v2232_v6, %v2081_v43 }
 0xa35   :  { %5045 = vpow2.f32 %v3683_v61  ;;  %v2242_v12 = vadd.f32 %v2157_v3, %v2080_v60  ;;  %v2244_v13 = vadd.f32 %v2234_v5, %v2082_v28 }
 0xa36   :  { %v3682_v19 = vmul.f32 -1.442695, %v2241_v2 }
 0xa37   :  { %v3684_v21 = vmul.f32 -1.442695, %v2242_v12  ;;  %v3686_v49 = vmul.f32 -1.442695, %v2244_v13 }
 0xa38   :  { %5047 = vpow2.f32 %v3682_v19 }
 0xa39   :  { %5049 = vpow2.f32 %v3684_v21 }
 0xa3a   :  { %5051 = vpow2.f32 %v3685_v36 }
 0xa3b   :  { %5053 = vtanh.f32 %v2239_v38 }
 0xa3e   :  { %v5044_v23 = vpop.eup %5043 }
 0xa3f   :  { %v5046_v29 = vpop.eup %5045  ;;  %v2251_v44 = vadd.f32 1.0, %v5044_v23 }
 0xa40   :  { %v2263_v56 = vadd.f32 1.0, %v5046_v29 }
 0xa41   :  { %5055 = vrcp.f32 %v2251_v44  ;;  %v2295_v44 = vld [vmem:[#allocation2 + $0x288] sm:$0xff] }
 0xa42   :  { %v5048_v59 = vpop.eup %5047  ;;  %5057 = vrcp.f32 %v2263_v56 }
 0xa43   :  { %v5050_v54 = vpop.eup %5049  ;;  %v2252_v50 = vadd.f32 1.0, %v5048_v59  ;;  %5059 = vpow2.f32 %v3686_v49 }
 0xa44   :  { %5061 = vtanh.f32 %v2243_v57  ;;  %v2264_v51 = vadd.f32 1.0, %v5050_v54  ;;  %v5052_v53 = vpop.eup %5051 }
 0xa45   :  { %5063 = vrcp.f32 %v2252_v50  ;;  %v5054_v60 = vpop.eup %5053  ;;  %v2277_v2 = vadd.f32 1.0, %v5052_v53 }
 0xa46   :  { %5065 = vrcp.f32 %v2264_v51  ;;  %v2298_v51 = vld [vmem:[#allocation2 + $0x2a0] sm:$0xff] }
 0xa47   :  { %5067 = vrcp.f32 %v2277_v2  ;;  %v2297_v2 = vld [vmem:[#allocation2 + $0x298] sm:$0xff] }
 0xa4b   :  { %v5056_v61 = vpop.eup %5055 }
 0xa4c   :  { %v5058_v63 = vpop.eup %5057  ;;  %v2285_v11 = vmul.f32 %v5056_v61, %v5054_v60  ;;  %v2299_v60 = vld [vmem:[#allocation2 + $0x2a8] sm:$0xff] }
 0xa4d   :  { %v5060_v3 = vpop.eup %5059  ;;  %v2283_v5 = vmul.f32 %v5058_v63, %v5877_v16 }
 0xa4e   :  { %v5062_v6 = vpop.eup %5061  ;;  %v2278_v28 = vadd.f32 1.0, %v5060_v3 }
 0xa4f   :  { %v5064_v12 = vpop.eup %5063  ;;  %v5921_v19 = vadd.f32 %v2285_v11, %v2283_v5 }
 0xa50   :  { %v5066_v20 = vpop.eup %5065  ;;  %v2286_v21 = vmul.f32 %v5064_v12, %v5062_v6 }
 0xa51   :  { %5069 = vtanh.f32 %v5921_v19  ;;  %v2284_v34 = vmul.f32 %v5066_v20, %v5881_v35  ;;  %v5068_v13 = vpop.eup %5067  ;;  %v2294_v35 = vld [vmem:[#allocation2 + $0x280] sm:$0xff] }
 0xa52   :  { %5071 = vrcp.f32 %v2278_v28 }
 0xa53   :  { %v5925_v36 = vadd.f32 %v2286_v21, %v2284_v34  ;;  %v2301_v34 = vld [vmem:[#allocation2 + $0x2b8] sm:$0xff] }
 0xa55   :  { %5073 = vtanh.f32 %v5925_v36 }
 0xa5b   :  { %v5070_v38 = vpop.eup %5069 }
 0xa5c   :  { %v2291_v16 = vmul.f32 %v5070_v38, %v5068_v13  ;;  %v5072_v43 = vpop.eup %5071  ;;  %v2296_v13 = vld [vmem:[#allocation2 + $0x290] sm:$0xff] }
 0xa5e   :  { %2367 = vmatmul.mubr.f32.vlgmr.msra.gmra.mrb[40].mxu0 %v2291_v16  ;;  %2444 = vmatmul.mubr.f32.vlgmr.msra.gmra.mrb[40].mxu1 %v2291_v16 }
 0xa5f   :  { %v5074_v23 = vpop.eup %5073  ;;  %2372 = vmatprep.mubr.f32.mxu0 %v5343_v0  ;;  %2449 = vmatprep.mubr.f32.mxu1 %v5343_v0 }
 0xa60   :  { %v2292_v29 = vmul.f32 %v5074_v23, %v5072_v43  ;;  %4430 = vmatpush1.bf16.msra.mxu0 %v5390_v8  ;;  %4462 = vmatpush1.bf16.msra.mxu1 %v5403_v25  ;;  %v2300_v23 = vld [vmem:[#allocation2 + $0x2b0] sm:$0xff] }
 0xa61   :  { %4432 = vmatprep.subr.bf16.mxu0 %v5392_v9  ;;  %4464 = vmatprep.subr.bf16.mxu1 %v5413_v33 }
 0xa62   :  { %2373 = vmatmul.mubr.f32.gmra.mrb[42].mxu0 %v2292_v29  ;;  %2450 = vmatmul.mubr.f32.gmra.mrb[42].mxu1 %v2292_v29 }
 0xa63   :  { %2585 = vmatprep.mubr.f32.mxu0 %v5343_v0  ;;  %2662 = vmatprep.mubr.f32.mxu1 %v5343_v0 }
 0xa64   :  { %4434 = vmatpush1.bf16.msra.mxu0 %v5396_v14  ;;  %4466 = vmatpush1.bf16.msra.mxu1 %v5415_v37 }
 0xa65   :  { %4436 = vmatprep.subr.bf16.mxu0 %v5399_v17  ;;  %4468 = vmatprep.subr.bf16.mxu1 %v5421_v45 }
 0xa68   :  { %4438 = vmatpush1.bf16.msra.mxu0 %v5406_v26  ;;  %4470 = vmatpush1.bf16.msra.mxu1 %v5427_v48 }
 0xa69   :  { %4440 = vmatprep.subr.bf16.mxu0 %v5410_v30  ;;  %4472 = vmatprep.subr.bf16.mxu1 %v5430_v52 }
 0xa6c   :  { %4442 = vmatpush1.bf16.msra.mxu0 %v5419_v42  ;;  %4474 = vmatpush1.bf16.msra.mxu1 %v5439_v62 }
 0xa6d   :  { %4444 = vmatprep.subr.bf16.mxu0 %v5424_v46  ;;  %4476 = vmatprep.subr.bf16.mxu1 %v5442_v1 }
 0xa70   :  { %4446 = vmatpush1.bf16.msra.mxu0 %v5433_v55  ;;  %4478 = vmatpush1.bf16.msra.mxu1 %v5451_v15 }
 0xa71   :  { %4448 = vmatprep.subr.bf16.mxu0 %v5436_v58  ;;  %4480 = vmatprep.subr.bf16.mxu1 %v5454_v18 }
 0xa74   :  { %4450 = vmatpush1.bf16.msra.mxu0 %v5445_v7  ;;  %4482 = vmatpush1.bf16.msra.mxu1 %v5463_v31 }
 0xa75   :  { %4452 = vmatprep.subr.bf16.mxu0 %v5448_v10  ;;  %4484 = vmatprep.subr.bf16.mxu1 %v5466_v32 }
 0xa78   :  { %4454 = vmatpush1.bf16.msra.mxu0 %v5457_v24  ;;  %4486 = vmatpush1.bf16.msra.mxu1 %v5473_v40 }
 0xa79   :  { %4456 = vmatprep.subr.bf16.mxu0 %v5460_v27  ;;  %4488 = vmatprep.subr.bf16.mxu1 %v5476_v41 }
 0xa7c   :  { %4458 = vmatpush1.bf16.msra.mxu0 %v5469_v39  ;;  %4490 = vmatpush1.bf16.msra.mxu1 %v5480_v47 }
 0xa7d   :  { %4492 = vmatprep.subr.bf16.mxu0 %v5388_v4  ;;  %4524 = vmatprep.subr.bf16.mxu1 %v5401_v22 }
 0xb31   :  { %v2368_v49 = vpop.f32.mrb[40].mxu0  ;;  %v2445_v56 = vpop.f32.mrb[40].mxu1 }
 0xb32   :  { %v2456_v57 = vadd.f32 %v2368_v49, %v2294_v35  ;;  %v2370_v59 = vpop.f32.mrb[41].mxu0  ;;  %v2447_v54 = vpop.f32.mrb[41].mxu1  ;;  %v2458_v43 = vadd.f32 %v2445_v56, %v2296_v13 }
 0xb33   :  { %v2457_v50 = vadd.f32 %v2370_v59, %v2295_v44  ;;  %v2459_v21 = vadd.f32 %v2447_v54, %v2297_v2 }
 0xb34   :  { %v3687_v53 = vmul.f32 -1.442695, %v2456_v57 }
 0xb35   :  { %v3689_v61 = vmul.f32 -1.442695, %v2457_v50  ;;  %v2374_v63 = vpop.f32.mrb[42].mxu0  ;;  %v2451_v11 = vpop.f32.mrb[42].mxu1  ;;  %v3691_v38 = vmul.f32 -1.442695, %v2459_v21 }
 0xb36   :  { %5075 = vpow2.f32 %v3687_v53  ;;  %v2460_v3 = vadd.f32 %v2374_v63, %v2298_v51  ;;  %v2376_v5 = vpop.f32.mrb[43].mxu0  ;;  %v2453_v6 = vpop.f32.mrb[43].mxu1  ;;  %v2462_v59 = vadd.f32 %v2451_v11, %v2300_v23 }
 0xb37   :  { %5077 = vpow2.f32 %v3689_v61  ;;  %v2461_v12 = vadd.f32 %v2376_v5, %v2299_v60  ;;  %v2463_v16 = vadd.f32 %v2453_v6, %v2301_v34 }
 0xb38   :  { %v3688_v20 = vmul.f32 -1.442695, %v2460_v3 }
 0xb39   :  { %v3690_v28 = vmul.f32 -1.442695, %v2461_v12  ;;  %v3692_v49 = vmul.f32 -1.442695, %v2463_v16 }
 0xb3a   :  { %5079 = vpow2.f32 %v3688_v20 }
 0xb3b   :  { %5081 = vpow2.f32 %v3690_v28 }
 0xb3c   :  { %5083 = vpow2.f32 %v3691_v38 }
 0xb3d   :  { %5085 = vtanh.f32 %v2458_v43 }
 0xb40   :  { %v5076_v29 = vpop.eup %5075 }
 0xb41   :  { %v5078_v35 = vpop.eup %5077  ;;  %v2470_v44 = vadd.f32 1.0, %v5076_v29 }
 0xb42   :  { %v2482_v57 = vadd.f32 1.0, %v5078_v35 }
 0xb43   :  { %5087 = vrcp.f32 %v2470_v44  ;;  %v2514_v44 = vld [vmem:[#allocation2 + $0x2c8] sm:$0xff] }
 0xb44   :  { %v5080_v50 = vpop.eup %5079  ;;  %5089 = vrcp.f32 %v2482_v57 }
 0xb45   :  { %v5082_v54 = vpop.eup %5081  ;;  %v2471_v51 = vadd.f32 1.0, %v5080_v50  ;;  %5091 = vpow2.f32 %v3692_v49 }
 0xb46   :  { %5093 = vtanh.f32 %v2462_v59  ;;  %v2483_v53 = vadd.f32 1.0, %v5082_v54  ;;  %v5084_v56 = vpop.eup %5083 }
 0xb47   :  { %5095 = vrcp.f32 %v2471_v51  ;;  %v5086_v60 = vpop.eup %5085  ;;  %v2496_v3 = vadd.f32 1.0, %v5084_v56 }
 0xb48   :  { %5097 = vrcp.f32 %v2483_v53  ;;  %v2517_v53 = vld [vmem:[#allocation2 + $0x2e0] sm:$0xff] }
 0xb49   :  { %5099 = vrcp.f32 %v2496_v3  ;;  %v2516_v3 = vld [vmem:[#allocation2 + $0x2d8] sm:$0xff] }
 0xb4d   :  { %v5088_v61 = vpop.eup %5087 }
 0xb4e   :  { %v5090_v63 = vpop.eup %5089  ;;  %v2504_v2 = vmul.f32 %v5088_v61, %v5086_v60  ;;  %v2518_v60 = vld [vmem:[#allocation2 + $0x2e8] sm:$0xff] }
 0xb4f   :  { %v5092_v5 = vpop.eup %5091  ;;  %v2502_v6 = vmul.f32 %v5090_v63, %v5921_v19 }
 0xb50   :  { %v5094_v11 = vpop.eup %5093  ;;  %v2497_v34 = vadd.f32 1.0, %v5092_v5 }
 0xb51   :  { %v5096_v12 = vpop.eup %5095  ;;  %v5965_v20 = vadd.f32 %v2504_v2, %v2502_v6 }
 0xb52   :  { %v5098_v21 = vpop.eup %5097  ;;  %v2505_v28 = vmul.f32 %v5096_v12, %v5094_v11 }
 0xb53   :  { %5101 = vtanh.f32 %v5965_v20  ;;  %v2503_v13 = vmul.f32 %v5098_v21, %v5925_v36  ;;  %v5100_v16 = vpop.eup %5099  ;;  %v2513_v36 = vld [vmem:[#allocation2 + $0x2c0] sm:$0xff] }
 0xb54   :  { %5103 = vrcp.f32 %v2497_v34 }
 0xb55   :  { %v5969_v38 = vadd.f32 %v2505_v28, %v2503_v13  ;;  %v2520_v13 = vld [vmem:[#allocation2 + $0x2f8] sm:$0xff] }
 0xb57   :  { %5105 = vtanh.f32 %v5969_v38 }
 0xb5d   :  { %v5102_v43 = vpop.eup %5101 }
 0xb5e   :  { %v2510_v19 = vmul.f32 %v5102_v43, %v5100_v16  ;;  %v5104_v23 = vpop.eup %5103  ;;  %v2515_v16 = vld [vmem:[#allocation2 + $0x2d0] sm:$0xff] }
 0xb60   :  { %2586 = vmatmul.mubr.f32.vlgmr.msra.gmra.mrb[44].mxu0 %v2510_v19  ;;  %2663 = vmatmul.mubr.f32.vlgmr.msra.gmra.mrb[44].mxu1 %v2510_v19 }
 0xb61   :  { %v5106_v29 = vpop.eup %5105  ;;  %2591 = vmatprep.mubr.f32.mxu0 %v5343_v0  ;;  %2668 = vmatprep.mubr.f32.mxu1 %v5343_v0 }
 0xb62   :  { %v2511_v35 = vmul.f32 %v5106_v29, %v5104_v23  ;;  %4494 = vmatpush1.bf16.msra.mxu0 %v5390_v8  ;;  %4526 = vmatpush1.bf16.msra.mxu1 %v5403_v25  ;;  %v2519_v29 = vld [vmem:[#allocation2 + $0x2f0] sm:$0xff] }
 0xb63   :  { %4496 = vmatprep.subr.bf16.mxu0 %v5392_v9  ;;  %4528 = vmatprep.subr.bf16.mxu1 %v5413_v33 }
 0xb64   :  { %2592 = vmatmul.mubr.f32.gmra.mrb[46].mxu0 %v2511_v35  ;;  %2669 = vmatmul.mubr.f32.gmra.mrb[46].mxu1 %v2511_v35 }
 0xb65   :  { %2804 = vmatprep.mubr.f32.mxu0 %v5343_v0  ;;  %2881 = vmatprep.mubr.f32.mxu1 %v5343_v0 }
 0xb66   :  { %4498 = vmatpush1.bf16.msra.mxu0 %v5396_v14  ;;  %4530 = vmatpush1.bf16.msra.mxu1 %v5415_v37 }
 0xb67   :  { %4500 = vmatprep.subr.bf16.mxu0 %v5399_v17  ;;  %4532 = vmatprep.subr.bf16.mxu1 %v5421_v45 }
 0xb6a   :  { %4502 = vmatpush1.bf16.msra.mxu0 %v5406_v26  ;;  %4534 = vmatpush1.bf16.msra.mxu1 %v5427_v48 }
 0xb6b   :  { %4504 = vmatprep.subr.bf16.mxu0 %v5410_v30  ;;  %4536 = vmatprep.subr.bf16.mxu1 %v5430_v52 }
 0xb6e   :  { %4506 = vmatpush1.bf16.msra.mxu0 %v5419_v42  ;;  %4538 = vmatpush1.bf16.msra.mxu1 %v5439_v62 }
 0xb6f   :  { %4508 = vmatprep.subr.bf16.mxu0 %v5424_v46  ;;  %4540 = vmatprep.subr.bf16.mxu1 %v5442_v1 }
 0xb72   :  { %4510 = vmatpush1.bf16.msra.mxu0 %v5433_v55  ;;  %4542 = vmatpush1.bf16.msra.mxu1 %v5451_v15 }
 0xb73   :  { %4512 = vmatprep.subr.bf16.mxu0 %v5436_v58  ;;  %4544 = vmatprep.subr.bf16.mxu1 %v5454_v18 }
 0xb76   :  { %4514 = vmatpush1.bf16.msra.mxu0 %v5445_v7  ;;  %4546 = vmatpush1.bf16.msra.mxu1 %v5463_v31 }
 0xb77   :  { %4516 = vmatprep.subr.bf16.mxu0 %v5448_v10  ;;  %4548 = vmatprep.subr.bf16.mxu1 %v5466_v32 }
 0xb7a   :  { %4518 = vmatpush1.bf16.msra.mxu0 %v5457_v24  ;;  %4550 = vmatpush1.bf16.msra.mxu1 %v5473_v40 }
 0xb7b   :  { %4520 = vmatprep.subr.bf16.mxu0 %v5460_v27  ;;  %4552 = vmatprep.subr.bf16.mxu1 %v5476_v41 }
 0xb7e   :  { %4522 = vmatpush1.bf16.msra.mxu0 %v5469_v39  ;;  %4554 = vmatpush1.bf16.msra.mxu1 %v5480_v47 }
 0xb7f   :  { %4556 = vmatprep.subr.bf16.mxu0 %v5388_v4  ;;  %4588 = vmatprep.subr.bf16.mxu1 %v5401_v22 }
 0xc33   :  { %v2587_v49 = vpop.f32.mrb[44].mxu0  ;;  %v2664_v57 = vpop.f32.mrb[44].mxu1 }
 0xc34   :  { %v2675_v59 = vadd.f32 %v2587_v49, %v2513_v36  ;;  %v2589_v50 = vpop.f32.mrb[45].mxu0  ;;  %v2666_v54 = vpop.f32.mrb[45].mxu1  ;;  %v2677_v23 = vadd.f32 %v2664_v57, %v2515_v16 }
 0xc35   :  { %v2676_v51 = vadd.f32 %v2589_v50, %v2514_v44  ;;  %v2678_v28 = vadd.f32 %v2666_v54, %v2516_v3 }
 0xc36   :  { %v3693_v56 = vmul.f32 -1.442695, %v2675_v59 }
 0xc37   :  { %v3695_v61 = vmul.f32 -1.442695, %v2676_v51  ;;  %v2593_v63 = vpop.f32.mrb[46].mxu0  ;;  %v2670_v2 = vpop.f32.mrb[46].mxu1  ;;  %v3697_v43 = vmul.f32 -1.442695, %v2678_v28 }
 0xc38   :  { %5107 = vpow2.f32 %v3693_v56  ;;  %v2679_v5 = vadd.f32 %v2593_v63, %v2517_v53  ;;  %v2595_v6 = vpop.f32.mrb[47].mxu0  ;;  %v2672_v11 = vpop.f32.mrb[47].mxu1  ;;  %v2681_v50 = vadd.f32 %v2670_v2, %v2519_v29 }
 0xc39   :  { %5109 = vpow2.f32 %v3695_v61  ;;  %v2680_v12 = vadd.f32 %v2595_v6, %v2518_v60  ;;  %v2682_v19 = vadd.f32 %v2672_v11, %v2520_v13 }
 0xc3a   :  { %v3694_v21 = vmul.f32 -1.442695, %v2679_v5 }
 0xc3b   :  { %v3696_v34 = vmul.f32 -1.442695, %v2680_v12  ;;  %v3698_v49 = vmul.f32 -1.442695, %v2682_v19 }
 0xc3c   :  { %5111 = vpow2.f32 %v3694_v21 }
 0xc3d   :  { %5113 = vpow2.f32 %v3696_v34 }
 0xc3e   :  { %5115 = vpow2.f32 %v3697_v43 }
 0xc3f   :  { %5117 = vtanh.f32 %v2677_v23 }
 0xc42   :  { %v5108_v35 = vpop.eup %5107 }
 0xc43   :  { %v5110_v36 = vpop.eup %5109  ;;  %v2689_v44 = vadd.f32 1.0, %v5108_v35 }
 0xc44   :  { %v2701_v59 = vadd.f32 1.0, %v5110_v36 }
 0xc45   :  { %5119 = vrcp.f32 %v2689_v44  ;;  %v2733_v44 = vld [vmem:[#allocation2 + $0x308] sm:$0xff] }
 0xc46   :  { %v5112_v51 = vpop.eup %5111  ;;  %5121 = vrcp.f32 %v2701_v59 }
 0xc47   :  { %v5114_v54 = vpop.eup %5113  ;;  %v2690_v53 = vadd.f32 1.0, %v5112_v51  ;;  %5123 = vpow2.f32 %v3698_v49 }
 0xc48   :  { %5125 = vtanh.f32 %v2681_v50  ;;  %v2702_v56 = vadd.f32 1.0, %v5114_v54  ;;  %v5116_v57 = vpop.eup %5115 }
 0xc49   :  { %5127 = vrcp.f32 %v2690_v53  ;;  %v5118_v60 = vpop.eup %5117  ;;  %v2715_v5 = vadd.f32 1.0, %v5116_v57 }
 0xc4a   :  { %5129 = vrcp.f32 %v2702_v56  ;;  %v2736_v56 = vld [vmem:[#allocation2 + $0x320] sm:$0xff] }
 0xc4b   :  { %5131 = vrcp.f32 %v2715_v5  ;;  %v2735_v5 = vld [vmem:[#allocation2 + $0x318] sm:$0xff] }
 0xc4f   :  { %v5120_v61 = vpop.eup %5119 }
 0xc50   :  { %v5122_v63 = vpop.eup %5121  ;;  %v2723_v3 = vmul.f32 %v5120_v61, %v5118_v60  ;;  %v2737_v60 = vld [vmem:[#allocation2 + $0x328] sm:$0xff] }
 0xc51   :  { %v5124_v6 = vpop.eup %5123  ;;  %v2721_v11 = vmul.f32 %v5122_v63, %v5965_v20 }
 0xc52   :  { %v5126_v2 = vpop.eup %5125  ;;  %v2716_v13 = vadd.f32 1.0, %v5124_v6 }
 0xc53   :  { %v5128_v12 = vpop.eup %5127  ;;  %v6009_v21 = vadd.f32 %v2723_v3, %v2721_v11 }
 0xc54   :  { %v5130_v28 = vpop.eup %5129  ;;  %v2724_v34 = vmul.f32 %v5128_v12, %v5126_v2 }
 0xc55   :  { %5133 = vtanh.f32 %v6009_v21  ;;  %v2722_v16 = vmul.f32 %v5130_v28, %v5969_v38  ;;  %v5132_v19 = vpop.eup %5131  ;;  %v2732_v38 = vld [vmem:[#allocation2 + $0x300] sm:$0xff] }
 0xc56   :  { %5135 = vrcp.f32 %v2716_v13 }
 0xc57   :  { %v6013_v43 = vadd.f32 %v2724_v34, %v2722_v16  ;;  %v2739_v16 = vld [vmem:[#allocation2 + $0x338] sm:$0xff] }
 0xc59   :  { %5137 = vtanh.f32 %v6013_v43 }
 0xc5f   :  { %v5134_v23 = vpop.eup %5133 }
 0xc60   :  { %v2729_v20 = vmul.f32 %v5134_v23, %v5132_v19  ;;  %v5136_v29 = vpop.eup %5135  ;;  %v2734_v19 = vld [vmem:[#allocation2 + $0x310] sm:$0xff] }
 0xc62   :  { %2805 = vmatmul.mubr.f32.vlgmr.msra.gmra.mrb[48].mxu0 %v2729_v20  ;;  %2882 = vmatmul.mubr.f32.vlgmr.msra.gmra.mrb[48].mxu1 %v2729_v20 }
 0xc63   :  { %v5138_v35 = vpop.eup %5137  ;;  %2810 = vmatprep.mubr.f32.mxu0 %v5343_v0  ;;  %2887 = vmatprep.mubr.f32.mxu1 %v5343_v0 }
 0xc64   :  { %v2730_v36 = vmul.f32 %v5138_v35, %v5136_v29  ;;  %4558 = vmatpush1.bf16.msra.mxu0 %v5390_v8  ;;  %4590 = vmatpush1.bf16.msra.mxu1 %v5403_v25  ;;  %v2738_v35 = vld [vmem:[#allocation2 + $0x330] sm:$0xff] }
 0xc65   :  { %4560 = vmatprep.subr.bf16.mxu0 %v5392_v9  ;;  %4592 = vmatprep.subr.bf16.mxu1 %v5413_v33 }
 0xc66   :  { %2811 = vmatmul.mubr.f32.gmra.mrb[50].mxu0 %v2730_v36  ;;  %2888 = vmatmul.mubr.f32.gmra.mrb[50].mxu1 %v2730_v36 }
 0xc67   :  { %3023 = vmatprep.mubr.f32.mxu0 %v5343_v0  ;;  %3100 = vmatprep.mubr.f32.mxu1 %v5343_v0 }
 0xc68   :  { %4562 = vmatpush1.bf16.msra.mxu0 %v5396_v14  ;;  %4594 = vmatpush1.bf16.msra.mxu1 %v5415_v37 }
 0xc69   :  { %4564 = vmatprep.subr.bf16.mxu0 %v5399_v17  ;;  %4596 = vmatprep.subr.bf16.mxu1 %v5421_v45 }
 0xc6c   :  { %4566 = vmatpush1.bf16.msra.mxu0 %v5406_v26  ;;  %4598 = vmatpush1.bf16.msra.mxu1 %v5427_v48 }
 0xc6d   :  { %4568 = vmatprep.subr.bf16.mxu0 %v5410_v30  ;;  %4600 = vmatprep.subr.bf16.mxu1 %v5430_v52 }
 0xc70   :  { %4570 = vmatpush1.bf16.msra.mxu0 %v5419_v42  ;;  %4602 = vmatpush1.bf16.msra.mxu1 %v5439_v62 }
 0xc71   :  { %4572 = vmatprep.subr.bf16.mxu0 %v5424_v46  ;;  %4604 = vmatprep.subr.bf16.mxu1 %v5442_v1 }
 0xc74   :  { %4574 = vmatpush1.bf16.msra.mxu0 %v5433_v55  ;;  %4606 = vmatpush1.bf16.msra.mxu1 %v5451_v15 }
 0xc75   :  { %4576 = vmatprep.subr.bf16.mxu0 %v5436_v58  ;;  %4608 = vmatprep.subr.bf16.mxu1 %v5454_v18 }
 0xc78   :  { %4578 = vmatpush1.bf16.msra.mxu0 %v5445_v7  ;;  %4610 = vmatpush1.bf16.msra.mxu1 %v5463_v31 }
 0xc79   :  { %4580 = vmatprep.subr.bf16.mxu0 %v5448_v10  ;;  %4612 = vmatprep.subr.bf16.mxu1 %v5466_v32 }
 0xc7c   :  { %4582 = vmatpush1.bf16.msra.mxu0 %v5457_v24  ;;  %4614 = vmatpush1.bf16.msra.mxu1 %v5473_v40 }
 0xc7d   :  { %4584 = vmatprep.subr.bf16.mxu0 %v5460_v27  ;;  %4616 = vmatprep.subr.bf16.mxu1 %v5476_v41 }
 0xc80   :  { %4586 = vmatpush1.bf16.msra.mxu0 %v5469_v39  ;;  %4618 = vmatpush1.bf16.msra.mxu1 %v5480_v47 }
 0xc81   :  { %4620 = vmatprep.subr.bf16.mxu0 %v5388_v4  ;;  %4652 = vmatprep.subr.bf16.mxu1 %v5401_v22 }
 0xd35   :  { %v2806_v49 = vpop.f32.mrb[48].mxu0  ;;  %v2883_v59 = vpop.f32.mrb[48].mxu1 }
 0xd36   :  { %v2894_v50 = vadd.f32 %v2806_v49, %v2732_v38  ;;  %v2808_v51 = vpop.f32.mrb[49].mxu0  ;;  %v2885_v54 = vpop.f32.mrb[49].mxu1  ;;  %v2896_v29 = vadd.f32 %v2883_v59, %v2734_v19 }
 0xd37   :  { %v2895_v53 = vadd.f32 %v2808_v51, %v2733_v44  ;;  %v2897_v34 = vadd.f32 %v2885_v54, %v2735_v5 }
 0xd38   :  { %v3699_v57 = vmul.f32 -1.442695, %v2894_v50 }
 0xd39   :  { %v3701_v61 = vmul.f32 -1.442695, %v2895_v53  ;;  %v2812_v63 = vpop.f32.mrb[50].mxu0  ;;  %v2889_v3 = vpop.f32.mrb[50].mxu1  ;;  %v3703_v23 = vmul.f32 -1.442695, %v2897_v34 }
 0xd3a   :  { %5139 = vpow2.f32 %v3699_v57  ;;  %v2898_v6 = vadd.f32 %v2812_v63, %v2736_v56  ;;  %v2814_v11 = vpop.f32.mrb[51].mxu0  ;;  %v2891_v2 = vpop.f32.mrb[51].mxu1  ;;  %v2900_v51 = vadd.f32 %v2889_v3, %v2738_v35 }
 0xd3b   :  { %5141 = vpow2.f32 %v3701_v61  ;;  %v2899_v12 = vadd.f32 %v2814_v11, %v2737_v60  ;;  %v2901_v20 = vadd.f32 %v2891_v2, %v2739_v16 }
 0xd3c   :  { %v3700_v28 = vmul.f32 -1.442695, %v2898_v6 }
 0xd3d   :  { %v3702_v13 = vmul.f32 -1.442695, %v2899_v12  ;;  %v3704_v49 = vmul.f32 -1.442695, %v2901_v20 }
 0xd3e   :  { %5143 = vpow2.f32 %v3700_v28 }
 0xd3f   :  { %5145 = vpow2.f32 %v3702_v13 }
 0xd40   :  { %5147 = vpow2.f32 %v3703_v23 }
 0xd41   :  { %5149 = vtanh.f32 %v2896_v29 }
 0xd44   :  { %v5140_v36 = vpop.eup %5139 }
 0xd45   :  { %v5142_v38 = vpop.eup %5141  ;;  %v2908_v44 = vadd.f32 1.0, %v5140_v36 }
 0xd46   :  { %v2920_v50 = vadd.f32 1.0, %v5142_v38 }
 0xd47   :  { %5151 = vrcp.f32 %v2908_v44  ;;  %v2952_v44 = vld [vmem:[#allocation2 + $0x348] sm:$0xff] }
 0xd48   :  { %v5144_v53 = vpop.eup %5143  ;;  %5153 = vrcp.f32 %v2920_v50 }
 0xd49   :  { %v5146_v54 = vpop.eup %5145  ;;  %v2909_v56 = vadd.f32 1.0, %v5144_v53  ;;  %5155 = vpow2.f32 %v3704_v49 }
 0xd4a   :  { %5157 = vtanh.f32 %v2900_v51  ;;  %v2921_v57 = vadd.f32 1.0, %v5146_v54  ;;  %v5148_v59 = vpop.eup %5147 }
 0xd4b   :  { %5159 = vrcp.f32 %v2909_v56  ;;  %v5150_v60 = vpop.eup %5149  ;;  %v2934_v6 = vadd.f32 1.0, %v5148_v59 }
 0xd4c   :  { %5161 = vrcp.f32 %v2921_v57  ;;  %v2955_v57 = vld [vmem:[#allocation2 + $0x360] sm:$0xff] }
 0xd4d   :  { %5163 = vrcp.f32 %v2934_v6  ;;  %v2954_v6 = vld [vmem:[#allocation2 + $0x358] sm:$0xff] }
 0xd51   :  { %v5152_v61 = vpop.eup %5151 }
 0xd52   :  { %v5154_v63 = vpop.eup %5153  ;;  %v2942_v5 = vmul.f32 %v5152_v61, %v5150_v60  ;;  %v2956_v60 = vld [vmem:[#allocation2 + $0x368] sm:$0xff] }
 0xd53   :  { %v5156_v11 = vpop.eup %5155  ;;  %v2940_v2 = vmul.f32 %v5154_v63, %v6009_v21 }
 0xd54   :  { %v5158_v3 = vpop.eup %5157  ;;  %v2935_v16 = vadd.f32 1.0, %v5156_v11 }
 0xd55   :  { %v5160_v12 = vpop.eup %5159  ;;  %v6053_v28 = vadd.f32 %v2942_v5, %v2940_v2 }
 0xd56   :  { %v5162_v34 = vpop.eup %5161  ;;  %v2943_v13 = vmul.f32 %v5160_v12, %v5158_v3 }
 0xd57   :  { %5165 = vtanh.f32 %v6053_v28  ;;  %v2941_v19 = vmul.f32 %v5162_v34, %v6013_v43  ;;  %v5164_v20 = vpop.eup %5163  ;;  %v2951_v43 = vld [vmem:[#allocation2 + $0x340] sm:$0xff] }
 0xd58   :  { %5167 = vrcp.f32 %v2935_v16  ;;  %v2953_v16 = vld [vmem:[#allocation2 + $0x350] sm:$0xff] }
 0xd59   :  { %v6057_v23 = vadd.f32 %v2943_v13, %v2941_v19  ;;  %v2958_v13 = vld [vmem:[#allocation2 + $0x378] sm:$0xff] }
 0xd5b   :  { %5169 = vtanh.f32 %v6057_v23 }
 0xd61   :  { %v5166_v29 = vpop.eup %5165 }
 0xd62   :  { %v2948_v21 = vmul.f32 %v5166_v29, %v5164_v20  ;;  %v5168_v35 = vpop.eup %5167 }
 0xd64   :  { %3024 = vmatmul.mubr.f32.vlgmr.msra.gmra.mrb[52].mxu0 %v2948_v21  ;;  %3101 = vmatmul.mubr.f32.vlgmr.msra.gmra.mrb[52].mxu1 %v2948_v21  ;;  %v2957_v21 = vld [vmem:[#allocation2 + $0x370] sm:$0xff] }
 0xd65   :  { %v5170_v36 = vpop.eup %5169  ;;  %3029 = vmatprep.mubr.f32.mxu0 %v5343_v0  ;;  %3106 = vmatprep.mubr.f32.mxu1 %v5343_v0 }
 0xd66   :  { %v2949_v38 = vmul.f32 %v5170_v36, %v5168_v35  ;;  %4622 = vmatpush1.bf16.msra.mxu0 %v5390_v8  ;;  %4654 = vmatpush1.bf16.msra.mxu1 %v5403_v25 }
 0xd67   :  { %4624 = vmatprep.subr.bf16.mxu0 %v5392_v9  ;;  %4656 = vmatprep.subr.bf16.mxu1 %v5413_v33 }
 0xd68   :  { %3030 = vmatmul.mubr.f32.gmra.mrb[54].mxu0 %v2949_v38  ;;  %3107 = vmatmul.mubr.f32.gmra.mrb[54].mxu1 %v2949_v38 }
 0xd69   :  { %3242 = vmatprep.mubr.f32.mxu0 %v5343_v0  ;;  %3319 = vmatprep.mubr.f32.mxu1 %v5343_v0 }
 0xd6a   :  { %4626 = vmatpush1.bf16.msra.mxu0 %v5396_v14  ;;  %4658 = vmatpush1.bf16.msra.mxu1 %v5415_v37 }
 0xd6b   :  { %4628 = vmatprep.subr.bf16.mxu0 %v5399_v17  ;;  %4660 = vmatprep.subr.bf16.mxu1 %v5421_v45 }
 0xd6e   :  { %4630 = vmatpush1.bf16.msra.mxu0 %v5406_v26  ;;  %4662 = vmatpush1.bf16.msra.mxu1 %v5427_v48 }
 0xd6f   :  { %4632 = vmatprep.subr.bf16.mxu0 %v5410_v30  ;;  %4664 = vmatprep.subr.bf16.mxu1 %v5430_v52 }
 0xd72   :  { %4634 = vmatpush1.bf16.msra.mxu0 %v5419_v42  ;;  %4666 = vmatpush1.bf16.msra.mxu1 %v5439_v62 }
 0xd73   :  { %4636 = vmatprep.subr.bf16.mxu0 %v5424_v46  ;;  %4668 = vmatprep.subr.bf16.mxu1 %v5442_v1 }
 0xd76   :  { %4638 = vmatpush1.bf16.msra.mxu0 %v5433_v55  ;;  %4670 = vmatpush1.bf16.msra.mxu1 %v5451_v15 }
 0xd77   :  { %4640 = vmatprep.subr.bf16.mxu0 %v5436_v58  ;;  %4672 = vmatprep.subr.bf16.mxu1 %v5454_v18 }
 0xd7a   :  { %4642 = vmatpush1.bf16.msra.mxu0 %v5445_v7  ;;  %4674 = vmatpush1.bf16.msra.mxu1 %v5463_v31 }
 0xd7b   :  { %4644 = vmatprep.subr.bf16.mxu0 %v5448_v10  ;;  %4676 = vmatprep.subr.bf16.mxu1 %v5466_v32 }
 0xd7e   :  { %4646 = vmatpush1.bf16.msra.mxu0 %v5457_v24  ;;  %4678 = vmatpush1.bf16.msra.mxu1 %v5473_v40 }
 0xd7f   :  { %4648 = vmatprep.subr.bf16.mxu0 %v5460_v27  ;;  %4680 = vmatprep.subr.bf16.mxu1 %v5476_v41 }
 0xd82   :  { %4650 = vmatpush1.bf16.msra.mxu0 %v5469_v39  ;;  %4682 = vmatpush1.bf16.msra.mxu1 %v5480_v47 }
 0xd83   :  { %4684 = vmatprep.subr.bf16.mxu0 %v5388_v4  ;;  %4716 = vmatprep.subr.bf16.mxu1 %v5401_v22 }
 0xe37   :  { %v3025_v49 = vpop.f32.mrb[52].mxu0  ;;  %v3102_v50 = vpop.f32.mrb[52].mxu1 }
 0xe38   :  { %v3113_v51 = vadd.f32 %v3025_v49, %v2951_v43  ;;  %v3027_v53 = vpop.f32.mrb[53].mxu0  ;;  %v3104_v54 = vpop.f32.mrb[53].mxu1  ;;  %v3115_v29 = vadd.f32 %v3102_v50, %v2953_v16 }
 0xe39   :  { %v3114_v56 = vadd.f32 %v3027_v53, %v2952_v44  ;;  %v3116_v12 = vadd.f32 %v3104_v54, %v2954_v6 }
 0xe3a   :  { %v3705_v59 = vmul.f32 -1.442695, %v3113_v51 }
 0xe3b   :  { %v3707_v61 = vmul.f32 -1.442695, %v3114_v56  ;;  %v3031_v63 = vpop.f32.mrb[54].mxu0  ;;  %v3108_v5 = vpop.f32.mrb[54].mxu1  ;;  %v3709_v19 = vmul.f32 -1.442695, %v3116_v12 }
 0xe3c   :  { %5171 = vpow2.f32 %v3705_v59  ;;  %v3117_v11 = vadd.f32 %v3031_v63, %v2955_v57  ;;  %v3033_v4 = vpop.f32.mrb[55].mxu0  ;;  %v3110_v2 = vpop.f32.mrb[55].mxu1  ;;  %v3119_v49 = vadd.f32 %v3108_v5, %v2957_v21 }
 0xe3d   :  { %5173 = vpow2.f32 %v3707_v61  ;;  %v3118_v22 = vadd.f32 %v3033_v4, %v2956_v60  ;;  %v3120_v20 = vadd.f32 %v3110_v2, %v2958_v13 }
 0xe3e   :  { %v3706_v3 = vmul.f32 -1.442695, %v3117_v11 }
 0xe3f   :  { %v3708_v34 = vmul.f32 -1.442695, %v3118_v22  ;;  %v3710_v43 = vmul.f32 -1.442695, %v3120_v20 }
 0xe40   :  { %5175 = vpow2.f32 %v3706_v3 }
 0xe41   :  { %5177 = vpow2.f32 %v3708_v34 }
 0xe42   :  { %5179 = vpow2.f32 %v3709_v19 }
 0xe43   :  { %5181 = vtanh.f32 %v3115_v29 }
 0xe46   :  { %v5172_v35 = vpop.eup %5171 }
 0xe47   :  { %v5174_v36 = vpop.eup %5173  ;;  %v3127_v38 = vadd.f32 1.0, %v5172_v35 }
 0xe48   :  { %v3139_v44 = vadd.f32 1.0, %v5174_v36 }
 0xe49   :  { %5183 = vrcp.f32 %v3127_v38 }
 0xe4a   :  { %v5176_v51 = vpop.eup %5175  ;;  %5185 = vrcp.f32 %v3139_v44 }
 0xe4b   :  { %v5178_v53 = vpop.eup %5177  ;;  %v3128_v54 = vadd.f32 1.0, %v5176_v51  ;;  %5187 = vpow2.f32 %v3710_v43 }
 0xe4c   :  { %5189 = vtanh.f32 %v3119_v49  ;;  %v3140_v56 = vadd.f32 1.0, %v5178_v53  ;;  %v5180_v50 = vpop.eup %5179 }
 0xe4d   :  { %5191 = vrcp.f32 %v3128_v54  ;;  %v5182_v57 = vpop.eup %5181  ;;  %v3153_v63 = vadd.f32 1.0, %v5180_v50 }
 0xe4e   :  { %5193 = vrcp.f32 %v3140_v56 }
 0xe4f   :  { %5195 = vrcp.f32 %v3153_v63 }
 0xe53   :  { %v5184_v59 = vpop.eup %5183 }
 0xe54   :  { %v5186_v60 = vpop.eup %5185  ;;  %v3161_v61 = vmul.f32 %v5184_v59, %v5182_v57 }
 0xe55   :  { %v5188_v6 = vpop.eup %5187  ;;  %v3159_v11 = vmul.f32 %v5186_v60, %v6053_v28 }
 0xe56   :  { %v5190_v5 = vpop.eup %5189  ;;  %v3154_v12 = vadd.f32 1.0, %v5188_v6 }
 0xe57   :  { %v5192_v4 = vpop.eup %5191  ;;  %v6097_v2 = vadd.f32 %v3161_v61, %v3159_v11 }
 0xe58   :  { %v5194_v22 = vpop.eup %5193  ;;  %v3162_v3 = vmul.f32 %v5192_v4, %v5190_v5 }
 0xe59   :  { %5197 = vtanh.f32 %v6097_v2  ;;  %v3160_v34 = vmul.f32 %v5194_v22, %v6057_v23  ;;  %v5196_v16 = vpop.eup %5195 }
 0xe5a   :  { %5199 = vrcp.f32 %v3154_v12 }
 0xe5b   :  { %v6101_v13 = vadd.f32 %v3162_v3, %v3160_v34 }
 0xe5d   :  { %5201 = vtanh.f32 %v6101_v13 }
 0xe63   :  { %v5198_v19 = vpop.eup %5197 }
 0xe64   :  { %v3167_v28 = vmul.f32 %v5198_v19, %v5196_v16  ;;  %v5200_v20 = vpop.eup %5199 }
 0xe66   :  { %3243 = vmatmul.mubr.f32.vlgmr.msra.gmra.mrb[56].mxu0 %v3167_v28  ;;  %3320 = vmatmul.mubr.f32.vlgmr.msra.gmra.mrb[56].mxu1 %v3167_v28 }
 0xe67   :  { %v5202_v29 = vpop.eup %5201  ;;  %3248 = vmatprep.mubr.f32.mxu0 %v5343_v0  ;;  %3325 = vmatprep.mubr.f32.mxu1 %v5343_v0 }
 0xe68   :  { %v3168_v21 = vmul.f32 %v5202_v29, %v5200_v20  ;;  %4686 = vmatpush1.bf16.msra.mxu0 %v5390_v8  ;;  %4718 = vmatpush1.bf16.msra.mxu1 %v5403_v25  ;;  %v3170_v8 = vld [vmem:[#allocation2 + $0x380] sm:$0xff]  ;;  %v3390_v29 = vld [vmem:[#allocation2 + $0x3c8] sm:$0xff] }
 0xe69   :  { %4688 = vmatprep.subr.bf16.mxu0 %v5392_v9  ;;  %4720 = vmatprep.subr.bf16.mxu1 %v5413_v33  ;;  %v3171_v9 = vld [vmem:[#allocation2 + $0x388] sm:$0xff] }
 0xe6a   :  { %3249 = vmatmul.mubr.f32.gmra.mrb[58].mxu0 %v3168_v21  ;;  %3326 = vmatmul.mubr.f32.gmra.mrb[58].mxu1 %v3168_v21 }
 0xe6b   :  { %3461 = vmatprep.mubr.f32.mxu0 %v5343_v0  ;;  %3538 = vmatprep.mubr.f32.mxu1 %v5343_v0 }
 0xe6c   :  { %4690 = vmatpush1.bf16.msra.mxu0 %v5396_v14  ;;  %4722 = vmatpush1.bf16.msra.mxu1 %v5415_v37  ;;  %v3174_v37 = vld [vmem:[#allocation2 + $0x3a0] sm:$0xff] }
 0xe6d   :  { %4692 = vmatprep.subr.bf16.mxu0 %v5399_v17  ;;  %4724 = vmatprep.subr.bf16.mxu1 %v5421_v45  ;;  %v3175_v45 = vld [vmem:[#allocation2 + $0x3a8] sm:$0xff] }
 0xe70   :  { %4694 = vmatpush1.bf16.msra.mxu0 %v5406_v26  ;;  %4726 = vmatpush1.bf16.msra.mxu1 %v5427_v48 }
 0xe71   :  { %4696 = vmatprep.subr.bf16.mxu0 %v5410_v30  ;;  %4728 = vmatprep.subr.bf16.mxu1 %v5430_v52 }
 0xe74   :  { %4698 = vmatpush1.bf16.msra.mxu0 %v5419_v42  ;;  %4730 = vmatpush1.bf16.msra.mxu1 %v5439_v62 }
 0xe75   :  { %4700 = vmatprep.subr.bf16.mxu0 %v5424_v46  ;;  %4732 = vmatprep.subr.bf16.mxu1 %v5442_v1 }
 0xe78   :  { %4702 = vmatpush1.bf16.msra.mxu0 %v5433_v55  ;;  %4734 = vmatpush1.bf16.msra.mxu1 %v5451_v15  ;;  %v3173_v55 = vld [vmem:[#allocation2 + $0x398] sm:$0xff] }
 0xe79   :  { %4704 = vmatprep.subr.bf16.mxu0 %v5436_v58  ;;  %4736 = vmatprep.subr.bf16.mxu1 %v5454_v18 }
 0xe7c   :  { %4706 = vmatpush1.bf16.msra.mxu0 %v5445_v7  ;;  %4738 = vmatpush1.bf16.msra.mxu1 %v5463_v31 }
 0xe7d   :  { %4708 = vmatprep.subr.bf16.mxu0 %v5448_v10  ;;  %4740 = vmatprep.subr.bf16.mxu1 %v5466_v32 }
 0xe80   :  { %4710 = vmatpush1.bf16.msra.mxu0 %v5457_v24  ;;  %4742 = vmatpush1.bf16.msra.mxu1 %v5473_v40  ;;  %v3177_v24 = vld [vmem:[#allocation2 + $0x3b8] sm:$0xff]  ;;  %v3176_v40 = vld [vmem:[#allocation2 + $0x3b0] sm:$0xff] }
 0xe81   :  { %4712 = vmatprep.subr.bf16.mxu0 %v5460_v27  ;;  %4744 = vmatprep.subr.bf16.mxu1 %v5476_v41  ;;  %v3172_v27 = vld [vmem:[#allocation2 + $0x390] sm:$0xff] }
 0xe84   :  { %4714 = vmatpush1.bf16.msra.mxu0 %v5469_v39  ;;  %4746 = vmatpush1.bf16.msra.mxu1 %v5480_v47 }
 0xf39   :  { %v3244_v14 = vpop.f32.mrb[56].mxu0  ;;  %v3321_v17 = vpop.f32.mrb[56].mxu1 }
 0xf3a   :  { %v3332_v25 = vadd.f32 %v3244_v14, %v3170_v8  ;;  %v3246_v26 = vpop.f32.mrb[57].mxu0  ;;  %v3323_v30 = vpop.f32.mrb[57].mxu1  ;;  %v3334_v39 = vadd.f32 %v3321_v17, %v3172_v27  ;;  %v3395_v27 = vld [vmem:[#allocation2 + $0x3f0] sm:$0xff] }
 0xf3b   :  { %v3333_v33 = vadd.f32 %v3246_v26, %v3171_v9  ;;  %v3335_v15 = vadd.f32 %v3323_v30, %v3173_v55  ;;  %v3393_v26 = vld [vmem:[#allocation2 + $0x3e0] sm:$0xff] }
 0xf3c   :  { %v3711_v42 = vmul.f32 -1.442695, %v3332_v25 }
 0xf3d   :  { %v3713_v46 = vmul.f32 -1.442695, %v3333_v33  ;;  %v3250_v48 = vpop.f32.mrb[58].mxu0  ;;  %v3327_v52 = vpop.f32.mrb[58].mxu1  ;;  %v3715_v31 = vmul.f32 -1.442695, %v3335_v15 }
 0xf3e   :  { %5203 = vpow2.f32 %v3711_v42  ;;  %v3336_v58 = vadd.f32 %v3250_v48, %v3174_v37  ;;  %v3252_v62 = vpop.f32.mrb[59].mxu0  ;;  %v3329_v1 = vpop.f32.mrb[59].mxu1  ;;  %v3338_v38 = vadd.f32 %v3327_v52, %v3176_v40  ;;  %v3394_v33 = vld [vmem:[#allocation2 + $0x3e8] sm:$0xff] }
 0xf3f   :  { %5205 = vpow2.f32 %v3713_v46  ;;  %v3337_v7 = vadd.f32 %v3252_v62, %v3175_v45  ;;  %v3339_v32 = vadd.f32 %v3329_v1, %v3177_v24  ;;  %v3392_v46 = vld [vmem:[#allocation2 + $0x3d8] sm:$0xff] }
 0xf40   :  { %v3712_v10 = vmul.f32 -1.442695, %v3336_v58 }
 0xf41   :  { %v3714_v18 = vmul.f32 -1.442695, %v3337_v7  ;;  %v3716_v35 = vmul.f32 -1.442695, %v3339_v32  ;;  %v3396_v7 = vld [vmem:[#allocation2 + $0x3f8] sm:$0xff] }
 0xf42   :  { %5207 = vpow2.f32 %v3712_v10  ;;  %v3391_v10 = vld [vmem:[#allocation2 + $0x3d0] sm:$0xff] }
 0xf43   :  { %5209 = vpow2.f32 %v3714_v18 }
 0xf44   :  { %5211 = vpow2.f32 %v3715_v31 }
 0xf45   :  { %5213 = vtanh.f32 %v3334_v39 }
 0xf48   :  { %v5204_v41 = vpop.eup %5203 }
 0xf49   :  { %v5206_v47 = vpop.eup %5205  ;;  %v3346_v23 = vadd.f32 1.0, %v5204_v41 }
 0xf4a   :  { %v3358_v36 = vadd.f32 1.0, %v5206_v47 }
 0xf4b   :  { %5215 = vrcp.f32 %v3346_v23 }
 0xf4c   :  { %v5208_v43 = vpop.eup %5207  ;;  %5217 = vrcp.f32 %v3358_v36 }
 0xf4d   :  { %v5210_v44 = vpop.eup %5209  ;;  %v3347_v49 = vadd.f32 1.0, %v5208_v43  ;;  %5219 = vpow2.f32 %v3716_v35 }
 0xf4e   :  { %5221 = vtanh.f32 %v3338_v38  ;;  %v3359_v51 = vadd.f32 1.0, %v5210_v44  ;;  %v5212_v53 = vpop.eup %5211 }
 0xf4f   :  { %5223 = vrcp.f32 %v3347_v49  ;;  %v5214_v54 = vpop.eup %5213  ;;  %v3372_v59 = vadd.f32 1.0, %v5212_v53 }
 0xf50   :  { %5225 = vrcp.f32 %v3359_v51 }
 0xf51   :  { %5227 = vrcp.f32 %v3372_v59 }
 0xf55   :  { %v5216_v56 = vpop.eup %5215 }
 0xf56   :  { %v5218_v50 = vpop.eup %5217  ;;  %v3380_v57 = vmul.f32 %v5216_v56, %v5214_v54 }
 0xf57   :  { %v5220_v60 = vpop.eup %5219  ;;  %v3378_v61 = vmul.f32 %v5218_v50, %v6097_v2 }
 0xf58   :  { %v5222_v63 = vpop.eup %5221  ;;  %v3373_v22 = vadd.f32 1.0, %v5220_v60 }
 0xf59   :  { %v5224_v6 = vpop.eup %5223  ;;  %v6139_v11 = vadd.f32 %v3380_v57, %v3378_v61 }
 0xf5a   :  { %v5226_v5 = vpop.eup %5225  ;;  %v3381_v4 = vmul.f32 %v5224_v6, %v5222_v63 }
 0xf5b   :  { %5229 = vtanh.f32 %v6139_v11  ;;  %v3379_v3 = vmul.f32 %v5226_v5, %v6101_v13  ;;  %v5228_v34 = vpop.eup %5227  ;;  %v3389_v13 = vld [vmem:[#allocation2 + $0x3c0] sm:$0xff] }
 0xf5c   :  { %5231 = vrcp.f32 %v3373_v22 }
 0xf5d   :  { %v6143_v12 = vadd.f32 %v3381_v4, %v3379_v3 }
 0xf5f   :  { %5233 = vtanh.f32 %v6143_v12 }
 0xf65   :  { %v5230_v16 = vpop.eup %5229 }
 0xf66   :  { %v3386_v2 = vmul.f32 %v5230_v16, %v5228_v34  ;;  %v5232_v19 = vpop.eup %5231 }
 0xf68   :  { %3462 = vmatmul.mubr.f32.vlgmr.msra.gmra.mrb[60].mxu0 %v3386_v2  ;;  %3539 = vmatmul.mubr.f32.vlgmr.msra.gmra.mrb[60].mxu1 %v3386_v2 }
 0xf69   :  { %v5234_v28 = vpop.eup %5233  ;;  %3467 = vmatprep.mubr.f32.mxu0 %v5343_v0  ;;  %3544 = vmatprep.mubr.f32.mxu1 %v5343_v0 }
 0xf6a   :  { %v3387_v20 = vmul.f32 %v5234_v28, %v5232_v19 }
 0xf6c   :  { %3468 = vmatmul.mubr.f32.gmra.mrb[62].mxu0 %v3387_v20  ;;  %3545 = vmatmul.mubr.f32.gmra.mrb[62].mxu1 %v3387_v20 }
0x103b   :  { %v3463_v21 = vpop.f32.mrb[60].mxu0  ;;  %v3540_v8 = vpop.f32.mrb[60].mxu1 }
0x103c   :  { %v3551_v9 = vadd.f32 %v3463_v21, %v3389_v13  ;;  %v3465_v14 = vpop.f32.mrb[61].mxu0  ;;  %v3542_v17 = vpop.f32.mrb[61].mxu1  ;;  %v3553_v24 = vadd.f32 %v3540_v8, %v3391_v10 }
0x103d   :  { %v3552_v25 = vadd.f32 %v3465_v14, %v3390_v29  ;;  %v3554_v62 = vadd.f32 %v3542_v17, %v3392_v46 }
0x103e   :  { %v3717_v30 = vmul.f32 -1.442695, %v3551_v9 }
0x103f   :  { %v3719_v37 = vmul.f32 -1.442695, %v3552_v25  ;;  %v3469_v42 = vpop.f32.mrb[62].mxu0  ;;  %v3546_v45 = vpop.f32.mrb[62].mxu1  ;;  %v3721_v15 = vmul.f32 -1.442695, %v3554_v62 }
0x1040   :  { %5235 = vpow2.f32 %v3717_v30  ;;  %v3555_v0 = vadd.f32 %v3469_v42, %v3393_v26  ;;  %v3471_v48 = vpop.f32.mrb[63].mxu0  ;;  %v3548_v52 = vpop.f32.mrb[63].mxu1  ;;  %v3557_v47 = vadd.f32 %v3546_v45, %v3395_v27 }
0x1041   :  { %5237 = vpow2.f32 %v3719_v37  ;;  %v3556_v55 = vadd.f32 %v3471_v48, %v3394_v33  ;;  %v3558_v18 = vadd.f32 %v3548_v52, %v3396_v7 }
0x1042   :  { %v3718_v58 = vmul.f32 -1.442695, %v3555_v0 }
0x1043   :  { %v3720_v1 = vmul.f32 -1.442695, %v3556_v55  ;;  %v3722_v40 = vmul.f32 -1.442695, %v3558_v18 }
0x1044   :  { %5239 = vpow2.f32 %v3718_v58 }
0x1045   :  { %5241 = vpow2.f32 %v3720_v1 }
0x1046   :  { %5243 = vpow2.f32 %v3721_v15 }
0x1047   :  { %5245 = vtanh.f32 %v3553_v24 }
0x104a   :  { %v5236_v31 = vpop.eup %5235 }
0x104b   :  { %v5238_v32 = vpop.eup %5237  ;;  %v3565_v39 = vadd.f32 1.0, %v5236_v31 }
0x104c   :  { %v3577_v41 = vadd.f32 1.0, %v5238_v32 }
0x104d   :  { %5247 = vrcp.f32 %v3565_v39 }
0x104e   :  { %v5240_v23 = vpop.eup %5239  ;;  %5249 = vrcp.f32 %v3577_v41 }
0x104f   :  { %v5242_v35 = vpop.eup %5241  ;;  %v3566_v36 = vadd.f32 1.0, %v5240_v23  ;;  %5251 = vpow2.f32 %v3722_v40 }
0x1050   :  { %5253 = vtanh.f32 %v3557_v47  ;;  %v3578_v38 = vadd.f32 1.0, %v5242_v35  ;;  %v5244_v43 = vpop.eup %5243 }
0x1051   :  { %5255 = vrcp.f32 %v3566_v36  ;;  %v5246_v44 = vpop.eup %5245  ;;  %v3591_v54 = vadd.f32 1.0, %v5244_v43 }
0x1052   :  { %5257 = vrcp.f32 %v3578_v38 }
0x1053   :  { %5259 = vrcp.f32 %v3591_v54 }
0x1057   :  { %v5248_v49 = vpop.eup %5247 }
0x1058   :  { %v5250_v51 = vpop.eup %5249  ;;  %v3599_v53 = vmul.f32 %v5248_v49, %v5246_v44 }
0x1059   :  { %v5252_v56 = vpop.eup %5251  ;;  %v3597_v50 = vmul.f32 %v5250_v51, %v6139_v11 }
0x105a   :  { %v5254_v57 = vpop.eup %5253  ;;  %v3592_v6 = vadd.f32 1.0, %v5252_v56 }
0x105b   :  { %v5256_v59 = vpop.eup %5255  ;;  %v3601_v60 = vadd.f32 %v3599_v53, %v3597_v50 }
0x105c   :  { %v5258_v61 = vpop.eup %5257  ;;  %v3600_v63 = vmul.f32 %v5256_v59, %v5254_v57 }
0x105d   :  { %5261 = vtanh.f32 %v3601_v60  ;;  %v3598_v5 = vmul.f32 %v5258_v61, %v6143_v12  ;;  %v5260_v22 = vpop.eup %5259 }
0x105e   :  { %5263 = vrcp.f32 %v3592_v6 }
0x105f   :  { %v3602_v4 = vadd.f32 %v3600_v63, %v3598_v5 }
0x1061   :  { %5265 = vtanh.f32 %v3602_v4 }
0x1067   :  { %v5262_v3 = vpop.eup %5261 }
0x1068   :  { %v3605_v34 = vmul.f32 %v5262_v3, %v5260_v22  ;;  %v5264_v16 = vpop.eup %5263 }
0x106a   :  { %3607 = vst [vmem:[#allocation7] sm:$0xff] %v3605_v34 }
0x106b   :  { %v5266_v11 = vpop.eup %5265 }
0x106c   :  { %v3606_v2 = vmul.f32 %v5266_v11, %v5264_v16 }
0x106e   :  { %3608 = vst [vmem:[#allocation7 + $0x8] sm:$0xff] %v3606_v2 }
0x106f   :  { %5322 = shalt.err (!%p5319_p6)
}
0x1070   :  { %s5323_s10 = scalar_lea.hbm %s6164_s2, 256 }
0x1071   :  { %p5324_p7 = scmp.ne.s32.totalorder %s6164_s2, %s5323_s10  ;;  %p5327_p8 = scmp.lt.u32.totalorder %s5323_s10, %s6164_s2 }
0x1073   :  { %p5329_p9 = pnand %p5327_p8, %p5324_p7 }
0x1075   :  { %5332 = shalt.err (!%p5329_p9)
}
0x1076   :  { %s5345_s15 = smov 128   ;;  %s5346_s16 = smov 8  }
0x1077   :  { %3620 = dma.vmem_to_hbm [thread:$0]  %s3615_s6, 256, %s6164_s2, [#allocation4], %s5345_s15, %s5345_s15, %s5346_s16  }
0x1078   :  { %5337 = dma.done.wait [#allocation4], 256  }
0x1079   :  { %5338 = vsyncadd [#allocation4], 4294967040 }
0x107a   :  { %3624 = vsyncpa [#allocation3], 1 }
0x107b   :  { %3625 = vsyncpa [#allocation6], 1 }
0x107c   :  { %3626 = vsyncpa [#allocation4], 1 }

</bundles_post_ra>
